<compile_context>
chip_gen: v7x
topology: tpu7x:2x2x1
jax: 0.10.0
libtpu: 0.0.40
codegen_flags: <defaults>
</compile_context>

<pallas_src>
import functools

import jax
import jax.numpy as jnp
from jax.experimental import pallas as pl
from jax.experimental.pallas import tpu as pltpu

EPS_LN = 1e-5     # nn.LayerNorm default eps
EPS_VEC = 1e-12   # vec_layernorm clamp

# Stay inside v7x's 64 MiB physical VMEM while overriding the small scoped
# defaults (16 MiB on v5e, 32 MiB on v6e/v7x).
VMEM_LIMIT_BYTES = 48 * 1024 * 1024

# Production row-tile targets (rows per grid step).  _tile() shrinks them for
# small demo shapes while keeping >=2 grid steps per grid.
NODE_TILE_TARGET = 512
EDGE_TILE_TARGET = 512


# ----------------------------- in-kernel helpers -----------------------------

def _mm(a, w):
    """MXU matmul: bf16 operands (weights stored bf16), f32 accumulation."""
    return jnp.dot(a.astype(w.dtype), w, preferred_element_type=jnp.float32)


def _silu(x):
    return x * jax.nn.sigmoid(x)


def _layernorm(x, w, b):
    mu = jnp.mean(x, axis=-1, keepdims=True)
    var = jnp.mean((x - mu) ** 2, axis=-1, keepdims=True)
    return (x - mu) * jax.lax.rsqrt(var + EPS_LN) * w + b


def _vec_max_min_norm(v):
    """vec_layernorm(vec, max_min_norm) on a (3, rows, H) tile."""
    dist = jnp.sqrt(jnp.sum(v * v, axis=0))                 # (rows, H)
    dist = jnp.maximum(dist, EPS_VEC)
    inv_dist = pl.reciprocal(dist, approx=True)             # EUP, reused x3
    mx = jnp.max(dist, axis=-1, keepdims=True)
    mn = jnp.min(dist, axis=-1, keepdims=True)
    delta = mx - mn
    delta = jnp.where(delta == 0.0, jnp.ones_like(delta), delta)
    nd = jax.nn.relu((dist - mn) * pl.reciprocal(delta, approx=True))
    return v * (nd * inv_dist)[None]


def _cosine_cutoff(r, cutoff_upper):
    c = 0.5 * (jnp.cos(jnp.pi * r / cutoff_upper) + 1.0)
    return jnp.where(r < cutoff_upper, c, jnp.zeros_like(c))


# --------------------------------- kernels -----------------------------------

def rbf_edge_kernel(cutoff_upper, alpha,
                    r_ref, means_ref, betas_ref, wr_ref, br_ref,
                    attr_o, cut_o):
    """ExpNormal RBF expansion + rbf_proj; also emits cosine_cutoff(r) once."""
    r = r_ref[...]                                           # (te, 1)
    cut = _cosine_cutoff(r, cutoff_upper)
    rbf = cut * jnp.exp(-betas_ref[...] *
                        (jnp.exp(alpha * (-r)) - means_ref[...]) ** 2)  # (te, R)
    attr_o[...] = _mm(rbf, wr_ref[...]) + br_ref[...]
    cut_o[...] = cut


def node_pre_kernel(x_ref, vec_ref, lnw_ref, lnb_ref,
                    wqkv_ref, bqkv_ref, wvec_ref,
                    q_o, kv_o, vecln_o, vec3_o, vdot_o):
    """layernorm(x), vec_layernorm(vec), fused q/k/v proj, fused vec_proj."""
    h = x_ref.shape[-1]
    xn = _layernorm(x_ref[...], lnw_ref[...], lnb_ref[...])
    qkv = _mm(xn, wqkv_ref[...]) + bqkv_ref[...]             # one (H,3H) matmul
    q_o[...] = qkv[:, :h]
    kv_o[...] = qkv[:, h:]                                   # (tn, 2H) = k|v

    u = _vec_max_min_norm(vec_ref[...])                      # (3, tn, h)
    tn = u.shape[1]
    p = _mm(u.reshape(3 * tn, h), wvec_ref[...])             # stacked components
    p = p.reshape(3, tn, 3 * h)                              # (3, tn, vec1|vec2|vec3)
    vecln_o[...] = u
    vec3_o[...] = p[:, :, 2 * h:]
    vdot_o[...] = jnp.sum(p[:, :, :h] * p[:, :, h:2 * h], axis=0)


def edge_msg_kernel(qi_ref, kvj_ref, vecj_ref, f_ref, cut_ref, d_ref,
                    M_ref, Mt_ref, wdkdv_ref, bdkdv_ref, ws_ref, bs_ref,
                    xmsg_o, vecmsg_o):
    """EquivariantMultiHeadAttention.message (last layer), tiled over edges."""
    h = qi_ref.shape[-1]
    f = f_ref[...]
    dkdv = _silu(_mm(f, wdkdv_ref[...]) + bdkdv_ref[...])    # act(dk|dv) (te, 2H)
    dk, dv = dkdv[:, :h], dkdv[:, h:]
    kv = kvj_ref[...]
    a = qi_ref[...] * kv[:, :h] * dk                         # (te, H)
    attn = _silu(_mm(a, M_ref[...])) * cut_ref[...]          # per-head (te, heads)
    attn_c = _mm(attn, Mt_ref[...])                          # broadcast back (te, H)
    vmsg = (kv[:, h:] * dv) * attn_c                         # (te, H)
    s = _silu(_mm(vmsg, ws_ref[...]) + bs_ref[...])          # act(s1|s2) (te, 2H)
    xmsg_o[...] = vmsg
    vecmsg_o[...] = vecj_ref[...] * s[:, :h][None] + s[:, h:][None] * d_ref[...]


def edge_fused_kernel(qi_ref, kvj_ref, vecj_ref, veci_ref, f_ref, cut_ref, d_ref,
                      M_ref, Mt_ref, wdkdv_ref, bdkdv_ref, ws_ref, bs_ref,
                      wtrg_ref, wsrc_ref, wf_ref, bf_ref,
                      xmsg_o, vecmsg_o, f_o):
    """message + edge_update fused (non-last layers); edge_attr residual in place."""
    h = qi_ref.shape[-1]
    f = f_ref[...]
    d = d_ref[...]
    vecj = vecj_ref[...]

    # ---- message ----
    dkdv = _silu(_mm(f, wdkdv_ref[...]) + bdkdv_ref[...])
    dk, dv = dkdv[:, :h], dkdv[:, h:]
    kv = kvj_ref[...]
    a = qi_ref[...] * kv[:, :h] * dk
    attn = _silu(_mm(a, M_ref[...])) * cut_ref[...]
    attn_c = _mm(attn, Mt_ref[...])
    vmsg = (kv[:, h:] * dv) * attn_c
    s = _silu(_mm(vmsg, ws_ref[...]) + bs_ref[...])
    xmsg_o[...] = vmsg
    vecmsg_o[...] = vecj * s[:, :h][None] + s[:, h:][None] * d

    # ---- edge_update (vector rejections) + fused residual ----
    _, te, _ = vecj.shape
    t = _mm(veci_ref[...].reshape(3 * te, h), wtrg_ref[...]).reshape(3, te, h)
    sp = _mm(vecj.reshape(3 * te, h), wsrc_ref[...]).reshape(3, te, h)
    w1 = t - jnp.sum(t * d, axis=0)[None] * d                # rejection along d_ij
    w2 = sp - jnp.sum(sp * d, axis=0)[None] * d              # rejection along -d_ij
    w_dot = jnp.sum(w1 * w2, axis=0)                         # (te, H)
    f_o[...] = f + _silu(_mm(f, wf_ref[...]) + bf_ref[...]) * w_dot


def node_update_kernel(xagg_ref, vecagg_ref, vdot_ref, vec3_ref, x_ref, vec_ref,
                       wo_ref, bo_ref, x_o, vec_o):
    """o_proj on aggregated messages + fused residual update of x and vec."""
    h = xagg_ref.shape[-1]
    o = _mm(xagg_ref[...], wo_ref[...]) + bo_ref[...]        # one (H,3H) matmul
    o1, o2, o3 = o[:, :h], o[:, h:2 * h], o[:, 2 * h:]
    x_o[...] = x_ref[...] + vdot_ref[...] * o2 + o3
    vec_o[...] = vec_ref[...] + vec3_ref[...] * o1[None] + vecagg_ref[...]


def finalize_kernel(x_ref, vec_ref, lnw_ref, lnb_ref, x_o, vec_o):
    """out_norm(x) and final vec_layernorm(vec)."""
    x_o[...] = _layernorm(x_ref[...], lnw_ref[...], lnb_ref[...])
    vec_o[...] = _vec_max_min_norm(vec_ref[...])


# ------------------------------ pallas_call glue ------------------------------

def _tile(n, target):
    """Largest row tile <= target that divides n.

    Prefers multiples of 16 (bf16 sublane packing), falls back to multiples of
    8, and caps at n//2 when possible so every grid has >=2 steps (keeps both
    v7x TensorCores busy via the "parallel" dimension semantics).
    """
    cap = min(target, n)
    if n >= 16:
        cap = min(cap, max(n // 2, 8))
    for step in (16, 8):
        t = (cap // step) * step
        while t >= step:
            if n % t == 0:
                return t
            t -= step
    return n


def _const_spec(shape):
    n = len(shape)
    return pl.BlockSpec(shape, lambda i: (0,) * n)


def _row_spec(tile, *tail):
    return pl.BlockSpec((tile,) + tuple(tail), lambda i: (i,) + (0,) * len(tail))


def _vec_spec(tile, *tail):
    return pl.BlockSpec((3, tile) + tuple(tail),
                        lambda i: (0, i) + (0,) * len(tail))


def _tiled_call(kernel, grid, in_specs, out_specs, out_shapes, inputs,
                aliases=None, cost=None):
    single = not isinstance(out_shapes, (list, tuple))
    shapes = (out_shapes,) if single else tuple(out_shapes)
    specs = (out_specs,) if single else tuple(out_specs)
    fn = pl.pallas_call(
        kernel,
        grid=grid,
        in_specs=list(in_specs),
        out_specs=specs,
        out_shape=shapes,
        input_output_aliases=dict(aliases or {}),
        cost_estimate=cost,
        compiler_params=pltpu.CompilerParams(
            dimension_semantics=("parallel",) * len(grid),
            vmem_limit_bytes=VMEM_LIMIT_BYTES),
    )
    outs = fn(*inputs)
    return outs[0] if single else outs


def _edge_cost(E, H, heads, fused):
    """Rough CostEstimate for the edge-grid pallas_calls."""
    flops = 2 * E * H * (2 * H)          # dk|dv proj
    flops += 2 * E * H * heads           # per-head sum
    flops += 2 * E * heads * H           # per-head broadcast back
    flops += 2 * E * H * (2 * H)         # s1|s2 proj
    trans = E * (4 * H + heads)          # silu sigmoids
    bytes_acc = E * (H + 2 * H + 3 * H + H + 1 + 3) * 4      # inputs
    bytes_acc += E * (H + 3 * H) * 4                          # outputs
    if fused:
        flops += 2 * (3 * E) * H * H * 2 + 2 * E * H * H      # trg/src/f projections
        trans += E * H
        bytes_acc += E * (3 * H + H) * 4                       # vec_i in, edge_attr out
    return pl.CostEstimate(flops=flops, transcendentals=trans,
                           bytes_accessed=bytes_acc)


# ------------------------------ parameter setup -------------------------------

def _xavier(key, fan_in, fan_out):
    limit = (6.0 / (fan_in + fan_out)) ** 0.5
    return jax.random.uniform(key, (fan_in, fan_out), jnp.float32, -limit, limit)


def init_attn_layer(key, H, last_layer):
    ks = iter(jax.random.split(key, 16))
    f32, bf16 = jnp.float32, jnp.bfloat16
    p = {"ln_w": jnp.ones((1, H), f32), "ln_b": jnp.zeros((1, H), f32)}
    # q/k/v and dk/dv are separate Linear(H,H) in the reference -> init each with
    # its own xavier fan, then concatenate so the kernel does one wide matmul.
    p["w_qkv"] = jnp.concatenate([_xavier(next(ks), H, H) for _ in range(3)],
                                 axis=1).astype(bf16)
    p["b_qkv"] = jnp.zeros((1, 3 * H), f32)
    p["w_dkdv"] = jnp.concatenate([_xavier(next(ks), H, H) for _ in range(2)],
                                  axis=1).astype(bf16)
    p["b_dkdv"] = jnp.zeros((1, 2 * H), f32)
    p["w_vec"] = _xavier(next(ks), H, 3 * H).astype(bf16)   # vec_proj (no bias)
    p["w_o"] = _xavier(next(ks), H, 3 * H).astype(bf16)     # o_proj
    p["b_o"] = jnp.zeros((1, 3 * H), f32)
    p["w_s"] = _xavier(next(ks), H, 2 * H).astype(bf16)     # s_proj
    p["b_s"] = jnp.zeros((1, 2 * H), f32)
    if not last_layer:
        p["w_f"] = _xavier(next(ks), H, H).astype(bf16)
        p["b_f"] = jnp.zeros((1, H), f32)
        p["w_src"] = _xavier(next(ks), H, H).astype(bf16)
        p["w_trg"] = _xavier(next(ks), H, H).astype(bf16)
    return p


# ------------------------------- layer forward --------------------------------

def attention_layer(p, x, vec, src, dst, edge_attr, cut_col, d3, M, Mt,
                    last_layer, node_tile, edge_tile):
    N, H = x.shape
    E = src.shape[0]
    heads = M.shape[1]
    f32 = jnp.float32
    tn = _tile(N, node_tile)
    te = _tile(E, edge_tile)

    q, kv, vecln, vec3, vdot = _tiled_call(
        node_pre_kernel, (pl.cdiv(N, tn),),
        [_row_spec(tn, H), _vec_spec(tn, H),
         _const_spec((1, H)), _const_spec((1, H)),
         _const_spec((H, 3 * H)), _const_spec((1, 3 * H)), _const_spec((H, 3 * H))],
        [_row_spec(tn, H), _row_spec(tn, 2 * H), _vec_spec(tn, H),
         _vec_spec(tn, H), _row_spec(tn, H)],
        [jax.ShapeDtypeStruct((N, H), f32), jax.ShapeDtypeStruct((N, 2 * H), f32),
         jax.ShapeDtypeStruct((3, N, H), f32), jax.ShapeDtypeStruct((3, N, H), f32),
         jax.ShapeDtypeStruct((N, H), f32)],
        (x, vec, p["ln_w"], p["ln_b"], p["w_qkv"], p["b_qkv"], p["w_vec"]))

    # TODO(synk): fold these gathers and the segment_sum below into the edge
    # kernel via PrefetchScalarGridSpec over a dst-sorted edge list (per-dst
    # offsets in SMEM, VMEM accumulator flushed per dst tile); kept as XLA glue
    # because it needs data-dependent indexing.
    q_i = q[dst]
    kv_j = kv[src]
    vec_j = vecln[:, src, :]

    if last_layer:
        x_msg, vec_msg = _tiled_call(
            edge_msg_kernel, (pl.cdiv(E, te),),
            [_row_spec(te, H), _row_spec(te, 2 * H), _vec_spec(te, H),
             _row_spec(te, H), _row_spec(te, 1), _vec_spec(te, 1),
             _const_spec((H, heads)), _const_spec((heads, H)),
             _const_spec((H, 2 * H)), _const_spec((1, 2 * H)),
             _const_spec((H, 2 * H)), _const_spec((1, 2 * H))],
            [_row_spec(te, H), _vec_spec(te, H)],
            [jax.ShapeDtypeStruct((E, H), f32),
             jax.ShapeDtypeStruct((3, E, H), f32)],
            (q_i, kv_j, vec_j, edge_attr, cut_col, d3, M, Mt,
             p["w_dkdv"], p["b_dkdv"], p["w_s"], p["b_s"]),
            cost=_edge_cost(E, H, heads, fused=False))
        edge_new = edge_attr
    else:
        vec_i = vecln[:, dst, :]
        x_msg, vec_msg, edge_new = _tiled_call(
            edge_fused_kernel, (pl.cdiv(E, te),),
            [_row_spec(te, H), _row_spec(te, 2 * H), _vec_spec(te, H),
             _vec_spec(te, H), _row_spec(te, H), _row_spec(te, 1), _vec_spec(te, 1),
             _const_spec((H, heads)), _const_spec((heads, H)),
             _const_spec((H, 2 * H)), _const_spec((1, 2 * H)),
             _const_spec((H, 2 * H)), _const_spec((1, 2 * H)),
             _const_spec((H, H)), _const_spec((H, H)),
             _const_spec((H, H)), _const_spec((1, H))],
            [_row_spec(te, H), _vec_spec(te, H), _row_spec(te, H)],
            [jax.ShapeDtypeStruct((E, H), f32),
             jax.ShapeDtypeStruct((3, E, H), f32),
             jax.ShapeDtypeStruct((E, H), f32)],
            (q_i, kv_j, vec_j, vec_i, edge_attr, cut_col, d3, M, Mt,
             p["w_dkdv"], p["b_dkdv"], p["w_s"], p["b_s"],
             p["w_trg"], p["w_src"], p["w_f"], p["b_f"]),
            aliases={4: 2},
            cost=_edge_cost(E, H, heads, fused=True))

    # scatter-add aggregation to target nodes (XLA glue, kept in f32)
    x_agg = jax.ops.segment_sum(x_msg, dst, num_segments=N)
    vec_agg = jax.vmap(lambda m: jax.ops.segment_sum(m, dst, num_segments=N))(vec_msg)

    # o_proj + fused residual; x/vec aliased into the outputs.
    x_new, vec_new = _tiled_call(
        node_update_kernel, (pl.cdiv(N, tn),),
        [_row_spec(tn, H), _vec_spec(tn, H), _row_spec(tn, H), _vec_spec(tn, H),
         _row_spec(tn, H), _vec_spec(tn, H),
         _const_spec((H, 3 * H)), _const_spec((1, 3 * H))],
        [_row_spec(tn, H), _vec_spec(tn, H)],
        [jax.ShapeDtypeStruct((N, H), f32), jax.ShapeDtypeStruct((3, N, H), f32)],
        (x_agg, vec_agg, vdot, vec3, x, vec, p["w_o"], p["b_o"]),
        aliases={4: 0, 5: 1})

    return x_new, vec_new, edge_new


@functools.partial(jax.jit, static_argnames=("node_tile", "edge_tile"))
def model_forward(layer_params, out_ln_w, out_ln_b, x, vec, edge_attr,
                  src, dst, cut_col, d3, M, Mt, *, node_tile, edge_tile):
    n_layers = len(layer_params)
    for li, p in enumerate(layer_params):
        last = li == n_layers - 1
        x, vec, edge_attr = attention_layer(
            p, x, vec, src, dst, edge_attr, cut_col, d3, M, Mt,
            last, node_tile, edge_tile)

    N, H = x.shape
    tn = _tile(N, node_tile)
    f32 = jnp.float32
    x_out, vec_out = _tiled_call(
        finalize_kernel, (pl.cdiv(N, tn),),
        [_row_spec(tn, H), _vec_spec(tn, H), _const_spec((1, H)),
         _const_spec((1, H))],
        [_row_spec(tn, H), _vec_spec(tn, H)],
        [jax.ShapeDtypeStruct((N, H), f32), jax.ShapeDtypeStruct((3, N, H), f32)],
        (x, vec, out_ln_w, out_ln_b),
        aliases={0: 0, 1: 1})
    return x_out, vec_out, edge_attr


# ----------------------------------- main --------------------------------------

if __name__ == "__main__":
    key = jax.random.PRNGKey(0)
    # hidden=128 / heads=8 match the module defaults and keep all tiles lane-dense.
    N, H, heads, R, L = 16, 128, 8, 16, 2
    head_dim = H // heads
    max_z = 100
    cutoff_upper, cutoff_lower = 5.0, 0.0
    f32, bf16 = jnp.float32, jnp.bfloat16

    keys = jax.random.split(key, 5 + L)
    emb_table = jax.random.normal(keys[0], (max_z, H), f32)
    z = jax.random.randint(keys[1], (N,), 1, max_z)
    # positions inside a small box => every pair is within the 5.0 cutoff, so
    # radius_graph(loop=True) == complete graph with self-loops (static shapes).
    pos = jax.random.uniform(keys[2], (N, 3), f32, 0.0, 1.5)

    idx = jnp.arange(N)
    src = jnp.repeat(idx, N)      # edge_index[0] (j, source)
    dst = jnp.tile(idx, N)        # edge_index[1] (i, target)
    E = N * N

    edge_vec = pos[src] - pos[dst]
    edge_weight = jnp.linalg.norm(edge_vec, axis=-1)
    is_self = src == dst
    edge_weight = jnp.where(is_self, 0.0, edge_weight)
    edge_dir = jnp.where(is_self[:, None], edge_vec,
                         edge_vec / jnp.maximum(edge_weight, 1e-12)[:, None])
    r_col = edge_weight[:, None].astype(f32)       # (E, 1)
    d3 = jnp.transpose(edge_dir)[:, :, None]       # (3, E, 1)

    # ExpNormalSmearing parameters
    start = float(jnp.exp(jnp.float32(cutoff_lower - cutoff_upper)))
    means = jnp.linspace(start, 1.0, R, dtype=f32)[None, :]
    betas = jnp.full((1, R), ((2.0 / R) * (1.0 - start)) ** -2, f32)
    alpha = 5.0 / (cutoff_upper - cutoff_lower)
    w_rbf = _xavier(keys[3], R, H).astype(bf16)
    b_rbf = jnp.zeros((1, H), f32)

    te0 = _tile(E, EDGE_TILE_TARGET)
    edge_attr, cut_col = _tiled_call(
        functools.partial(rbf_edge_kernel, cutoff_upper, alpha),
        (pl.cdiv(E, te0),),
        [_row_spec(te0, 1), _const_spec((1, R)), _const_spec((1, R)),
         _const_spec((R, H)), _const_spec((1, H))],
        [_row_spec(te0, H), _row_spec(te0, 1)],
        [jax.ShapeDtypeStruct((E, H), f32), jax.ShapeDtypeStruct((E, 1), f32)],
        (r_col, means, betas, w_rbf, b_rbf))

    # per-head segment-sum / broadcast indicator matrix (MXU-friendly head reduce)
    M = (jnp.arange(H)[:, None] // head_dim
         == jnp.arange(heads)[None, :]).astype(bf16)
    Mt = M.T

    x = emb_table[z]
    vec = jnp.zeros((3, N, H), f32)

    layer_params = [init_attn_layer(keys[4 + li], H, last_layer=(li == L - 1))
                    for li in range(L)]
    out_ln_w = jnp.ones((1, H), f32)
    out_ln_b = jnp.zeros((1, H), f32)

    x_out, vec_out, edge_out = model_forward(
        layer_params, out_ln_w, out_ln_b, x, vec, edge_attr, src, dst, cut_col,
        d3, M, Mt, node_tile=NODE_TILE_TARGET, edge_tile=EDGE_TILE_TARGET)

    # TODO(synk): e3nn output head (o3.spherical_harmonics l<=3,
    # FullyConnectedTensorProduct with per-edge weights, equivariant layer norm)
    # needs Clebsch-Gordan tables and has no clean Pallas equivalent here;
    # outputs stop at node_attr / normalized vec.
    batch = jnp.zeros((N,), jnp.int32)
    natoms = jax.ops.segment_sum(jnp.ones_like(batch), batch, num_segments=1)

    jax.block_until_ready((x_out, vec_out, edge_out, natoms))
    print("KERNEL_OK")
</pallas_src>

<mosaic_0001>
module attributes {stable_mosaic.version = 11 : i64} {
  func.func @rbf_edge_kernel(%arg0: i32, %arg1: memref<128x1xf32, #tpu.memory_space<vmem>>, %arg2: memref<1x16xf32, #tpu.memory_space<vmem>>, %arg3: memref<1x16xf32, #tpu.memory_space<vmem>>, %arg4: memref<16x128xbf16, #tpu.memory_space<vmem>>, %arg5: memref<1x128xf32, #tpu.memory_space<vmem>>, %arg6: memref<128x128xf32, #tpu.memory_space<vmem>>, %arg7: memref<128x1xf32, #tpu.memory_space<vmem>>) attributes {dimension_semantics = [#tpu.dimension_semantics<parallel>], iteration_bounds = array<i64: 2>, scalar_prefetch = 0 : i64, scratch_operands = 0 : i64, tpu.core_type = #tpu.core_type<tc>, window_params = [{transform_indices = @transform_0, window_bounds = array<i64: 128, 1>}, {pipeline_mode = #tpu.pipeline_mode<synchronous>, transform_indices = @transform_1, window_bounds = array<i64: 1, 16>}, {pipeline_mode = #tpu.pipeline_mode<synchronous>, transform_indices = @transform_2, window_bounds = array<i64: 1, 16>}, {pipeline_mode = #tpu.pipeline_mode<synchronous>, transform_indices = @transform_3, window_bounds = array<i64: 16, 128>}, {pipeline_mode = #tpu.pipeline_mode<synchronous>, transform_indices = @transform_4, window_bounds = array<i64: 1, 128>}, {transform_indices = @transform_5, window_bounds = array<i64: 128, 128>}, {transform_indices = @transform_6, window_bounds = array<i64: 128, 1>}]} {
    %c0 = arith.constant 0 : index
    %c0_0 = arith.constant 0 : index
    %0 = vector.load %arg1[%c0, %c0_0] : memref<128x1xf32, #tpu.memory_space<vmem>>, vector<128x1xf32>
    %cst = arith.constant 3.14159274 : f32
    %1 = vector.broadcast %cst : f32 to vector<128x1xf32>
    %2 = arith.mulf %1, %0 : vector<128x1xf32>
    %cst_1 = arith.constant 5.000000e+00 : f32
    %3 = vector.broadcast %cst_1 : f32 to vector<128x1xf32>
    %4 = arith.divf %2, %3 : vector<128x1xf32>
    %5 = math.cos %4 : vector<128x1xf32>
    %cst_2 = arith.constant 1.000000e+00 : f32
    %6 = vector.broadcast %cst_2 : f32 to vector<128x1xf32>
    %7 = arith.addf %5, %6 : vector<128x1xf32>
    %cst_3 = arith.constant 5.000000e-01 : f32
    %8 = vector.broadcast %cst_3 : f32 to vector<128x1xf32>
    %9 = arith.mulf %8, %7 : vector<128x1xf32>
    %cst_4 = arith.constant 5.000000e+00 : f32
    %10 = vector.broadcast %cst_4 : f32 to vector<128x1xf32>
    %11 = arith.cmpf olt, %0, %10 : vector<128x1xf32>
    %cst_5 = arith.constant 0.000000e+00 : f32
    %12 = vector.broadcast %cst_5 : f32 to vector<128x1xf32>
    %13 = arith.select %11, %9, %12 : vector<128x1xi1>, vector<128x1xf32>
    %c0_6 = arith.constant 0 : index
    %c0_7 = arith.constant 0 : index
    %14 = vector.load %arg3[%c0_6, %c0_7] : memref<1x16xf32, #tpu.memory_space<vmem>>, vector<1x16xf32>
    %cst_8 = arith.constant 0.000000e+00 : f32
    %15 = vector.broadcast %cst_8 : f32 to vector<1x16xf32>
    %16 = arith.subf %15, %14 : vector<1x16xf32>
    %cst_9 = arith.constant 0.000000e+00 : f32
    %17 = vector.broadcast %cst_9 : f32 to vector<128x1xf32>
    %18 = arith.subf %17, %0 : vector<128x1xf32>
    %cst_10 = arith.constant 1.000000e+00 : f32
    %19 = vector.broadcast %cst_10 : f32 to vector<128x1xf32>
    %20 = arith.mulf %19, %18 : vector<128x1xf32>
    %21 = math.exp %20 : vector<128x1xf32>
    %c0_11 = arith.constant 0 : index
    %c0_12 = arith.constant 0 : index
    %22 = vector.load %arg2[%c0_11, %c0_12] : memref<1x16xf32, #tpu.memory_space<vmem>>, vector<1x16xf32>
    %23 = vector.broadcast %21 : vector<128x1xf32> to vector<128x16xf32>
    %24 = vector.broadcast %22 : vector<1x16xf32> to vector<128x16xf32>
    %25 = arith.subf %23, %24 : vector<128x16xf32>
    %26 = arith.mulf %25, %25 : vector<128x16xf32>
    %27 = vector.broadcast %16 : vector<1x16xf32> to vector<128x16xf32>
    %28 = arith.mulf %27, %26 : vector<128x16xf32>
    %29 = math.exp %28 : vector<128x16xf32>
    %30 = vector.broadcast %13 : vector<128x1xf32> to vector<128x16xf32>
    %31 = arith.mulf %30, %29 : vector<128x16xf32>
    %c0_13 = arith.constant 0 : index
    %c0_14 = arith.constant 0 : index
    %32 = vector.load %arg4[%c0_13, %c0_14] : memref<16x128xbf16, #tpu.memory_space<vmem>>, vector<16x128xbf16>
    %33 = arith.truncf %31 : vector<128x16xf32> to vector<128x16xbf16>
    %cst_15 = arith.constant dense<0.000000e+00> : vector<128x128xf32>
    %34 = tpu.matmul %33, %32, %cst_15 {dimension_numbers = #tpu.dot_dimension_numbers<[1], [0], [0], [1], [0, 0, 1, 1], [], []>} : vector<128x16xbf16>, vector<16x128xbf16>, vector<128x128xf32> -> vector<128x128xf32>
    %c0_16 = arith.constant 0 : index
    %c0_17 = arith.constant 0 : index
    %35 = vector.load %arg5[%c0_16, %c0_17] : memref<1x128xf32, #tpu.memory_space<vmem>>, vector<1x128xf32>
    %36 = vector.broadcast %35 : vector<1x128xf32> to vector<128x128xf32>
    %37 = arith.addf %34, %36 : vector<128x128xf32>
    %c0_18 = arith.constant 0 : index
    %c0_19 = arith.constant 0 : index
    %38 = vector.load %arg6[%c0_18, %c0_19] : memref<128x128xf32, #tpu.memory_space<vmem>>, vector<128x128xf32>
    tpu.vector_store %arg6[%c0_18, %c0_19], %37 {strides = array<i32>} : memref<128x128xf32, #tpu.memory_space<vmem>>, vector<128x128xf32>,
    %c0_20 = arith.constant 0 : index
    %c0_21 = arith.constant 0 : index
    %39 = vector.load %arg7[%c0_20, %c0_21] : memref<128x1xf32, #tpu.memory_space<vmem>>, vector<128x1xf32>
    tpu.vector_store %arg7[%c0_20, %c0_21], %13 {strides = array<i32>} : memref<128x1xf32, #tpu.memory_space<vmem>>, vector<128x1xf32>,
    return
  }
  func.func @transform_0(%arg0: i32) -> (i32, i32) {
    %c0_i32 = arith.constant 0 : i32
    %c0_i32_0 = arith.constant 0 : i32
    return %arg0, %c0_i32 : i32, i32
  }
  func.func @transform_1(%arg0: i32) -> (i32, i32) {
    %c0_i32 = arith.constant 0 : i32
    %c0_i32_0 = arith.constant 0 : i32
    %c0_i32_1 = arith.constant 0 : i32
    return %c0_i32, %c0_i32_0 : i32, i32
  }
  func.func @transform_2(%arg0: i32) -> (i32, i32) {
    %c0_i32 = arith.constant 0 : i32
    %c0_i32_0 = arith.constant 0 : i32
    %c0_i32_1 = arith.constant 0 : i32
    return %c0_i32, %c0_i32_0 : i32, i32
  }
  func.func @transform_3(%arg0: i32) -> (i32, i32) {
    %c0_i32 = arith.constant 0 : i32
    %c0_i32_0 = arith.constant 0 : i32
    %c0_i32_1 = arith.constant 0 : i32
    return %c0_i32, %c0_i32_0 : i32, i32
  }
  func.func @transform_4(%arg0: i32) -> (i32, i32) {
    %c0_i32 = arith.constant 0 : i32
    %c0_i32_0 = arith.constant 0 : i32
    %c0_i32_1 = arith.constant 0 : i32
    return %c0_i32, %c0_i32_0 : i32, i32
  }
  func.func @transform_5(%arg0: i32) -> (i32, i32) {
    %c0_i32 = arith.constant 0 : i32
    %c0_i32_0 = arith.constant 0 : i32
    return %arg0, %c0_i32 : i32, i32
  }
  func.func @transform_6(%arg0: i32) -> (i32, i32) {
    %c0_i32 = arith.constant 0 : i32
    %c0_i32_0 = arith.constant 0 : i32
    return %arg0, %c0_i32 : i32, i32
  }
}

</mosaic_0001>

<bundles_post_ra>
// kernel: tpu_custom_call.1
= control target key start
LH: loop header
LB: loop body
LE: loop exit
PB: predicated region body
PF: predicated region fallthrough
CT: control target
= control target key end

     0   :  { %12 = vsyncpa [#allocation3], 0  ;;  %s4912_s0 = inlined_call_operand.vmem [shape: f32[256,1], index: 0, kind: input, shape index: {}]   ;;  %s4913_s1 = inlined_call_operand.vmem [shape: f32[1,16], index: 1, kind: input, shape index: {}]   ;;  %s4914_s2 = inlined_call_operand.vmem [shape: f32[1,16], index: 2, kind: input, shape index: {}]   ;;  %s4915_s3 = inlined_call_operand.vmem [shape: bf16[16,128], index: 3, kind: input, shape index: {}]   ;;  %s4916_s4 = inlined_call_operand.vmem [shape: f32[1,128], index: 4, kind: input, shape index: {}]   ;;  %s4917_s5 = inlined_call_operand.hbm [shape: f32[256,128], index: 5, kind: output, shape index: {0}]   ;;  %s4918_s6 = inlined_call_operand.vmem [shape: f32[256,1], index: 6, kind: output, shape index: {1}]  }
   0x1   :  { %14 = vsyncpa [#allocation3 + $0x1], 0  ;;  %s3121_s21 = smov 0   ;;  %s3123_s22 = smov 0  }
   0x2   :  { %s3125_s23 = smov 0   ;;  %s3127_s24 = smov 0  }
   0x3 LB: > { %s3142_s25 = sadd.s32 4294967295, %s3074_s24   ;;  %s2636_s26 = sadd.s32 4294967294, %s3074_s24   ;;  %s3074_s24 = sphi %s3127_s24, %s4954_s24   ;;  %s3070_s23 = sphi %s3125_s23, %s4953_s23   ;;  %s3066_s22 = sphi %s3123_s22, %s4952_s22   ;;  %s3062_s21 = sphi %s3121_s21, %s4951_s21  }
   0x4   : > { %s3146_s27 = sadd.s32 1, %s3074_s24   ;;  %s137_s28 = sadd.s32 1, %s3070_s23 }
   0x5   : > { %s134_s29 = ssub.s32 %s3074_s24, %s3146_s27  ;;  %p147_p0 = scmp.ne.s32.totalorder %s3070_s23, %s3066_s22 }
   0x6   : > { %p135_p1 = scmp.eq.s32.totalorder %s134_s29, 0  ;;  %p148_p2 = scmp.eq.s32.totalorder %s3142_s25, 1 }
   0x7   : > { %p153_p3 = scmp.ne.s32.totalorder %s3066_s22, %s3062_s21  ;;  %p154_p4 = scmp.eq.s32.totalorder %s2636_s26, 1 }
   0x8   : > { %s3157_s30 = scalar_select %p135_p1, %s3070_s23, %s137_s28  }
   0x9   : > { %p3159_p5 = por %p148_p2, %p147_p0  ;;  %p3163_p6 = por %p154_p4, %p153_p3 }
   0xa   : > { %p2639_p7 = scmp.ge.s32.totalorder %s3074_s24, 1  ;;  %p219_p8 = scmp.lt.s32.totalorder %s3074_s24, 3 }
   0xc   : > { %p220_p9 = pnand %p2639_p7, %p219_p8 }
   0xd   : > { %s2641_s9 = sshll.u32 (!%p220_p9), %s3142_s25, 4  ;;  %v3076_v0 = vmov (!%p220_p9), 0   ;;  %s244_s29 = sand.u32 (!%p220_p9), 1, %s3066_s22  }
   0xe   : > { %223 = sbr.rel (%p220_p9) target bundleno = 860 (0x35c), region = 40  ;;  %2868 = vset.pattern.permute.xlu1 (!%p220_p9), %v3076_v0  ;;  %2867 = vset.pattern.permute.xlu0 (!%p220_p9), %v3076_v0  ;;  %p255_p10 = scmp.lt.s32.totalorder (!%p220_p9), %s2641_s9, 31 }
   0xf   : > { %s3083_s19 = smov (!%p220_p9), [#allocation2]  }
  0x10   : > { %s3016_s20 = sshll.u32 (!%p220_p9), %s3083_s19, 4  ;;  %s3017_s20 = int_to_ptr.vmem [resolvable:$false] %s3016_s20 }
  0x11   : > { %s3018_s26 = scalar_lea.vmem (!%p220_p9), %s3017_s20, 4096 }
  0x15   : > { %s4956_s9 = smov (!%p255_p10, %s2641_s9), 31 }
  0x16   : > { %s2642_s10 = sshll.u32 %s4956_s9, 3  ;;  %s2640_s9 = sshll.u32 %s244_s29, 7 }
  0x17   : > { %s3178_s13 = scalar_lea.vmem %s4912_s0, %s2642_s10  ;;  %s3594_s16 = scalar_lea.vmem %s4918_s6, %s2642_s10 }
  0x18   : > { %v276_v1 = vld [vmem:[%s3178_s13 + $0x40] sm:$0xff]  ;;  %v3185_v3 = vld [vmem:[%s3178_s13 + $0x48] sm:$0xff]  ;;  %v3194_v10 = vld [vmem:[%s3178_s13 + $0x18] sm:$0xff]  ;;  %s4842_s12 = scalar_lea.vmem [#allocation2], %s2640_s9 }
  0x19   : > { %v3182_v2 = vld [vmem:[%s3178_s13] sm:$0xff]  ;;  %v2039_v4 = vsub.f32 0.0, %v276_v1  ;;  %v292_v5 = vmul.f32 3.1415927, %v276_v1  ;;  %v2040_v8 = vsub.f32 0.0, %v3185_v3  ;;  %v3191_v9 = vld [vmem:[%s3178_s13 + $0x8] sm:$0xff] }
  0x1a   : > { %v2031_v6 = vsub.f32 0.0, %v3182_v2  ;;  %v284_v7 = vmul.f32 3.1415927, %v3182_v2  ;;  %v3197_v11 = vld [vmem:[%s3178_s13 + $0x10] sm:$0xff]  ;;  %v2032_v17 = vsub.f32 0.0, %v3191_v9  ;;  %v2034_v18 = vsub.f32 0.0, %v3194_v10 }
  0x1b   : > { %v2063_v12 = vmul.f32 1.442695, %v2039_v4  ;;  %v3199_v13 = vmul.f32 0.2, %v292_v5  ;;  %v2065_v16 = vmul.f32 1.442695, %v2040_v8 }
  0x1c   : > { %v2047_v14 = vmul.f32 1.442695, %v2031_v6  ;;  %v3201_v15 = vmul.f32 0.2, %v284_v7  ;;  %v2033_v19 = vsub.f32 0.0, %v3197_v11  ;;  %v3208_v22 = vld [vmem:[%s3178_s13 + $0x58] sm:$0xff] }
  0x1d   : > { %2870 = vpow2.f32 %v2063_v12  ;;  %v2049_v21 = vmul.f32 1.442695, %v2032_v17  ;;  %v1144_v23 = vand.u32 2139095040, %v3199_v13  ;;  %v2053_v24 = vmul.f32 1.442695, %v2034_v18  ;;  %v278_v26 = vld [vmem:[%s3178_s13 + $0x50] sm:$0xff] }
  0x1e   : > { %2872 = vpow2.f32 %v2047_v14  ;;  %v320_v20 = vand.u32 2139095040, %v3201_v15  ;;  %v2042_v25 = vsub.f32 0.0, %v3208_v22  ;;  %v2051_v28 = vmul.f32 1.442695, %v2033_v19  ;;  %v273_v30 = vld [vmem:[%s3178_s13 + $0x28] sm:$0xff]  ;;  %v272_v32 = vld [vmem:[%s3178_s13 + $0x20] sm:$0xff] }
  0x1f   : > { %2874 = vpow2.f32 %v2065_v16  ;;  %v2041_v29 = vsub.f32 0.0, %v278_v26  ;;  %v2036_v31 = vsub.f32 0.0, %v273_v30  ;;  %v2035_v34 = vsub.f32 0.0, %v272_v32  ;;  %v281_v35 = vld [vmem:[%s3178_s13 + $0x68] sm:$0xff]  ;;  %v280_v39 = vld [vmem:[%s3178_s13 + $0x60] sm:$0xff]  ;;  %v275_v43 = vld [vmem:[%s3178_s13 + $0x38] sm:$0xff] }
  0x20   : > { %v321_v27 = vshrl.u32 %v320_v20, 23  ;;  %2876 = vpow2.f32 %v2049_v21  ;;  %v1145_v36 = vshrl.u32 %v1144_v23, 23  ;;  %v2069_v37 = vmul.f32 1.442695, %v2042_v25  ;;  %v274_v46 = vld [vmem:[%s3178_s13 + $0x30] sm:$0xff]  ;;  %v283_v56 = vld [vmem:[%s3178_s13 + $0x78] sm:$0xff] }
  0x21   : > { %2878 = vpow2.f32 %v2053_v24  ;;  %v2044_v38 = vsub.f32 0.0, %v281_v35  ;;  %v2067_v41 = vmul.f32 1.442695, %v2041_v29  ;;  %v2043_v42 = vsub.f32 0.0, %v280_v39  ;;  %v282_v60 = vld [vmem:[%s3178_s13 + $0x70] sm:$0xff]  ;;  %s2545_s14 = sshll.u32 %s4842_s12, 4  ;;  %s4864_s14 = int_to_ptr.vmem [resolvable:$true] %s2545_s14 }
  0x22   : > { %v2645_v33 = vadd.s32 4294967169, %v321_v27  ;;  %2880 = vpow2.f32 %v2051_v28  ;;  %v2057_v44 = vmul.f32 1.442695, %v2036_v31  ;;  %v2038_v45 = vsub.f32 0.0, %v275_v43  ;;  %s3012_s18 = scalar_lea.vmem %s4864_s14, 2048  ;;  %p3019_p0 = scmp.lt.s32.totalorder %s4864_s14, %s3017_s20 }
  0x23   : > { %v2055_v47 = vmul.f32 1.442695, %v2035_v34  ;;  %v2037_v48 = vsub.f32 0.0, %v274_v46  ;;  %2882 = vpow2.f32 %v2069_v37  ;;  %v2073_v51 = vmul.f32 1.442695, %v2044_v38  ;;  %p3013_p11 = scmp.ne.s32.totalorder %s4864_s14, %s3012_s18  ;;  %p3020_p1 = scmp.lt.s32.totalorder %s3018_s26, %s3012_s18 }
  0x24   : > { %v327_v40 = vadd.s32 1, %v2645_v33  ;;  %v2677_v53 = vadd.s32 4294967169, %v1145_v36  ;;  %2884 = vpow2.f32 %v2067_v41  ;;  %v2071_v55 = vmul.f32 1.442695, %v2043_v42 }
  0x25   : > { %2886 = vpow2.f32 %v2057_v44  ;;  %v2061_v58 = vmul.f32 1.442695, %v2038_v45  ;;  %v2046_v59 = vsub.f32 0.0, %v283_v56  ;;  %v285_v61 = vmul.f32 3.1415927, %v3191_v9  ;;  %p3014_p12 = pnand %p3013_p11, %p3159_p5  ;;  %p3021_p2 = por %p3020_p1, %p3019_p0 }
  0x26   : > { %vm328_vm0 = vcmp.gt.s32.totalorder %v327_v40, 0  ;;  %2888 = vpow2.f32 %v2055_v47  ;;  %v2059_v63 = vmul.f32 1.442695, %v2037_v48  ;;  %v2045_v0 = vsub.f32 0.0, %v282_v60 }
  0x27   : > { %v2871_v49 = vpop.eup %2870  ;;  %v329_v50 = vsel %vm328_vm0, %v327_v40, 0  ;;  %2890 = vpow2.f32 %v2073_v51  ;;  %v3222_v4 = vmul.f32 0.2, %v285_v61  ;;  %v317_v5 = vand.u32 2147483647, %v3201_v15  ;;  %p3015_p13 = pneg %p3014_p12 }
  0x28   : > { %v2873_v52 = vpop.eup %2872  ;;  %2122 = vperm.xlu1 %2868, %v2871_v49   ;;  %v331_v54 = vand.u32 31, %v329_v50  ;;  %v3225_v6 = vadd.s32 1, %v2677_v53  ;;  %v3227_v7 = vshrl.u32 %v329_v50, 5  ;;  %2892 = vpow2.f32 %v2071_v55 }
  0x29   : > { %v2875_v57 = vpop.eup %2874  ;;  %2082 = vperm.xlu0 %2867, %v2873_v52   ;;  %2894 = vpow2.f32 %v2061_v58  ;;  %v2077_v12 = vmul.f32 1.442695, %v2046_v59  ;;  %v420_v14 = vand.u32 2147483647, %v3222_v4  ;;  %v423_v16 = vand.u32 2139095040, %v3222_v4  ;;  %p3022_p3 = pnand %p3021_p2, %p3015_p13 }
  0x2a   : > { %v2877_v62 = vpop.eup %2876  ;;  %v332_v1 = vsub.s32 32, %v331_v54  ;;  %2896 = vpow2.f32 %v2059_v63  ;;  %v2075_v18 = vmul.f32 1.442695, %v2045_v0  ;;  %v3077_v19 = vmov 683565275  }
  0x2b   : > { %v2879_v8 = vpop.eup %2878  ;;  %v334_v20 = vshll.u32 %v3077_v19, %v331_v54  ;;  %v3078_v21 = vmov 2475754826   ;;  %v424_v24 = vshrl.u32 %v423_v16, 23  ;;  %v427_v25 = vand.u32 8388607, %v420_v14 }
  0x2c   : > { %2127 = vperm.xlu1 %2868, %v2875_v57   ;;  %v2881_v17 = vpop.eup %2880  ;;  %v335_v23 = vshrl.u32 %v3078_v21, %v332_v1  ;;  %v3237_v26 = vand.u32 8388607, %v317_v5  ;;  %v337_v27 = vshll.u32 %v3078_v21, %v331_v54  ;;  %v333_v28 = vshrl.u32 %v3077_v19, %v332_v1 }
  0x2d   : > { %2087 = vperm.xlu0 %2867, %v2877_v62   ;;  %v3079_v29 = vmov 2131351028   ;;  %v3080_v32 = vmov 2102212464   ;;  %v2883_v34 = vpop.eup %2882  ;;  %2898 = vpow2.f32 %v2077_v12  ;;  %v2649_v35 = vadd.s32 4294967169, %v424_v24 }
  0x2e   : > { %v338_v30 = vshrl.u32 %v3079_v29, %v332_v1  ;;  %v340_v31 = vshll.u32 %v3079_v29, %v331_v54  ;;  %v341_v33 = vshrl.u32 %v3080_v32, %v332_v1  ;;  %v343_v36 = vshll.u32 %v3080_v32, %v331_v54  ;;  %v2885_v39 = vpop.eup %2884 }
  0x2f   : > { %v3081_v37 = vmov 920167782   ;;  %v428_v40 = vor.u32 8388608, %v427_v25  ;;  %v336_v41 = vor.u32 %v335_v23, %v334_v20  ;;  %v3082_v43 = vmov 1326507024   ;;  %v2887_v45 = vpop.eup %2886 }
  0x30   : > { %2097 = vperm.xlu1 %2868, %v2879_v8   ;;  %v344_v38 = vshrl.u32 %v3081_v37, %v332_v1  ;;  %v346_v42 = vshll.u32 %v3081_v37, %v331_v54  ;;  %v347_v44 = vshrl.u32 %v3082_v43, %v332_v1  ;;  %v430_v46 = vadd.s32 1, %v2649_v35  ;;  %v2889_v50 = vpop.eup %2888 }
  0x31   : > { %2092 = vperm.xlu0 %2867, %v2881_v17   ;;  %v339_v47 = vor.u32 %v338_v30, %v337_v27  ;;  %v342_v48 = vor.u32 %v341_v33, %v340_v31  ;;  %2900 = vpow2.f32 %v2075_v18  ;;  %v325_v51 = vor.u32 8388608, %v3237_v26  ;;  %v2891_v52 = vpop.eup %2890 }
  0x32   : > { %v345_v49 = vor.u32 %v344_v38, %v343_v36  ;;  %vm349_vm1 = vcmp.lt.s32.totalorder %v3227_v7, 1  ;;  %vm352_vm2 = vcmp.lt.s32.totalorder %v3227_v7, 4  ;;  %vm431_vm3 = vcmp.gt.s32.totalorder %v430_v46, 0  ;;  %v2893_v55 = vpop.eup %2892 }
  0x33   : > { %vm351_vm4 = vcmp.lt.s32.totalorder %v3227_v7, 3  ;;  %v353_v53 = vsel %vm349_vm1, %v333_v28, %v336_v41  ;;  %v354_v54 = vsel %vm352_vm2, %v342_v48, 2102212464  ;;  %v432_v56 = vsel %vm431_vm3, %v430_v46, 0  ;;  %v2895_v60 = vpop.eup %2894 }
  0x34   : > { %2137 = vperm.xlu1 %2868, %v2883_v34   ;;  %v348_v57 = vor.u32 %v347_v44, %v346_v42  ;;  %v355_v58 = vsel %vm351_vm4, %v339_v47, %v354_v54  ;;  %v358_v59 = vsel %vm352_vm2, %v345_v49, 920167782  ;;  %v434_v61 = vand.u32 31, %v432_v56  ;;  %v2897_v0 = vpop.eup %2896 }
  0x35   : > { %2132 = vperm.xlu0 %2867, %v2885_v39   ;;  %v3260_v62 = vshll.u32 %v428_v40, 8  ;;  %vm350_vm5 = vcmp.lt.s32.totalorder %v3227_v7, 2  ;;  %v357_v63 = vsel %vm349_vm1, %v336_v41, %v339_v47  ;;  %v433_v1 = vshrl.u32 %v432_v56, 5 }
  0x36   : > { %v3267_v8 = vsel %vm350_vm5, %v353_v53, %v355_v58  ;;  %v359_v12 = vsel %vm351_vm4, %v342_v48, %v358_v59  ;;  %v361_v16 = vsel %vm349_vm1, %v339_v47, %v342_v48  ;;  %v435_v17 = vsub.s32 32, %v434_v61 }
  0x37   : > { %v437_v18 = vshll.u32 %v3077_v19, %v434_v61  ;;  %v440_v20 = vshll.u32 %v3078_v21, %v434_v61  ;;  %v443_v23 = vshll.u32 %v3079_v29, %v434_v61  ;;  %vm1152_vm6 = vcmp.gt.s32.totalorder %v3225_v6, 0  ;;  %v2899_v28 = vpop.eup %2898 }
  0x38   : > { %2107 = vperm.xlu1 %2868, %v2887_v45   ;;  %v446_v24 = vshll.u32 %v3080_v32, %v434_v61  ;;  %v449_v25 = vshll.u32 %v3081_v37, %v434_v61  ;;  %v362_v26 = vsel %vm352_vm2, %v348_v57, 1326507024  ;;  %v3281_v27 = vshll.u32 %v325_v51, 8 }
  0x39   : > { %2102 = vperm.xlu0 %2867, %v2889_v50   ;;  %v436_v30 = vshrl.u32 %v3077_v19, %v435_v17  ;;  %v438_v31 = vshrl.u32 %v3078_v21, %v435_v17  ;;  %v441_v33 = vshrl.u32 %v3079_v29, %v435_v17  ;;  %v444_v34 = vshrl.u32 %v3080_v32, %v435_v17 }
  0x3a   : > { %v447_v35 = vshrl.u32 %v3081_v37, %v435_v17  ;;  %v450_v36 = vshrl.u32 %v3082_v43, %v435_v17  ;;  %vm452_vm7 = vcmp.lt.s32.totalorder %v433_v1, 1  ;;  %vm453_vm8 = vcmp.lt.s32.totalorder %v433_v1, 2 }
  0x3b   : > { %v439_v38 = vor.u32 %v438_v31, %v437_v18  ;;  %v442_v39 = vor.u32 %v441_v33, %v440_v20  ;;  %v445_v40 = vor.u32 %v444_v34, %v443_v23  ;;  %vm455_vm9 = vcmp.lt.s32.totalorder %v433_v1, 4  ;;  %v2901_v41 = vpop.eup %2900 }
  0x3c   : > { %2147 = vperm.xlu1 %2868, %v2891_v52   ;;  %v448_v42 = vor.u32 %v447_v35, %v446_v24  ;;  %v451_v44 = vor.u32 %v450_v36, %v449_v25  ;;  %vm454_vm10 = vcmp.lt.s32.totalorder %v433_v1, 3  ;;  %v363_v45 = vsel %vm351_vm4, %v345_v49, %v362_v26 }
  0x3d   : > { %2142 = vperm.xlu0 %2867, %v2893_v55   ;;  %v456_v46 = vsel %vm452_vm7, %v436_v30, %v439_v38  ;;  %v457_v47 = vsel %vm455_vm9, %v445_v40, 2102212464  ;;  %v460_v48 = vsel %vm452_vm7, %v439_v38, %v442_v39  ;;  %v464_v50 = vsel %vm452_vm7, %v442_v39, %v445_v40 }
  0x3e   : > { %v458_v51 = vsel %vm454_vm10, %v442_v39, %v457_v47  ;;  %v461_v52 = vsel %vm455_vm9, %v448_v42, 920167782  ;;  %v465_v53 = vsel %vm455_vm9, %v451_v44, 1326507024  ;;  %v293_v54 = vmul.f32 3.1415927, %v3185_v3 }
  0x3f   : > { %v462_v55 = vsel %vm454_vm10, %v445_v40, %v461_v52  ;;  %v466_v56 = vsel %vm454_vm10, %v448_v42, %v465_v53  ;;  %v360_v57 = vsel %vm350_vm5, %v357_v63, %v359_v12  ;;  %v364_v58 = vsel %vm350_vm5, %v361_v16, %v363_v45 }
  0x40   : > { %2117 = vperm.xlu1 %2868, %v2895_v60   ;;  %v459_v49 = vsel %vm453_vm8, %v456_v46, %v458_v51  ;;  %v463_v59 = vsel %vm453_vm8, %v460_v48, %v462_v55  ;;  %v467_v60 = vsel %vm453_vm8, %v464_v50, %v466_v56  ;;  %v3299_v61 = vmul.f32 0.2, %v293_v54 }
  0x41   : > { %2112 = vperm.xlu0 %2867, %v2897_v0   ;;  %v3302_v17 = vmul.u32.u64.low %v3260_v62, %v467_v60  ;;  %v3303_v3 = vmul.u32.u64.high %v3260_v62, %v467_v60, %v3302_v17  ;;  %v3306_v0 = vmul.u32.u64.low %v3260_v62, %v463_v59  ;;  %v3307_v18 = vmul.u32.u64.high %v3260_v62, %v463_v59, %v3306_v0 }
  0x42   : > { %v3310_v7 = vmul.u32.u64.low %v3281_v27, %v364_v58  ;;  %v3311_v63 = vmul.u32.u64.high %v3281_v27, %v364_v58, %v3310_v7  ;;  %v3314_v12 = vmul.u32.u64.low %v3281_v27, %v360_v57  ;;  %v3315_v16 = vmul.u32.u64.high %v3281_v27, %v360_v57, %v3314_v12 }
  0x43   : > { %v1153_v1 = vsel %vm1152_vm6, %v3225_v6, 0  ;;  %v1244_v20 = vand.u32 2147483647, %v3299_v61  ;;  %v1247_v23 = vand.u32 2139095040, %v3299_v61  ;;  %v475_v24 = vmul.u32 %v3260_v62, %v459_v49 }
  0x44   : > { %2157 = vperm.xlu1 %2868, %v2899_v28   ;;  %vm477_vm11 = vc.u32 %v3303_v3, %v3306_v0  ;;  %v478_v25 = vadd.s32 1, %v3307_v18  ;;  %v372_v26 = vmul.u32 %v3281_v27, %v3267_v8  ;;  %v1141_v28 = vand.u32 2147483647, %v3199_v13 }
  0x45   : > { %2152 = vperm.xlu0 %2867, %v2901_v41   ;;  %v3328_v30 = vand.u32 31, %v1153_v1  ;;  %vm374_vm12 = vc.u32 %v3311_v63, %v3314_v12  ;;  %v375_v6 = vadd.s32 1, %v3315_v16  ;;  %v1248_v31 = vshrl.u32 %v1247_v23, 23 }
  0x46   : > { %v479_v33 = vsel %vm477_vm11, %v478_v25, %v3307_v18  ;;  %v1251_v62 = vand.u32 8388607, %v1244_v20  ;;  %v3338_v8 = vand.u32 8388607, %v1141_v28  ;;  %v3340_v27 = vshrl.u32 %v1153_v1, 5 }
  0x47   : > { %v480_v34 = vadd.s32 %v479_v33, %v475_v24  ;;  %v376_v35 = vsel %vm374_vm12, %v375_v6, %v3315_v16  ;;  %v2681_v36 = vadd.s32 4294967169, %v1248_v31  ;;  %v3343_v41 = vsub.s32 32, %v3328_v30 }
  0x48   : > { %v377_v38 = vadd.s32 %v376_v35, %v372_v26  ;;  %vm422_vm13 = vcmp.lt.s32.totalorder %v3222_v4, 0  ;;  %v1252_v44 = vor.u32 8388608, %v1251_v62  ;;  %v1158_v45 = vshll.u32 %v3077_v19, %v3328_v30 }
  0x49   : > { %v481_v39 = vadd.s32 536870912, %v480_v34  ;;  %v1254_v40 = vadd.s32 1, %v2681_v36  ;;  %vm3350_vm14 = vcmp.le.f32.partialorder %v420_v14, 0.7853982  ;;  %v3355_v47 = vadd.s32 %v3306_v0, %v3303_v3 }
  0x4a   : > { %v378_v42 = vadd.s32 536870912, %v377_v38  ;;  %vm319_vm15 = vcmp.lt.s32.totalorder %v3201_v15, 0  ;;  %v3359_v50 = vadd.s32 %v3314_v12, %v3311_v63  ;;  %v1149_v53 = vor.u32 8388608, %v3338_v8 }
  0x4b   : > { %v482_v48 = vshrl.u32 %v481_v39, 30  ;;  %vm1255_vm0 = vcmp.gt.s32.totalorder %v1254_v40, 0  ;;  %v3364_v14 = vshrl.u32 %v3077_v19, %v3343_v41  ;;  %v1159_v57 = vshrl.u32 %v3078_v21, %v3343_v41 }
  0x4c   : > { %v379_v51 = vshrl.u32 %v378_v42, 30  ;;  %v1256_v52 = vsel %vm1255_vm0, %v1254_v40, 0  ;;  %v3368_v49 = vshll.u32 %v1252_v44, 8  ;;  %v1161_v59 = vshll.u32 %v3078_v21, %v3328_v30 }
  0x4d   : > { %v483_v54 = vshll.u32 %v482_v48, 30  ;;  %v506_v55 = vsub.s32 4, %v482_v48  ;;  %v1258_v56 = vand.u32 31, %v1256_v52  ;;  %v1162_v60 = vshrl.u32 %v3079_v29, %v3343_v41 }
  0x4e   : > { %v380_v58 = vshll.u32 %v379_v51, 30  ;;  %v1164_v0 = vshll.u32 %v3079_v29, %v3328_v30  ;;  %v1165_v18 = vshrl.u32 %v3080_v32, %v3343_v41  ;;  %v403_v63 = vsub.s32 4, %v379_v51 }
  0x4f   : > { %v3374_v17 = vsub.s32 %v480_v34, %v483_v54  ;;  %v1259_v3 = vsub.s32 32, %v1258_v56  ;;  %v1167_v12 = vshll.u32 %v3080_v32, %v3328_v30  ;;  %v1168_v16 = vshrl.u32 %v3081_v37, %v3343_v41 }
  0x50   : > { %v3380_v7 = vsub.s32 %v377_v38, %v380_v58  ;;  %v3389_v23 = vsel %vm422_vm13, %v506_v55, %v482_v48  ;;  %v1261_v24 = vshll.u32 %v3077_v19, %v1258_v56  ;;  %v3392_v25 = vor.u32 %v1159_v57, %v1158_v45 }
  0x51   : > { %v486_v1 = vsub.s32 0, %v3374_v17  ;;  %v3395_v6 = vshrl.u32 %v1256_v52, 5  ;;  %v1262_v31 = vshrl.u32 %v3078_v21, %v1259_v3  ;;  %v3398_v33 = vor.u32 %v1162_v60, %v1161_v59 }
  0x52   : > { %v383_v26 = vsub.s32 0, %v3380_v7  ;;  %v1264_v34 = vshll.u32 %v3078_v21, %v1258_v56  ;;  %v1265_v35 = vshrl.u32 %v3079_v29, %v1259_v3  ;;  %v3403_v36 = vor.u32 %v1165_v18, %v1164_v0 }
  0x53   : > { %v2650_v62 = vmin.u32 %v486_v1, %v3374_v17  ;;  %v509_v38 = vsel %vm3350_vm14, 0, %v3389_v23  ;;  %v3411_v40 = vsel %vm319_vm15, %v403_v63, %v379_v51  ;;  %v3413_v42 = vor.u32 %v1168_v16, %v1167_v12 }
  0x54   : > { %v2646_v39 = vmin.u32 %v383_v26, %v3380_v7  ;;  %v1260_v45 = vshrl.u32 %v3077_v19, %v1259_v3  ;;  %v1263_v48 = vor.u32 %v1262_v31, %v1261_v24  ;;  %v1267_v52 = vshll.u32 %v3079_v29, %v1258_v56 }
  0x55   : > { %v488_v44 = vclz %v2650_v62  ;;  %v1268_v55 = vshrl.u32 %v3080_v32, %v1259_v3  ;;  %v1270_v57 = vshll.u32 %v3080_v32, %v1258_v56  ;;  %v1271_v58 = vshrl.u32 %v3081_v37, %v1259_v3 }
  0x56   : > { %v385_v54 = vclz %v2646_v39  ;;  %v1266_v60 = vor.u32 %v1265_v35, %v1264_v34  ;;  %v1273_v51 = vshll.u32 %v3081_v37, %v1258_v56  ;;  %v1274_v0 = vshrl.u32 %v3082_v43, %v1259_v3 }
  0x57   : > { %v2651_v59 = vadd.s32 4294967294, %v488_v44  ;;  %v1269_v63 = vor.u32 %v1268_v55, %v1267_v52  ;;  %v1272_v12 = vor.u32 %v1271_v58, %v1270_v57  ;;  %vm1276_vm1 = vcmp.lt.s32.totalorder %v3395_v6, 1 }
  0x58   : > { %v2647_v18 = vadd.s32 4294967294, %v385_v54  ;;  %v1275_v16 = vor.u32 %v1274_v0, %v1273_v51  ;;  %vm1277_vm3 = vcmp.lt.s32.totalorder %v3395_v6, 2  ;;  %vm1279_vm4 = vcmp.lt.s32.totalorder %v3395_v6, 4 }
  0x59   : > { %vm2652_vm2 = vcmp.lt.s32.totalorder %v2651_v59, 0  ;;  %vm1278_vm6 = vcmp.lt.s32.totalorder %v3395_v6, 3  ;;  %v1281_v56 = vsel %vm1279_vm4, %v1269_v63, 2102212464  ;;  %vm3431_vm7 = vcmp.le.f32.partialorder %v317_v5, 0.7853982 }
  0x5a   : > { %v491_v1 = vsel %vm2652_vm2, 0, %v2651_v59  ;;  %vm2648_vm5 = vcmp.lt.s32.totalorder %v2647_v18, 0  ;;  %v1280_v44 = vsel %vm1276_vm1, %v1260_v45, %v1263_v48  ;;  %v1284_v5 = vsel %vm1276_vm1, %v1263_v48, %v1266_v60 }
  0x5b   : > { %v492_v24 = vsub.s32 32, %v491_v1  ;;  %v493_v3 = vshll.u32 %v3374_v17, %v491_v1  ;;  %v496_v26 = vsub.s32 4294967266, %v491_v1  ;;  %v388_v62 = vsel %vm2648_vm5, 0, %v2647_v18 }
  0x5c   : > { %v389_v34 = vsub.s32 32, %v388_v62  ;;  %v390_v35 = vshll.u32 %v3380_v7, %v388_v62  ;;  %v393_v39 = vsub.s32 4294967266, %v388_v62  ;;  %v1282_v17 = vsel %vm1278_vm6, %v1266_v60, %v1281_v56 }
  0x5d   : > { %v494_v52 = vshrl.u32 %v3355_v47, %v492_v24  ;;  %v497_v54 = vadd.s32 127, %v496_v26  ;;  %v1285_v58 = vsel %vm1279_vm4, %v1272_v12, 920167782  ;;  %v1288_v7 = vsel %vm1276_vm1, %v1266_v60, %v1269_v63 }
  0x5e   : > { %v391_v55 = vshrl.u32 %v3359_v50, %v389_v34  ;;  %v394_v57 = vadd.s32 127, %v393_v39  ;;  %v1286_v47 = vsel %vm1278_vm6, %v1269_v63, %v1285_v58  ;;  %v1289_v51 = vsel %vm1279_vm4, %v1275_v16, 1326507024 }
  0x5f   : > { %v495_v59 = vor.u32 %v494_v52, %v493_v3  ;;  %v498_v45 = vshll.u32 %v497_v54, 23  ;;  %v1287_v50 = vsel %vm1277_vm3, %v1284_v5, %v1286_v47  ;;  %v1290_v48 = vsel %vm1278_vm6, %v1272_v12, %v1289_v51 }
  0x60   : > { %v392_v0 = vor.u32 %v391_v55, %v390_v35  ;;  %v395_v18 = vshll.u32 %v394_v57, 23  ;;  %v1283_v60 = vsel %vm1277_vm3, %v1280_v44, %v1282_v17  ;;  %v1291_v24 = vsel %vm1277_vm3, %v1288_v7, %v1290_v48 }
  0x61   : > { %v499_v1 = vor.u32 4788187, %v498_v45  ;;  %v502_v56 = vcvt.s32.f32 %v495_v59  ;;  %v3461_v16 = vmul.u32.u64.low %v3368_v49, %v1291_v24  ;;  %v3462_v26 = vmul.u32.u64.high %v3368_v49, %v1291_v24, %v3461_v16 }
  0x62   : > { %v396_v63 = vor.u32 4788187, %v395_v18  ;;  %v399_v3 = vcvt.s32.f32 %v392_v0  ;;  %v3465_v34 = vmul.u32.u64.low %v3368_v49, %v1287_v50  ;;  %v3466_v35 = vmul.u32.u64.high %v3368_v49, %v1287_v50, %v3465_v34 }
  0x63   : > { %v500_v62 = vand.u32 2147483647, %v499_v1  ;;  %v1170_v12 = vshll.u32 %v3081_v37, %v3328_v30  ;;  %v406_v6 = vsel %vm3431_vm7, 0, %v3411_v40  ;;  %v1171_v44 = vshrl.u32 %v3082_v43, %v3343_v41 }
  0x64   : > { %v397_v39 = vand.u32 2147483647, %v396_v63  ;;  %vm1173_vm8 = vcmp.lt.s32.totalorder %v3340_v27, 1  ;;  %v1299_v54 = vmul.u32 %v3368_v49, %v1283_v60  ;;  %vm1174_vm9 = vcmp.lt.s32.totalorder %v3340_v27, 2 }
  0x65   : > { %v503_v52 = vmul.f32 %v502_v56, %v500_v62  ;;  %vm1176_vm10 = vcmp.lt.s32.totalorder %v3340_v27, 4  ;;  %vm1301_vm11 = vc.u32 %v3462_v26, %v3465_v34  ;;  %v1172_v30 = vor.u32 %v1171_v44, %v1170_v12 }
  0x66   : > { %v400_v17 = vmul.f32 %v399_v3, %v397_v39  ;;  %vm1175_vm12 = vcmp.lt.s32.totalorder %v3340_v27, 3  ;;  %v1302_v5 = vadd.s32 1, %v3466_v35  ;;  %v1178_v41 = vsel %vm1176_vm10, %v3403_v36, 2102212464 }
  0x67   : > { %v504_v40 = vxor.u32 2147483648, %v503_v52  ;;  %v1181_v49 = vsel %vm1173_vm8, %v3392_v25, %v3398_v33  ;;  %v1177_v57 = vsel %vm1173_vm8, %v3364_v14, %v3392_v25  ;;  %v1179_v58 = vsel %vm1175_vm12, %v3398_v33, %v1178_v41 }
  0x68   : > { %v401_v55 = vxor.u32 2147483648, %v400_v17  ;;  %v1182_v7 = vsel %vm1176_vm10, %v3413_v42, 920167782  ;;  %v1303_v45 = vsel %vm1301_vm11, %v1302_v5, %v3466_v35  ;;  %v1185_v14 = vsel %vm1173_vm8, %v3398_v33, %v3403_v36 }
  0x69   : > { %v505_v59 = vsel %vm422_vm13, %v504_v40, %v503_v52  ;;  %v1183_v47 = vsel %vm1175_vm12, %v3403_v36, %v1182_v7  ;;  %v1304_v0 = vadd.s32 %v1303_v45, %v1299_v54  ;;  %v1186_v48 = vsel %vm1176_vm10, %v1172_v30, 1326507024 }
  0x6a   : > { %v508_v25 = vsel %vm3350_vm14, %v3222_v4, %v505_v59  ;;  %v402_v51 = vsel %vm319_vm15, %v401_v55, %v400_v17  ;;  %v1184_v18 = vsel %vm1174_vm9, %v1181_v49, %v1183_v47  ;;  %v1189_v33 = vshll.u32 %v1149_v53, 8 }
  0x6b   : > { %2902 = vcosq.f32 %v508_v25  ;;  %v405_v50 = vsel %vm3431_vm7, %v3201_v15, %v402_v51  ;;  %v1305_v36 = vadd.s32 536870912, %v1304_v0  ;;  %v1180_v1 = vsel %vm1174_vm9, %v1177_v57, %v1179_v58 }
  0x6c   : > { %2904 = vsinq.f32 %v508_v25  ;;  %v1187_v56 = vsel %vm1175_vm12, %v3413_v42, %v1186_v48  ;;  %v3532_v60 = vmul.u32.u64.low %v1189_v33, %v1184_v18  ;;  %v3533_v24 = vmul.u32.u64.high %v1189_v33, %v1184_v18, %v3532_v60 }
  0x6d   : > { %2906 = vcosq.f32 %v405_v50  ;;  %v1188_v31 = vsel %vm1174_vm9, %v1185_v14, %v1187_v56  ;;  %v1306_v8 = vshrl.u32 %v1305_v36, 30  ;;  %v287_v3 = vmul.f32 3.1415927, %v3194_v10 }
  0x6e   : > { %2908 = vsinq.f32 %v405_v50  ;;  %v3536_v53 = vmul.u32.u64.low %v1189_v33, %v1188_v31  ;;  %v3537_v63 = vmul.u32.u64.high %v1189_v33, %v1188_v31, %v3536_v53  ;;  %v513_v42 = vand.u32 3, %v509_v38 }
  0x6f   : > { %v1307_v16 = vshll.u32 %v1306_v8, 30  ;;  %v1196_v62 = vmul.u32 %v1189_v33, %v1180_v1  ;;  %v410_v27 = vand.u32 3, %v406_v6  ;;  %v1199_v35 = vadd.s32 1, %v3533_v24 }
  0x70   : > { %v3545_v12 = vmul.f32 0.2, %v287_v3  ;;  %vm1198_vm13 = vc.u32 %v3537_v63, %v3532_v60  ;;  %vm512_vm15 = vweird.f32 %v3222_v4  ;;  %vm409_vm0 = vweird.f32 %v3201_v15 }
  0x71   : > { %v3547_v39 = vsub.s32 %v1304_v0, %v1307_v16  ;;  %vm1246_vm1 = vcmp.lt.s32.totalorder %v3299_v61, 0  ;;  %v1200_v10 = vsel %vm1198_vm13, %v1199_v35, %v3533_v24  ;;  %vm514_vm14 = vcmp.lt.s32.totalorder %v513_v42, 2 }
  0x72   : > { %v1201_v23 = vadd.s32 %v1200_v10, %v1196_v62  ;;  %v629_v38 = vand.u32 2139095040, %v3545_v12  ;;  %vm515_vm2 = vcmp.eq.s32.totalorder %v513_v42, 0  ;;  %vm518_vm3 = vcmp.eq.s32.totalorder %v513_v42, 2 }
  0x73   : > { %v1310_v46 = vsub.s32 0, %v3547_v39  ;;  %vm1998_vm4 = vcmp.lt.f32.partialorder %v3191_v9, 5.0  ;;  %vm411_vm5 = vcmp.lt.s32.totalorder %v410_v27, 2  ;;  %vm412_vm6 = vcmp.eq.s32.totalorder %v410_v27, 0 }
  0x74   : > { %vm2509_vm7 = vcmask 7168   ;;  %vm415_vm8 = vcmp.eq.s32.totalorder %v410_v27, 2  ;;  %vm3560_vm9 = vcmp.le.f32.partialorder %v1244_v20, 0.7853982  ;;  %v1330_v30 = vsub.s32 4, %v1306_v8 }
  0x75   : > { %v2903_v6 = vpop.eup %2902  ;;  %v2682_v17 = vmin.u32 %v1310_v46, %v3547_v39  ;;  %vm1997_vm10 = vcmp.lt.f32.partialorder %v3182_v2, 5.0  ;;  %v1202_v41 = vadd.s32 536870912, %v1201_v23  ;;  %v626_v49 = vand.u32 2147483647, %v3545_v12 }
  0x76   : > { %v2905_v44 = vpop.eup %2904  ;;  %v519_v52 = vxor.u32 2147483648, %v2903_v6  ;;  %v630_v55 = vshrl.u32 %v629_v38, 23  ;;  %v1300_v20 = vadd.s32 %v3465_v34, %v3462_v26  ;;  %v1331_v50 = vsel %vm1246_vm1, %v1330_v30, %v1306_v8 }
  0x77   : > { %v2907_v40 = vpop.eup %2906  ;;  %v516_v5 = vxor.u32 2147483648, %v2905_v44  ;;  %v1312_v59 = vclz %v2682_v17  ;;  %v3571_v14 = vshrl.u32 %v1202_v41, 30  ;;  %v633_v33 = vand.u32 8388607, %v626_v49 }
  0x78   : > { %v2909_v57 = vpop.eup %2908  ;;  %v520_v58 = vsel %vm518_vm3, %v519_v52, %v2905_v44  ;;  %v416_v7 = vxor.u32 2147483648, %v2907_v40  ;;  %v2657_v25 = vadd.s32 4294967169, %v630_v55  ;;  %v286_v4 = vmul.f32 3.1415927, %v3197_v11 }
  0x79   : > { %v517_v45 = vsel %vm515_vm2, %v2903_v6, %v516_v5  ;;  %v413_v47 = vxor.u32 2147483648, %v2909_v57  ;;  %v2683_v18 = vadd.s32 4294967294, %v1312_v59  ;;  %v1204_v34 = vshll.u32 %v3571_v14, 30 }
  0x7a   : > { %v521_v51 = vsel %vm514_vm14, %v517_v45, %v520_v58  ;;  %v417_v0 = vsel %vm415_vm8, %v416_v7, %v2909_v57  ;;  %v636_v56 = vadd.s32 1, %v2657_v25  ;;  %v1333_v15 = vsel %vm3560_vm9, 0, %v1331_v50 }
  0x7b   : > { %v522_v48 = vsel %vm512_vm15, nan, %v521_v51  ;;  %v414_v26 = vsel %vm412_vm6, %v2907_v40, %v413_v47  ;;  %vm2684_vm11 = vcmp.lt.s32.totalorder %v2683_v18, 0  ;;  %v3586_v8 = vsub.s32 %v1201_v23, %v1204_v34 }
  0x7c   : > { %v1966_v36 = vadd.f32 1.0, %v522_v48  ;;  %v418_v1 = vsel %vm411_vm5, %v414_v26, %v417_v0  ;;  %v1315_v24 = vsel %vm2684_vm11, 0, %v2683_v18  ;;  %vm637_vm12 = vcmp.gt.s32.totalorder %v636_v56, 0 }
  0x7d   : > { %v419_v31 = vsel %vm409_vm0, nan, %v418_v1  ;;  %v1316_v42 = vsub.s32 32, %v1315_v24  ;;  %v1317_v16 = vshll.u32 %v3547_v39, %v1315_v24  ;;  %v1320_v62 = vsub.s32 4294967266, %v1315_v24 }
  0x7e   : > { %v1982_v53 = vmul.f32 0.5, %v1966_v36  ;;  %v1965_v3 = vadd.f32 1.0, %v419_v31  ;;  %v1207_v27 = vsub.s32 0, %v3586_v8  ;;  %v634_v46 = vor.u32 8388608, %v633_v33 }
  0x7f   : > { %v1318_v10 = vshrl.u32 %v1300_v20, %v1316_v42  ;;  %v1321_v23 = vadd.s32 127, %v1320_v62  ;;  %v638_v38 = vsel %vm637_vm12, %v636_v56, 0  ;;  %v1197_v52 = vadd.s32 %v3532_v60, %v3537_v63 }
  0x80   : > { %v2014_v11 = vsel %vm1998_vm4, %v1982_v53, 0.0  ;;  %v1981_v35 = vmul.f32 0.5, %v1965_v3  ;;  %v2678_v39 = vmin.u32 %v1207_v27, %v3586_v8  ;;  %v3610_v9 = vmul.f32 3.1415927, %v3208_v22 }
  0x81   : > { %2259 = vperm.xlu1 %2868, %v2014_v11   ;;  %2511 = vst.msk [vmem:[%s3594_s16 + $0x8] sm:$0xff] %vm2509_vm7, %v2014_v11  ;;  %v1319_v44 = vor.u32 %v1318_v10, %v1317_v16  ;;  %v1322_v17 = vshll.u32 %v1321_v23, 23  ;;  %v3614_v30 = vand.u32 3, %v1333_v15  ;;  %v3616_v5 = vshrl.u32 %v638_v38, 5 }
  0x82   : > { %v2013_v6 = vsel %vm1997_vm10, %v1981_v35, 0.0  ;;  %v1209_v40 = vclz %v2678_v39  ;;  %v1227_v41 = vsub.s32 4, %v3571_v14  ;;  %v640_v2 = vand.u32 31, %v638_v38 }
  0x83   : > { %2254 = vperm.xlu0 %2867, %v2013_v6   ;;  %2510 = vst.msk [vmem:[%s3594_s16] sm:$0xff] %vm2509_vm7, %v2013_v6  ;;  %v3619_v55 = vshll.u32 %v634_v46, 8  ;;  %v3621_v57 = vmul.f32 0.2, %v286_v4  ;;  %v1323_v60 = vor.u32 4788187, %v1322_v17  ;;  %v1326_v63 = vcvt.s32.f32 %v1319_v44 }
  0x84   : > { %v2679_v22 = vadd.s32 4294967294, %v1209_v40  ;;  %vm658_vm13 = vcmp.lt.s32.totalorder %v3616_v5, 1  ;;  %v641_v58 = vsub.s32 32, %v640_v2  ;;  %v643_v7 = vshll.u32 %v3077_v19, %v640_v2 }
  0x85   : > { %v646_v20 = vshll.u32 %v3078_v21, %v640_v2  ;;  %v649_v59 = vshll.u32 %v3079_v29, %v640_v2  ;;  %v1324_v45 = vand.u32 2147483647, %v1323_v60  ;;  %vm1143_vm15 = vcmp.lt.s32.totalorder %v3199_v13, 0 }
  0x86   : > { %vm2680_vm0 = vcmp.lt.s32.totalorder %v2679_v22, 0  ;;  %v652_v47 = vshll.u32 %v3080_v32, %v640_v2  ;;  %v655_v25 = vshll.u32 %v3081_v37, %v640_v2  ;;  %vm659_vm14 = vcmp.lt.s32.totalorder %v3616_v5, 2 }
  0x87   : > { %v1212_v51 = vsel %vm2680_vm0, 0, %v2679_v22  ;;  %v642_v0 = vshrl.u32 %v3077_v19, %v641_v58  ;;  %v644_v18 = vshrl.u32 %v3078_v21, %v641_v58  ;;  %v647_v50 = vshrl.u32 %v3079_v29, %v641_v58 }
  0x88   : > { %v1327_v48 = vmul.f32 %v1326_v63, %v1324_v45  ;;  %v1213_v26 = vsub.s32 32, %v1212_v51  ;;  %v1214_v34 = vshll.u32 %v3586_v8, %v1212_v51  ;;  %v1217_v33 = vsub.s32 4294967266, %v1212_v51 }
  0x89   : > { %v645_v36 = vor.u32 %v644_v18, %v643_v7  ;;  %v648_v1 = vor.u32 %v647_v50, %v646_v20  ;;  %v650_v56 = vshrl.u32 %v3080_v32, %v641_v58  ;;  %v653_v31 = vshrl.u32 %v3081_v37, %v641_v58 }
  0x8a   : > { %v1328_v24 = vxor.u32 2147483648, %v1327_v48  ;;  %v1215_v4 = vshrl.u32 %v1197_v52, %v1213_v26  ;;  %v1218_v53 = vadd.s32 127, %v1217_v33  ;;  %v656_v3 = vshrl.u32 %v3082_v43, %v641_v58 }
  0x8b   : > { %v651_v42 = vor.u32 %v650_v56, %v649_v59  ;;  %v654_v16 = vor.u32 %v653_v31, %v652_v47  ;;  %vm660_vm2 = vcmp.lt.s32.totalorder %v3616_v5, 3  ;;  %vm661_vm3 = vcmp.lt.s32.totalorder %v3616_v5, 4 }
  0x8c   : > { %v1329_v8 = vsel %vm1246_vm1, %v1328_v24, %v1327_v48  ;;  %v1216_v62 = vor.u32 %v1215_v4, %v1214_v34  ;;  %v1219_v15 = vshll.u32 %v1218_v53, 23  ;;  %v657_v27 = vor.u32 %v656_v3, %v655_v25 }
  0x8d   : > { %v1332_v11 = vsel %vm3560_vm9, %v3299_v61, %v1329_v8  ;;  %v662_v35 = vsel %vm658_vm13, %v642_v0, %v645_v36  ;;  %v663_v10 = vsel %vm661_vm3, %v651_v42, 2102212464  ;;  %v666_v46 = vsel %vm658_vm13, %v645_v36, %v648_v1 }
  0x8e   : > { %2910 = vcosq.f32 %v1332_v11  ;;  %v1220_v23 = vor.u32 4788187, %v1219_v15  ;;  %v1223_v39 = vcvt.s32.f32 %v1216_v62  ;;  %v664_v38 = vsel %vm660_vm2, %v648_v1, %v663_v10  ;;  %v2998_v15 = vld [vmem:[%s3178_s13 + $0x48] sm:$0xff] }
  0x8f   : > { %2912 = vsinq.f32 %v1332_v11  ;;  %v1228_v54 = vsel %vm1143_vm15, %v1227_v41, %v3571_v14  ;;  %v667_v6 = vsel %vm661_vm3, %v654_v16, 920167782  ;;  %v670_v44 = vsel %vm658_vm13, %v648_v1, %v651_v42 }
  0x90   : > { %v1221_v52 = vand.u32 2147483647, %v1220_v23  ;;  %v668_v17 = vsel %vm660_vm2, %v651_v42, %v667_v6  ;;  %v671_v40 = vsel %vm661_vm3, %v657_v27, 1326507024  ;;  %v523_v2 = vand.u32 2147483647, %v3621_v57 }
  0x91   : > { %v665_v60 = vsel %vm659_vm14, %v662_v35, %v664_v38  ;;  %v669_v14 = vsel %vm659_vm14, %v666_v46, %v668_v17  ;;  %v672_v41 = vsel %vm660_vm2, %v654_v16, %v671_v40  ;;  %v526_v63 = vand.u32 2139095040, %v3621_v57 }
  0x92   : > { %v1224_v22 = vmul.f32 %v1223_v39, %v1221_v52  ;;  %v673_v58 = vsel %vm659_vm14, %v670_v44, %v672_v41  ;;  %v3675_v7 = vmul.u32.u64.low %v3619_v55, %v669_v14  ;;  %v3676_v20 = vmul.u32.u64.high %v3619_v55, %v669_v14, %v3675_v7 }
  0x93   : > { %v3679_v59 = vmul.u32.u64.low %v3619_v55, %v673_v58  ;;  %v3680_v45 = vmul.u32.u64.high %v3619_v55, %v673_v58, %v3679_v59  ;;  %v527_v47 = vshrl.u32 %v526_v63, 23  ;;  %vm3684_vm1 = vcmp.le.f32.partialorder %v1141_v28, 0.7853982 }
  0x94   : > { %v1225_v51 = vxor.u32 2147483648, %v1224_v22  ;;  %vm1338_vm4 = vcmp.lt.s32.totalorder %v3614_v30, 2  ;;  %v1230_v5 = vsel %vm3684_vm1, 0, %v1228_v54  ;;  %v681_v0 = vmul.u32 %v3619_v55, %v665_v60 }
  0x95   : > { %v2653_v18 = vadd.s32 4294967169, %v527_v47  ;;  %v684_v48 = vadd.s32 1, %v3676_v20  ;;  %v530_v28 = vand.u32 8388607, %v523_v2  ;;  %v3698_v26 = vmul.f32 0.2, %v3610_v9 }
  0x96   : > { %v1226_v50 = vsel %vm1143_vm15, %v1225_v51, %v1224_v22  ;;  %vm1339_vm5 = vcmp.eq.s32.totalorder %v3614_v30, 0  ;;  %vm683_vm6 = vc.u32 %v3680_v45, %v3675_v7  ;;  %vm1342_vm8 = vcmp.eq.s32.totalorder %v3614_v30, 2  ;;  %v2999_v22 = vld [vmem:[%s3178_s13 + $0x40] sm:$0xff] }
  0x97   : > { %v1229_v34 = vsel %vm3684_vm1, %v3199_v13, %v1226_v50  ;;  %v533_v55 = vadd.s32 1, %v2653_v18  ;;  %v3706_v36 = vand.u32 3, %v1230_v5  ;;  %v685_v1 = vsel %vm683_vm6, %v684_v48, %v3676_v20 }
  0x98   : > { %v2911_v33 = vpop.eup %2910  ;;  %2914 = vcosq.f32 %v1229_v34  ;;  %v686_v31 = vadd.s32 %v685_v1, %v681_v0  ;;  %v531_v4 = vor.u32 8388608, %v530_v28  ;;  %v1453_v3 = vand.u32 2139095040, %v3698_v26 }
  0x99   : > { %v2913_v9 = vpop.eup %2912  ;;  %v1343_v56 = vxor.u32 2147483648, %v2911_v33  ;;  %2916 = vsinq.f32 %v1229_v34  ;;  %vm534_vm9 = vcmp.gt.s32.totalorder %v533_v55, 0  ;;  %vm1336_vm10 = vweird.f32 %v3299_v61 }
  0x9a   : > { %v1340_v24 = vxor.u32 2147483648, %v2913_v9  ;;  %v535_v53 = vsel %vm534_vm9, %v533_v55, 0  ;;  %v687_v16 = vadd.s32 536870912, %v686_v31  ;;  %vm2006_vm11 = vcmp.lt.f32.partialorder %v2998_v15, 5.0 }
  0x9b   : > { %v1344_v42 = vsel %vm1342_vm8, %v1343_v56, %v2913_v9  ;;  %v537_v8 = vand.u32 31, %v535_v53  ;;  %vm1235_vm12 = vcmp.lt.s32.totalorder %v3706_v36, 2  ;;  %vm1236_vm13 = vcmp.eq.s32.totalorder %v3706_v36, 0 }
  0x9c   : > { %v1341_v62 = vsel %vm1339_vm5, %v2911_v33, %v1340_v24  ;;  %vm1233_vm15 = vweird.f32 %v3199_v13  ;;  %vm1239_vm0 = vcmp.eq.s32.totalorder %v3706_v36, 2  ;;  %v3720_v61 = vshrl.u32 %v687_v16, 30 }
  0x9d   : > { %v1345_v27 = vsel %vm1338_vm4, %v1341_v62, %v1344_v42  ;;  %v538_v11 = vsub.s32 32, %v537_v8  ;;  %v3722_v10 = vshll.u32 %v531_v4, 8  ;;  %v1450_v46 = vand.u32 2147483647, %v3698_v26 }
  0x9e   : > { %v1346_v35 = vsel %vm1336_vm10, nan, %v1345_v27  ;;  %v1454_v23 = vshrl.u32 %v1453_v3, 23  ;;  %v3726_v38 = vadd.s32 %v3675_v7, %v3680_v45  ;;  %v689_v30 = vshll.u32 %v3720_v61, 30 }
  0x9f   : > { %v1974_v39 = vadd.f32 1.0, %v1346_v35  ;;  %v536_v54 = vshrl.u32 %v535_v53, 5  ;;  %v540_v6 = vshll.u32 %v3077_v19, %v537_v8  ;;  %v541_v44 = vshrl.u32 %v3078_v21, %v538_v11 }
  0xa0   : > { %v543_v52 = vshll.u32 %v3078_v21, %v537_v8  ;;  %v544_v17 = vshrl.u32 %v3079_v29, %v538_v11  ;;  %v3733_v60 = vsub.s32 %v686_v31, %v689_v30  ;;  %v549_v14 = vshll.u32 %v3080_v32, %v537_v8 }
  0xa1   : > { %v1990_v40 = vmul.f32 0.5, %v1974_v39  ;;  %v550_v41 = vshrl.u32 %v3081_v37, %v538_v11  ;;  %vm2005_vm14 = vcmp.lt.f32.partialorder %v2999_v22, 5.0  ;;  %v546_v58 = vshll.u32 %v3079_v29, %v537_v8 }
  0xa2   : > { %v2915_v63 = vpop.eup %2914  ;;  %v547_v7 = vshrl.u32 %v3080_v32, %v538_v11  ;;  %v552_v20 = vshll.u32 %v3081_v37, %v537_v8  ;;  %v2689_v59 = vadd.s32 4294967169, %v1454_v23  ;;  %v692_v51 = vsub.s32 0, %v3733_v60 }
  0xa3   : > { %v2917_v45 = vpop.eup %2916  ;;  %v2022_v47 = vsel %vm2006_vm11, %v1990_v40, 0.0  ;;  %v1240_v25 = vxor.u32 2147483648, %v2915_v63  ;;  %v539_v5 = vshrl.u32 %v3077_v19, %v538_v11  ;;  %v542_v18 = vor.u32 %v541_v44, %v540_v6 }
  0xa4   : > { %2519 = vst.msk [vmem:[%s3594_s16 + $0x48] sm:$0xff] %vm2509_vm7, %v2022_v47  ;;  %2299 = vperm.xlu1 %2868, %v2022_v47   ;;  %v1237_v0 = vxor.u32 2147483648, %v2917_v45  ;;  %v545_v50 = vor.u32 %v544_v17, %v543_v52  ;;  %v553_v48 = vshrl.u32 %v3082_v43, %v538_v11  ;;  %v2658_v34 = vmin.u32 %v692_v51, %v3733_v60 }
  0xa5   : > { %v1241_v28 = vsel %vm1239_vm0, %v1240_v25, %v2917_v45  ;;  %v551_v55 = vor.u32 %v550_v41, %v549_v14  ;;  %vm555_vm2 = vcmp.lt.s32.totalorder %v536_v54, 1  ;;  %v548_v1 = vor.u32 %v547_v7, %v546_v58 }
  0xa6   : > { %v1238_v33 = vsel %vm1236_vm13, %v2915_v63, %v1237_v0  ;;  %v554_v9 = vor.u32 %v553_v48, %v552_v20  ;;  %vm556_vm3 = vcmp.lt.s32.totalorder %v536_v54, 2  ;;  %v694_v31 = vclz %v2658_v34 }
  0xa7   : > { %v1242_v56 = vsel %vm1235_vm12, %v1238_v33, %v1241_v28  ;;  %vm557_vm1 = vcmp.lt.s32.totalorder %v536_v54, 3  ;;  %vm558_vm4 = vcmp.lt.s32.totalorder %v536_v54, 4  ;;  %v559_v4 = vsel %vm555_vm2, %v539_v5, %v542_v18 }
  0xa8   : > { %v1243_v24 = vsel %vm1233_vm15, nan, %v1242_v56  ;;  %v560_v53 = vsel %vm558_vm4, %v548_v1, 2102212464  ;;  %v563_v3 = vsel %vm555_vm2, %v542_v18, %v545_v50  ;;  %v2659_v16 = vadd.s32 4294967294, %v694_v31 }
  0xa9   : > { %v1973_v42 = vadd.f32 1.0, %v1243_v24  ;;  %v561_v8 = vsel %vm557_vm1, %v545_v50, %v560_v53  ;;  %v564_v62 = vsel %vm558_vm4, %v551_v55, 920167782  ;;  %v567_v27 = vsel %vm555_vm2, %v545_v50, %v548_v1 }
  0xaa   : > { %v562_v36 = vsel %vm556_vm3, %v559_v4, %v561_v8  ;;  %v565_v15 = vsel %vm557_vm1, %v548_v1, %v564_v62  ;;  %v568_v11 = vsel %vm558_vm4, %v554_v9, 1326507024  ;;  %vm2660_vm5 = vcmp.lt.s32.totalorder %v2659_v16, 0  ;;  %v3808_v62 = vld [vmem:[%s3178_s13 + $0x50] sm:$0xff] }
  0xab   : > { %v1989_v13 = vmul.f32 0.5, %v1973_v42  ;;  %v566_v35 = vsel %vm556_vm3, %v563_v3, %v565_v15  ;;  %v569_v23 = vsel %vm557_vm1, %v551_v55, %v568_v11  ;;  %v697_v39 = vsel %vm2660_vm5, 0, %v2659_v16 }
  0xac   : > { %v570_v30 = vsel %vm556_vm3, %v567_v27, %v569_v23  ;;  %v3766_v6 = vmul.u32.u64.low %v3722_v10, %v566_v35  ;;  %v3767_v44 = vmul.u32.u64.high %v3722_v10, %v566_v35, %v3766_v6  ;;  %v698_v17 = vsub.s32 32, %v697_v39 }
  0xad   : > { %v2021_v52 = vsel %vm2005_vm14, %v1989_v13, 0.0  ;;  %v699_v40 = vshll.u32 %v3733_v60, %v697_v39  ;;  %v702_v14 = vsub.s32 4294967266, %v697_v39  ;;  %v1457_v54 = vand.u32 8388607, %v1450_v46 }
  0xae   : > { %2518 = vst.msk [vmem:[%s3594_s16 + $0x40] sm:$0xff] %vm2509_vm7, %v2021_v52  ;;  %2294 = vperm.xlu0 %2867, %v2021_v52   ;;  %v3775_v41 = vmul.u32.u64.low %v3722_v10, %v570_v30  ;;  %v3776_v63 = vmul.u32.u64.high %v3722_v10, %v570_v30, %v3775_v41  ;;  %v1460_v58 = vadd.s32 1, %v2689_v59  ;;  %v700_v7 = vshrl.u32 %v3726_v38, %v698_v17 }
  0xaf   : > { %v703_v20 = vadd.s32 127, %v702_v14  ;;  %v712_v22 = vsub.s32 4, %v3720_v61  ;;  %v578_v45 = vmul.u32 %v3722_v10, %v562_v36  ;;  %v581_v60 = vadd.s32 1, %v3767_v44 }
  0xb0   : > { %vm1461_vm6 = vcmp.gt.s32.totalorder %v1460_v58, 0  ;;  %v701_v47 = vor.u32 %v700_v7, %v699_v40  ;;  %vm628_vm8 = vcmp.lt.s32.totalorder %v3545_v12, 0  ;;  %vm580_vm9 = vc.u32 %v3776_v63, %v3766_v6 }
  0xb1   : > { %v704_v25 = vshll.u32 %v703_v20, 23  ;;  %v1462_v51 = vsel %vm1461_vm6, %v1460_v58, 0  ;;  %v1458_v5 = vor.u32 8388608, %v1457_v54  ;;  %v713_v18 = vsel %vm628_vm8, %v712_v22, %v3720_v61 }
  0xb2   : > { %v1464_v59 = vand.u32 31, %v1462_v51  ;;  %v708_v38 = vcvt.s32.f32 %v701_v47  ;;  %v582_v10 = vsel %vm580_vm9, %v581_v60, %v3767_v44  ;;  %v1463_v48 = vshrl.u32 %v1462_v51, 5 }
  0xb3   : > { %v705_v0 = vor.u32 4788187, %v704_v25  ;;  %v583_v50 = vadd.s32 %v582_v10, %v578_v45  ;;  %vm3803_vm10 = vcmp.le.f32.partialorder %v626_v49, 0.7853982  ;;  %v294_v36 = vmul.f32 3.1415927, %v3808_v62 }
  0xb4   : > { %v1465_v28 = vsub.s32 32, %v1464_v59  ;;  %v1467_v34 = vshll.u32 %v3077_v19, %v1464_v59  ;;  %v1470_v33 = vshll.u32 %v3078_v21, %v1464_v59  ;;  %v1473_v1 = vshll.u32 %v3079_v29, %v1464_v59 }
  0xb5   : > { %v706_v55 = vand.u32 2147483647, %v705_v0  ;;  %v1476_v9 = vshll.u32 %v3080_v32, %v1464_v59  ;;  %v584_v56 = vadd.s32 536870912, %v583_v50  ;;  %v1479_v24 = vshll.u32 %v3081_v37, %v1464_v59 }
  0xb6   : > { %v1468_v31 = vshrl.u32 %v3078_v21, %v1465_v28  ;;  %v1471_v61 = vshrl.u32 %v3079_v29, %v1465_v28  ;;  %v1474_v53 = vshrl.u32 %v3080_v32, %v1465_v28  ;;  %v1477_v3 = vshrl.u32 %v3081_v37, %v1465_v28 }
  0xb7   : > { %v709_v4 = vmul.f32 %v708_v38, %v706_v55  ;;  %v1480_v42 = vshrl.u32 %v3082_v43, %v1465_v28  ;;  %v585_v8 = vshrl.u32 %v584_v56, 30  ;;  %v715_v27 = vsel %vm3803_vm10, 0, %v713_v18  ;;  %v3855_v56 = vld [vmem:[%s3178_s13 + $0x28] sm:$0xff] }
  0xb8   : > { %v1478_v11 = vor.u32 %v1477_v3, %v1476_v9  ;;  %v3813_v13 = vshll.u32 %v1458_v5, 8  ;;  %v1469_v23 = vor.u32 %v1468_v31, %v1467_v34  ;;  %v1472_v39 = vor.u32 %v1471_v61, %v1470_v33 }
  0xb9   : > { %v710_v15 = vxor.u32 2147483648, %v709_v4  ;;  %v586_v35 = vshll.u32 %v585_v8, 30  ;;  %vm1482_vm11 = vcmp.lt.s32.totalorder %v1463_v48, 1  ;;  %v1475_v30 = vor.u32 %v1474_v53, %v1473_v1 }
  0xba   : > { %v1481_v44 = vor.u32 %v1480_v42, %v1479_v24  ;;  %vm1485_vm12 = vcmp.lt.s32.totalorder %v1463_v48, 4  ;;  %v1466_v40 = vshrl.u32 %v3077_v19, %v1465_v28  ;;  %vm1484_vm13 = vcmp.lt.s32.totalorder %v1463_v48, 3 }
  0xbb   : > { %v711_v49 = vsel %vm628_vm8, %v710_v15, %v709_v4  ;;  %v3820_v17 = vsub.s32 %v583_v50, %v586_v35  ;;  %v1487_v14 = vsel %vm1485_vm12, %v1475_v30, 2102212464  ;;  %v1491_v41 = vsel %vm1485_vm12, %v1478_v11, 920167782 }
  0xbc   : > { %v714_v52 = vsel %vm3803_vm10, %v3545_v12, %v711_v49  ;;  %v3823_v54 = vmul.f32 0.2, %v294_v36  ;;  %vm1483_vm15 = vcmp.lt.s32.totalorder %v1463_v48, 2  ;;  %v1490_v7 = vsel %vm1482_vm11, %v1469_v23, %v1472_v39 }
  0xbd   : > { %2918 = vcosq.f32 %v714_v52  ;;  %v589_v58 = vsub.s32 0, %v3820_v17  ;;  %v1492_v20 = vsel %vm1484_vm13, %v1475_v30, %v1491_v41  ;;  %v1494_v22 = vsel %vm1482_vm11, %v1472_v39, %v1475_v30 }
  0xbe   : > { %2920 = vsinq.f32 %v714_v52  ;;  %v1495_v45 = vsel %vm1485_vm12, %v1481_v44, 1326507024  ;;  %v719_v60 = vand.u32 3, %v715_v27  ;;  %vm3831_vm0 = vcmp.le.f32.partialorder %v523_v2, 0.7853982 }
  0xbf   : > { %v2654_v25 = vmin.u32 %v589_v58, %v3820_v17  ;;  %v1486_v51 = vsel %vm1482_vm11, %v1466_v40, %v1469_v23  ;;  %v1488_v5 = vsel %vm1484_vm13, %v1472_v39, %v1487_v14  ;;  %v609_v59 = vsub.s32 4, %v585_v8 }
  0xc0   : > { %v1493_v0 = vsel %vm1483_vm15, %v1490_v7, %v1492_v20  ;;  %v1496_v38 = vsel %vm1484_vm13, %v1478_v11, %v1495_v45  ;;  %v1350_v18 = vand.u32 2139095040, %v3823_v54  ;;  %vm718_vm14 = vweird.f32 %v3545_v12 }
  0xc1   : > { %v591_v2 = vclz %v2654_v25  ;;  %v1497_v10 = vsel %vm1483_vm15, %v1494_v22, %v1496_v38  ;;  %v3844_v50 = vmul.u32.u64.low %v3813_v13, %v1493_v0  ;;  %v3845_v28 = vmul.u32.u64.high %v3813_v13, %v1493_v0, %v3844_v50  ;;  %v3002_v22 = vld [vmem:[%s3178_s13 + $0x18] sm:$0xff] }
  0xc2   : > { %v1489_v34 = vsel %vm1483_vm15, %v1486_v51, %v1488_v5  ;;  %v3850_v55 = vmul.u32.u64.low %v3813_v13, %v1497_v10  ;;  %v3851_v33 = vmul.u32.u64.high %v3813_v13, %v1497_v10, %v3850_v55  ;;  %v1351_v1 = vshrl.u32 %v1350_v18, 23 }
  0xc3   : > { %vm720_vm2 = vcmp.lt.s32.totalorder %v719_v60, 2  ;;  %vm525_vm3 = vcmp.lt.s32.totalorder %v3621_v57, 0  ;;  %v2655_v9 = vadd.s32 4294967294, %v591_v2  ;;  %v289_v31 = vmul.f32 3.1415927, %v3855_v56 }
  0xc4   : > { %vm721_vm1 = vcmp.eq.s32.totalorder %v719_v60, 0  ;;  %vm724_vm4 = vcmp.eq.s32.totalorder %v719_v60, 2  ;;  %v579_v61 = vadd.s32 %v3766_v6, %v3776_v63  ;;  %v2685_v48 = vadd.s32 4294967169, %v1351_v1 }
  0xc5   : > { %vm2656_vm5 = vcmp.lt.s32.totalorder %v2655_v9, 0  ;;  %v610_v24 = vsel %vm525_vm3, %v609_v59, %v585_v8  ;;  %v1505_v4 = vmul.u32 %v3813_v13, %v1489_v34  ;;  %v1508_v53 = vadd.s32 1, %v3845_v28 }
  0xc6   : > { %v594_v42 = vsel %vm2656_vm5, 0, %v2655_v9  ;;  %vm1507_vm6 = vc.u32 %v3851_v33, %v3844_v50  ;;  %v1347_v16 = vand.u32 2147483647, %v3823_v54  ;;  %v1357_v36 = vadd.s32 1, %v2685_v48 }
  0xc7   : > { %v2919_v3 = vpop.eup %2918  ;;  %v595_v6 = vsub.s32 32, %v594_v42  ;;  %v596_v63 = vshll.u32 %v3820_v17, %v594_v42  ;;  %v599_v11 = vsub.s32 4294967266, %v594_v42  ;;  %v612_v8 = vsel %vm3831_vm0, 0, %v610_v24 }
  0xc8   : > { %v2921_v15 = vpop.eup %2920  ;;  %v725_v27 = vxor.u32 2147483648, %v2919_v3  ;;  %v1509_v13 = vsel %vm1507_vm6, %v1508_v53, %v3845_v28  ;;  %vm1358_vm8 = vcmp.gt.s32.totalorder %v1357_v36, 0  ;;  %v1354_v52 = vand.u32 8388607, %v1347_v16 }
  0xc9   : > { %v722_v35 = vxor.u32 2147483648, %v2921_v15  ;;  %v597_v39 = vshrl.u32 %v579_v61, %v595_v6  ;;  %v600_v49 = vadd.s32 127, %v599_v11  ;;  %v1510_v30 = vadd.s32 %v1509_v13, %v1505_v4 }
  0xca   : > { %v726_v23 = vsel %vm724_vm4, %v725_v27, %v2921_v15  ;;  %v1359_v17 = vsel %vm1358_vm8, %v1357_v36, 0  ;;  %v3875_v40 = vmul.f32 0.2, %v289_v31  ;;  %vm2000_vm9 = vcmp.lt.f32.partialorder %v3002_v22, 5.0 }
  0xcb   : > { %v723_v44 = vsel %vm721_vm1, %v2919_v3, %v722_v35  ;;  %v598_v41 = vor.u32 %v597_v39, %v596_v63  ;;  %v601_v58 = vshll.u32 %v600_v49, 23  ;;  %v1511_v7 = vadd.s32 536870912, %v1510_v30 }
  0xcc   : > { %v727_v14 = vsel %vm720_vm2, %v723_v44, %v726_v23  ;;  %v3881_v45 = vand.u32 3, %v612_v8  ;;  %v1361_v25 = vand.u32 31, %v1359_v17  ;;  %v1355_v38 = vor.u32 8388608, %v1354_v52 }
  0xcd   : > { %v728_v20 = vsel %vm718_vm14, nan, %v727_v14  ;;  %v602_v5 = vor.u32 4788187, %v601_v58  ;;  %v605_v59 = vcvt.s32.f32 %v598_v41  ;;  %v3883_v0 = vshrl.u32 %v1511_v7, 30 }
  0xce   : > { %v1968_v51 = vadd.f32 1.0, %v728_v20  ;;  %v3885_v60 = vshrl.u32 %v1359_v17, 5  ;;  %v1362_v18 = vsub.s32 32, %v1361_v25  ;;  %v835_v2 = vand.u32 2139095040, %v3875_v40 }
  0xcf   : > { %v603_v12 = vand.u32 2147483647, %v602_v5  ;;  %v1513_v28 = vshll.u32 %v3883_v0, 30  ;;  %v1364_v34 = vshll.u32 %v3077_v19, %v1361_v25  ;;  %v1367_v1 = vshll.u32 %v3078_v21, %v1361_v25 }
  0xd0   : > { %v1984_v10 = vmul.f32 0.5, %v1968_v51  ;;  %v1365_v55 = vshrl.u32 %v3078_v21, %v1362_v18  ;;  %v1368_v9 = vshrl.u32 %v3079_v29, %v1362_v18  ;;  %v1370_v31 = vshll.u32 %v3079_v29, %v1361_v25 }
  0xd1   : > { %v606_v48 = vmul.f32 %v605_v59, %v603_v12  ;;  %v3895_v24 = vsub.s32 %v1510_v30, %v1513_v28  ;;  %v1371_v4 = vshrl.u32 %v3080_v32, %v1362_v18  ;;  %v1363_v53 = vshrl.u32 %v3077_v19, %v1362_v18 }
  0xd2   : > { %v2016_v61 = vsel %vm2000_vm9, %v1984_v10, 0.0  ;;  %v3901_v3 = vshll.u32 %v1355_v38, 8  ;;  %v832_v42 = vand.u32 2147483647, %v3875_v40  ;;  %v836_v36 = vshrl.u32 %v835_v2, 23 }
  0xd3   : > { %2513 = vst.msk [vmem:[%s3594_s16 + $0x18] sm:$0xff] %vm2509_vm7, %v2016_v61  ;;  %2269 = vperm.xlu1 %2868, %v2016_v61   ;;  %v607_v15 = vxor.u32 2147483648, %v606_v48  ;;  %v1516_v27 = vsub.s32 0, %v3895_v24  ;;  %v1366_v6 = vor.u32 %v1365_v55, %v1364_v34  ;;  %v1373_v63 = vshll.u32 %v3080_v32, %v1361_v25 }
  0xd4   : > { %v1369_v11 = vor.u32 %v1368_v9, %v1367_v1  ;;  %v1374_v35 = vshrl.u32 %v3081_v37, %v1362_v18  ;;  %v1376_v8 = vshll.u32 %v3081_v37, %v1361_v25  ;;  %v1377_v13 = vshrl.u32 %v3082_v43, %v1362_v18 }
  0xd5   : > { %v608_v23 = vsel %vm525_vm3, %v607_v15, %v606_v48  ;;  %v2690_v39 = vmin.u32 %v1516_v27, %v3895_v24  ;;  %v1372_v49 = vor.u32 %v1371_v4, %v1370_v31  ;;  %vm1379_vm10 = vcmp.lt.s32.totalorder %v3885_v60, 1 }
  0xd6   : > { %v611_v30 = vsel %vm3831_vm0, %v3621_v57, %v608_v23  ;;  %v1375_v44 = vor.u32 %v1374_v35, %v1373_v63  ;;  %v1378_v52 = vor.u32 %v1377_v13, %v1376_v8  ;;  %v2665_v17 = vadd.s32 4294967169, %v836_v36 }
  0xd7   : > { %2922 = vcosq.f32 %v611_v30  ;;  %v1518_v14 = vclz %v2690_v39  ;;  %vm1380_vm11 = vcmp.lt.s32.totalorder %v3885_v60, 2  ;;  %vm1381_vm12 = vcmp.lt.s32.totalorder %v3885_v60, 3 }
  0xd8   : > { %2924 = vsinq.f32 %v611_v30  ;;  %vm1382_vm13 = vcmp.lt.s32.totalorder %v3885_v60, 4  ;;  %v1383_v41 = vsel %vm1379_vm10, %v1363_v53, %v1366_v6  ;;  %v1387_v58 = vsel %vm1379_vm10, %v1366_v6, %v1369_v11  ;;  %v3003_v6 = vld [vmem:[%s3178_s13 + $0x10] sm:$0xff] }
  0xd9   : > { %vm1452_vm15 = vcmp.lt.s32.totalorder %v3698_v26, 0  ;;  %v2691_v47 = vadd.s32 4294967294, %v1518_v14  ;;  %v1384_v7 = vsel %vm1382_vm13, %v1372_v49, 2102212464  ;;  %v1388_v20 = vsel %vm1382_vm13, %v1375_v44, 920167782 }
  0xda   : > { %v1391_v22 = vsel %vm1379_vm10, %v1369_v11, %v1372_v49  ;;  %v1385_v25 = vsel %vm1381_vm12, %v1369_v11, %v1384_v7  ;;  %v1389_v51 = vsel %vm1381_vm12, %v1372_v49, %v1388_v20  ;;  %v1392_v5 = vsel %vm1382_vm13, %v1378_v52, 1326507024 }
  0xdb   : > { %v842_v59 = vadd.s32 1, %v2665_v17  ;;  %v1506_v38 = vadd.s32 %v3844_v50, %v3851_v33  ;;  %vm2692_vm0 = vcmp.lt.s32.totalorder %v2691_v47, 0  ;;  %v1390_v18 = vsel %vm1380_vm11, %v1387_v58, %v1389_v51 }
  0xdc   : > { %v1393_v2 = vsel %vm1381_vm12, %v1375_v44, %v1392_v5  ;;  %vm615_vm14 = vweird.f32 %v3621_v57  ;;  %v1521_v10 = vsel %vm2692_vm0, 0, %v2691_v47  ;;  %v1386_v1 = vsel %vm1380_vm11, %v1383_v41, %v1385_v25 }
  0xdd   : > { %v1394_v12 = vsel %vm1380_vm11, %v1391_v22, %v1393_v2  ;;  %v3940_v28 = vmul.u32.u64.low %v3901_v3, %v1390_v18  ;;  %v3941_v34 = vmul.u32.u64.high %v3901_v3, %v1390_v18, %v3940_v28  ;;  %v1522_v55 = vsub.s32 32, %v1521_v10 }
  0xde   : > { %v1523_v50 = vshll.u32 %v3895_v24, %v1521_v10  ;;  %v1526_v33 = vsub.s32 4294967266, %v1521_v10  ;;  %v1536_v9 = vsub.s32 4, %v3883_v0  ;;  %vm843_vm2 = vcmp.gt.s32.totalorder %v842_v59, 0 }
  0xdf   : > { %v3949_v31 = vmul.u32.u64.low %v3901_v3, %v1394_v12  ;;  %v3950_v61 = vmul.u32.u64.high %v3901_v3, %v1394_v12, %v3949_v31  ;;  %vm617_vm3 = vcmp.lt.s32.totalorder %v3881_v45, 2  ;;  %v1524_v48 = vshrl.u32 %v1506_v38, %v1522_v55 }
  0xe0   : > { %v1527_v4 = vadd.s32 127, %v1526_v33  ;;  %v844_v53 = vsel %vm843_vm2, %v842_v59, 0  ;;  %v1402_v36 = vmul.u32 %v3901_v3, %v1386_v1  ;;  %v1405_v24 = vadd.s32 1, %v3941_v34 }
  0xe1   : > { %v839_v60 = vand.u32 8388607, %v832_v42  ;;  %v846_v15 = vand.u32 31, %v844_v53  ;;  %v2923_v27 = vpop.eup %2922  ;;  %vm618_vm1 = vcmp.eq.s32.totalorder %v3881_v45, 0  ;;  %vm621_vm4 = vcmp.eq.s32.totalorder %v3881_v45, 2 }
  0xe2   : > { %vm1999_vm5 = vcmp.lt.f32.partialorder %v3003_v6, 5.0  ;;  %v1525_v63 = vor.u32 %v1524_v48, %v1523_v50  ;;  %v1528_v11 = vshll.u32 %v1527_v4, 23  ;;  %v2925_v35 = vpop.eup %2924  ;;  %v622_v8 = vxor.u32 2147483648, %v2923_v27 }
  0xe3   : > { %v1537_v3 = vsel %vm1452_vm15, %v1536_v9, %v3883_v0  ;;  %vm1404_vm6 = vc.u32 %v3950_v61, %v3940_v28  ;;  %v847_v13 = vsub.s32 32, %v846_v15  ;;  %v619_v23 = vxor.u32 2147483648, %v2925_v35 }
  0xe4   : > { %v1529_v39 = vor.u32 4788187, %v1528_v11  ;;  %v1532_v49 = vcvt.s32.f32 %v1525_v63  ;;  %v1406_v30 = vsel %vm1404_vm6, %v1405_v24, %v3941_v34  ;;  %v623_v44 = vsel %vm621_vm4, %v622_v8, %v2925_v35 }
  0xe5   : > { %vm3968_vm8 = vcmp.le.f32.partialorder %v1450_v46, 0.7853982  ;;  %v1407_v17 = vadd.s32 %v1406_v30, %v1402_v36  ;;  %v840_v14 = vor.u32 8388608, %v839_v60  ;;  %v620_v0 = vsel %vm618_vm1, %v2923_v27, %v619_v23  ;;  %v4009_v23 = vld [vmem:[%s3178_s13 + $0x20] sm:$0xff] }
  0xe6   : > { %v1530_v41 = vand.u32 2147483647, %v1529_v39  ;;  %v1539_v58 = vsel %vm3968_vm8, 0, %v1537_v3  ;;  %v845_v47 = vshrl.u32 %v844_v53, 5  ;;  %v624_v7 = vsel %vm617_vm3, %v620_v0, %v623_v44 }
  0xe7   : > { %v1408_v20 = vadd.s32 536870912, %v1407_v17  ;;  %v849_v22 = vshll.u32 %v3077_v19, %v846_v15  ;;  %v850_v46 = vshrl.u32 %v3078_v21, %v847_v13  ;;  %v625_v25 = vsel %vm615_vm14, nan, %v624_v7 }
  0xe8   : > { %v1533_v51 = vmul.f32 %v1532_v49, %v1530_v41  ;;  %v852_v5 = vshll.u32 %v3078_v21, %v846_v15  ;;  %v853_v59 = vshrl.u32 %v3079_v29, %v847_v13  ;;  %v1967_v38 = vadd.f32 1.0, %v625_v25 }
  0xe9   : > { %v3984_v18 = vshrl.u32 %v1408_v20, 30  ;;  %v855_v2 = vshll.u32 %v3079_v29, %v846_v15  ;;  %v858_v45 = vshll.u32 %v3080_v32, %v846_v15  ;;  %v856_v12 = vshrl.u32 %v3080_v32, %v847_v13 }
  0xea   : > { %v1534_v10 = vxor.u32 2147483648, %v1533_v51  ;;  %v859_v34 = vshrl.u32 %v3081_v37, %v847_v13  ;;  %v861_v57 = vshll.u32 %v3081_v37, %v846_v15  ;;  %v1983_v55 = vmul.f32 0.5, %v1967_v38 }
  0xeb   : > { %v1410_v50 = vshll.u32 %v3984_v18, 30  ;;  %v848_v33 = vshrl.u32 %v3077_v19, %v847_v13  ;;  %v862_v1 = vshrl.u32 %v3082_v43, %v847_v13  ;;  %v851_v31 = vor.u32 %v850_v46, %v849_v22 }
  0xec   : > { %v1535_v9 = vsel %vm1452_vm15, %v1534_v10, %v1533_v51  ;;  %v854_v48 = vor.u32 %v853_v59, %v852_v5  ;;  %v860_v4 = vor.u32 %v859_v34, %v858_v45  ;;  %v2015_v53 = vsel %vm1999_vm5, %v1983_v55, 0.0  ;;  %v4032_v59 = vld [vmem:[%s3178_s13 + $0x68] sm:$0xff] }
  0xed   : > { %v1538_v36 = vsel %vm3968_vm8, %v3698_v26, %v1535_v9  ;;  %v4000_v24 = vsub.s32 %v1407_v17, %v1410_v50  ;;  %vm864_vm9 = vcmp.lt.s32.totalorder %v845_v47, 1  ;;  %2512 = vst.msk [vmem:[%s3594_s16 + $0x10] sm:$0xff] %vm2509_vm7, %v2015_v53  ;;  %2264 = vperm.xlu0 %2867, %v2015_v53   ;;  %v857_v60 = vor.u32 %v856_v12, %v855_v2 }
  0xee   : > { %2926 = vcosq.f32 %v1538_v36  ;;  %v863_v15 = vor.u32 %v862_v1, %v861_v57  ;;  %v880_v27 = vshll.u32 %v840_v14, 8  ;;  %vm866_vm10 = vcmp.lt.s32.totalorder %v845_v47, 3 }
  0xef   : > { %2928 = vsinq.f32 %v1538_v36  ;;  %v1413_v63 = vsub.s32 0, %v4000_v24  ;;  %vm867_vm11 = vcmp.lt.s32.totalorder %v845_v47, 4  ;;  %vm865_vm12 = vcmp.lt.s32.totalorder %v845_v47, 2 }
  0xf0   : > { %v869_v6 = vsel %vm867_vm11, %v857_v60, 2102212464  ;;  %v872_v11 = vsel %vm864_vm9, %v851_v31, %v854_v48  ;;  %v873_v35 = vsel %vm867_vm11, %v860_v4, 920167782  ;;  %v1543_v8 = vand.u32 3, %v1539_v58 }
  0xf1   : > { %v2686_v3 = vmin.u32 %v1413_v63, %v4000_v24  ;;  %v868_v13 = vsel %vm864_vm9, %v848_v33, %v851_v31  ;;  %v288_v39 = vmul.f32 3.1415927, %v4009_v23  ;;  %v870_v49 = vsel %vm866_vm10, %v854_v48, %v869_v6 }
  0xf2   : > { %v874_v30 = vsel %vm866_vm10, %v857_v60, %v873_v35  ;;  %v876_v44 = vsel %vm864_vm9, %v854_v48, %v857_v60  ;;  %v877_v52 = vsel %vm867_vm11, %v863_v15, 1326507024  ;;  %v871_v41 = vsel %vm865_vm12, %v868_v13, %v870_v49 }
  0xf3   : > { %v1415_v17 = vclz %v2686_v3  ;;  %v875_v14 = vsel %vm865_vm12, %v872_v11, %v874_v30  ;;  %v878_v0 = vsel %vm866_vm10, %v860_v4, %v877_v52  ;;  %v4026_v51 = vmul.f32 0.2, %v288_v39  ;;  %v3006_v30 = vld [vmem:[%s3178_s13 + $0x58] sm:$0xff] }
  0xf4   : > { %v879_v58 = vsel %vm865_vm12, %v876_v44, %v878_v0  ;;  %v4019_v7 = vmul.u32.u64.low %v880_v27, %v875_v14  ;;  %v4020_v20 = vmul.u32.u64.high %v880_v27, %v875_v14, %v4019_v7  ;;  %vm1542_vm13 = vweird.f32 %v3698_v26 }
  0xf5   : > { %v2687_v22 = vadd.s32 4294967294, %v1415_v17  ;;  %v4023_v46 = vmul.u32.u64.low %v880_v27, %v879_v58  ;;  %v4024_v25 = vmul.u32.u64.high %v880_v27, %v879_v58, %v4023_v46  ;;  %vm1545_vm15 = vcmp.eq.s32.totalorder %v1543_v8, 0 }
  0xf6   : > { %vm1548_vm0 = vcmp.eq.s32.totalorder %v1543_v8, 2  ;;  %v1403_v5 = vadd.s32 %v3940_v28, %v3950_v61  ;;  %v887_v47 = vmul.u32 %v880_v27, %v871_v41  ;;  %v297_v38 = vmul.f32 3.1415927, %v4032_v59 }
  0xf7   : > { %vm2688_vm14 = vcmp.lt.s32.totalorder %v2687_v22, 0  ;;  %v890_v10 = vadd.s32 1, %v4020_v20  ;;  %v729_v12 = vand.u32 2147483647, %v4026_v51  ;;  %v732_v34 = vand.u32 2139095040, %v4026_v51 }
  0xf8   : > { %v2927_v2 = vpop.eup %2926  ;;  %v1418_v45 = vsel %vm2688_vm14, 0, %v2687_v22  ;;  %vm1544_vm2 = vcmp.lt.s32.totalorder %v1543_v8, 2  ;;  %v1433_v1 = vsub.s32 4, %v3984_v18  ;;  %vm889_vm3 = vc.u32 %v4024_v25, %v4019_v7 }
  0xf9   : > { %v2929_v57 = vpop.eup %2928  ;;  %v1549_v55 = vxor.u32 2147483648, %v2927_v2  ;;  %v1419_v50 = vsub.s32 32, %v1418_v45  ;;  %v1420_v33 = vshll.u32 %v4000_v24, %v1418_v45  ;;  %v1423_v28 = vsub.s32 4294967266, %v1418_v45 }
  0xfa   : > { %v1546_v61 = vxor.u32 2147483648, %v2929_v57  ;;  %v891_v4 = vsel %vm889_vm3, %v890_v10, %v4020_v20  ;;  %v733_v60 = vshrl.u32 %v732_v34, 23  ;;  %v4045_v24 = vmul.f32 0.2, %v297_v38 }
  0xfb   : > { %v1550_v9 = vsel %vm1548_vm0, %v1549_v55, %v2929_v57  ;;  %v1421_v31 = vshrl.u32 %v1403_v5, %v1419_v50  ;;  %v1424_v48 = vadd.s32 127, %v1423_v28  ;;  %v892_v36 = vadd.s32 %v891_v4, %v887_v47 }
  0xfc   : > { %v1547_v53 = vsel %vm1545_vm15, %v2927_v2, %v1546_v61  ;;  %v736_v6 = vand.u32 8388607, %v729_v12  ;;  %vm1349_vm1 = vcmp.lt.s32.totalorder %v3823_v54, 0  ;;  %v2661_v3 = vadd.s32 4294967169, %v733_v60 }
  0xfd   : > { %v1551_v15 = vsel %vm1544_vm2, %v1547_v53, %v1550_v9  ;;  %v1422_v27 = vor.u32 %v1421_v31, %v1420_v33  ;;  %v1425_v63 = vshll.u32 %v1424_v48, 23  ;;  %v893_v35 = vadd.s32 536870912, %v892_v36 }
  0xfe   : > { %v1552_v11 = vsel %vm1542_vm13, nan, %v1551_v15  ;;  %v1434_v49 = vsel %vm1349_vm1, %v1433_v1, %v3984_v18  ;;  %vm2008_vm4 = vcmp.lt.f32.partialorder %v3006_v30, 5.0  ;;  %v739_v52 = vadd.s32 1, %v2661_v3 }
  0xff   : > { %v1976_v8 = vadd.f32 1.0, %v1552_v11  ;;  %v1426_v13 = vor.u32 4788187, %v1425_v63  ;;  %v1429_v39 = vcvt.s32.f32 %v1422_v27  ;;  %v4056_v44 = vshrl.u32 %v893_v35, 30 }
 0x100   : > { %v1659_v26 = vand.u32 2139095040, %v4045_v24  ;;  %vm4061_vm5 = vcmp.le.f32.partialorder %v1347_v16, 0.7853982  ;;  %v737_v41 = vor.u32 8388608, %v736_v6  ;;  %vm740_vm6 = vcmp.gt.s32.totalorder %v739_v52, 0 }
 0x101   : > { %v1992_v17 = vmul.f32 0.5, %v1976_v8  ;;  %v1427_v0 = vand.u32 2147483647, %v1426_v13  ;;  %v1436_v18 = vsel %vm4061_vm5, 0, %v1434_v49  ;;  %v895_v58 = vshll.u32 %v4056_v44, 30 }
 0x102   : > { %v1656_v20 = vand.u32 2147483647, %v4045_v24  ;;  %v741_v5 = vsel %vm740_vm6, %v739_v52, 0  ;;  %v1660_v47 = vshrl.u32 %v1659_v26, 23  ;;  %v4073_v45 = vand.u32 3, %v1436_v18 }
 0x103   : > { %v2024_v22 = vsel %vm2008_vm4, %v1992_v17, 0.0  ;;  %v1430_v46 = vmul.f32 %v1429_v39, %v1427_v0  ;;  %v4071_v16 = vsub.s32 %v892_v36, %v895_v58  ;;  %v743_v38 = vand.u32 31, %v741_v5 }
 0x104   : > { %2521 = vst.msk [vmem:[%s3594_s16 + $0x58] sm:$0xff] %vm2509_vm7, %v2024_v22  ;;  %2309 = vperm.xlu1 %2868, %v2024_v22   ;;  %v888_v10 = vadd.s32 %v4019_v7, %v4024_v25  ;;  %v4077_v34 = vshll.u32 %v737_v41, 8  ;;  %v918_v55 = vsub.s32 4, %v4056_v44  ;;  %v4083_v33 = vand.u32 8388607, %v1656_v20 }
 0x105   : > { %v1431_v2 = vxor.u32 2147483648, %v1430_v46  ;;  %v898_v57 = vsub.s32 0, %v4071_v16  ;;  %v744_v50 = vsub.s32 32, %v743_v38  ;;  %v742_v61 = vshrl.u32 %v741_v5, 5 }
 0x106   : > { %v746_v1 = vshll.u32 %v3077_v19, %v743_v38  ;;  %v2697_v9 = vadd.s32 4294967169, %v1660_v47  ;;  %vm834_vm8 = vcmp.lt.s32.totalorder %v3875_v40, 0  ;;  %v749_v31 = vshll.u32 %v3078_v21, %v743_v38 }
 0x107   : > { %v1432_v28 = vsel %vm1349_vm1, %v1431_v2, %v1430_v46  ;;  %v2666_v25 = vmin.u32 %v898_v57, %v4071_v16  ;;  %v752_v48 = vshll.u32 %v3079_v29, %v743_v38  ;;  %v745_v4 = vshrl.u32 %v3077_v19, %v744_v50 }
 0x108   : > { %v1435_v7 = vsel %vm4061_vm5, %v3823_v54, %v1432_v28  ;;  %v747_v53 = vshrl.u32 %v3078_v21, %v744_v50  ;;  %v755_v36 = vshll.u32 %v3080_v32, %v743_v38  ;;  %v750_v15 = vshrl.u32 %v3079_v29, %v744_v50 }
 0x109   : > { %2930 = vcosq.f32 %v1435_v7  ;;  %v900_v60 = vclz %v2666_v25  ;;  %v753_v27 = vshrl.u32 %v3080_v32, %v744_v50  ;;  %vm1445_vm9 = vcmp.eq.s32.totalorder %v4073_v45, 2 }
 0x10a   : > { %2932 = vsinq.f32 %v1435_v7  ;;  %v748_v63 = vor.u32 %v747_v53, %v746_v1  ;;  %v756_v6 = vshrl.u32 %v3081_v37, %v744_v50  ;;  %v758_v11 = vshll.u32 %v3081_v37, %v743_v38 }
 0x10b   : > { %v759_v35 = vshrl.u32 %v3082_v43, %v744_v50  ;;  %vm1442_vm10 = vcmp.eq.s32.totalorder %v4073_v45, 0  ;;  %v2667_v3 = vadd.s32 4294967294, %v900_v60  ;;  %v751_v8 = vor.u32 %v750_v15, %v749_v31 }
 0x10c   : > { %v754_v13 = vor.u32 %v753_v27, %v752_v48  ;;  %vm761_vm11 = vcmp.lt.s32.totalorder %v742_v61, 1  ;;  %vm1441_vm12 = vcmp.lt.s32.totalorder %v4073_v45, 2  ;;  %v757_v39 = vor.u32 %v756_v6, %v755_v36 }
 0x10d   : > { %v760_v49 = vor.u32 %v759_v35, %v758_v11  ;;  %vm762_vm13 = vcmp.lt.s32.totalorder %v742_v61, 2  ;;  %vm763_vm15 = vcmp.lt.s32.totalorder %v742_v61, 3  ;;  %vm1439_vm0 = vweird.f32 %v3823_v54 }
 0x10e   : > { %vm2668_vm14 = vcmp.lt.s32.totalorder %v2667_v3, 0  ;;  %vm764_vm2 = vcmp.lt.s32.totalorder %v742_v61, 4  ;;  %v765_v30 = vsel %vm761_vm11, %v745_v4, %v748_v63  ;;  %v769_v52 = vsel %vm761_vm11, %v748_v63, %v751_v8 }
 0x10f   : > { %v903_v26 = vsel %vm2668_vm14, 0, %v2667_v3  ;;  %v766_v17 = vsel %vm764_vm2, %v754_v13, 2102212464  ;;  %v770_v14 = vsel %vm764_vm2, %v757_v39, 920167782  ;;  %v773_v0 = vsel %vm761_vm11, %v751_v8, %v754_v13 }
 0x110   : > { %vm4109_vm3 = vcmp.le.f32.partialorder %v832_v42, 0.7853982  ;;  %v904_v18 = vsub.s32 32, %v903_v26  ;;  %v905_v58 = vshll.u32 %v4071_v16, %v903_v26  ;;  %v908_v22 = vsub.s32 4294967266, %v903_v26 }
 0x111   : > { %v767_v46 = vsel %vm763_vm15, %v751_v8, %v766_v17  ;;  %v4118_v5 = vsel %vm834_vm8, %v918_v55, %v4056_v44  ;;  %v771_v47 = vsel %vm763_vm15, %v754_v13, %v770_v14  ;;  %v774_v38 = vsel %vm764_vm2, %v760_v49, 1326507024 }
 0x112   : > { %v1666_v2 = vadd.s32 1, %v2697_v9  ;;  %v906_v57 = vshrl.u32 %v888_v10, %v904_v18  ;;  %v909_v42 = vadd.s32 127, %v908_v22  ;;  %v772_v50 = vsel %vm762_vm13, %v769_v52, %v771_v47 }
 0x113   : > { %v775_v28 = vsel %vm763_vm15, %v757_v39, %v774_v38  ;;  %v2931_v1 = vpop.eup %2930  ;;  %vm2007_vm1 = vcmp.lt.f32.partialorder %v3808_v62, 5.0  ;;  %v768_v16 = vsel %vm762_vm13, %v765_v30, %v767_v46  ;;  %v1664_v13 = vor.u32 8388608, %v4083_v33  ;;  %v4147_v39 = vld [vmem:[%s3178_s13 + $0x60] sm:$0xff] }
 0x114   : > { %v776_v7 = vsel %vm762_vm13, %v773_v0, %v775_v28  ;;  %v4127_v44 = vmul.u32.u64.low %v4077_v34, %v772_v50  ;;  %v4128_v55 = vmul.u32.u64.high %v4077_v34, %v772_v50, %v4127_v44  ;;  %v2933_v25 = vpop.eup %2932  ;;  %v1446_v9 = vxor.u32 2147483648, %v2931_v1 }
 0x115   : > { %v907_v10 = vor.u32 %v906_v57, %v905_v58  ;;  %v910_v31 = vshll.u32 %v909_v42, 23  ;;  %vm1667_vm4 = vcmp.gt.s32.totalorder %v1666_v2, 0  ;;  %v1443_v48 = vxor.u32 2147483648, %v2933_v25 }
 0x116   : > { %v4132_v4 = vmul.u32.u64.low %v4077_v34, %v776_v7  ;;  %v4133_v53 = vmul.u32.u64.high %v4077_v34, %v776_v7, %v4132_v4  ;;  %v1668_v36 = vsel %vm1667_vm4, %v1666_v2, 0  ;;  %v1447_v61 = vsel %vm1445_vm9, %v1446_v9, %v2933_v25 }
 0x117   : > { %v911_v60 = vor.u32 4788187, %v910_v31  ;;  %v914_v15 = vcvt.s32.f32 %v907_v10  ;;  %v784_v27 = vmul.u32 %v4077_v34, %v768_v16  ;;  %v1444_v63 = vsel %vm1442_vm10, %v2931_v1, %v1443_v48 }
 0x118   : > { %v787_v6 = vadd.s32 1, %v4128_v55  ;;  %v4141_v11 = vshrl.u32 %v1668_v36, 5  ;;  %v1670_v35 = vand.u32 31, %v1668_v36  ;;  %v1448_v3 = vsel %vm1441_vm12, %v1444_v63, %v1447_v61 }
 0x119   : > { %v912_v8 = vand.u32 2147483647, %v911_v60  ;;  %v296_v49 = vmul.f32 3.1415927, %v4147_v39  ;;  %v1449_v34 = vsel %vm1439_vm0, nan, %v1448_v3  ;;  %v921_v30 = vsel %vm4109_vm3, 0, %v4118_v5 }
 0x11a   : > { %vm786_vm5 = vc.u32 %v4133_v53, %v4127_v44  ;;  %v1671_v52 = vsub.s32 32, %v1670_v35  ;;  %v1975_v45 = vadd.f32 1.0, %v1449_v34  ;;  %v1673_v33 = vshll.u32 %v3077_v19, %v1670_v35 }
 0x11b   : > { %v915_v26 = vmul.f32 %v914_v15, %v912_v8  ;;  %v788_v17 = vsel %vm786_vm5, %v787_v6, %v4128_v55  ;;  %v1676_v54 = vshll.u32 %v3078_v21, %v1670_v35  ;;  %vm1688_vm6 = vcmp.lt.s32.totalorder %v4141_v11, 1 }
 0x11c   : > { %v789_v14 = vadd.s32 %v788_v17, %v784_v27  ;;  %v1674_v0 = vshrl.u32 %v3078_v21, %v1671_v52  ;;  %v1991_v18 = vmul.f32 0.5, %v1975_v45  ;;  %v1677_v22 = vshrl.u32 %v3079_v29, %v1671_v52 }
 0x11d   : > { %v916_v58 = vxor.u32 2147483648, %v915_v26  ;;  %v1679_v46 = vshll.u32 %v3079_v29, %v1670_v35  ;;  %v1680_v38 = vshrl.u32 %v3080_v32, %v1671_v52  ;;  %v1682_v2 = vshll.u32 %v3080_v32, %v1670_v35 }
 0x11e   : > { %v790_v5 = vadd.s32 536870912, %v789_v14  ;;  %v1675_v47 = vor.u32 %v1674_v0, %v1673_v33  ;;  %v2023_v57 = vsel %vm2007_vm1, %v1991_v18, 0.0  ;;  %v1678_v50 = vor.u32 %v1677_v22, %v1676_v54 }
 0x11f   : > { %v917_v42 = vsel %vm834_vm8, %v916_v58, %v915_v26  ;;  %v1683_v28 = vshrl.u32 %v3081_v37, %v1671_v52  ;;  %2520 = vst.msk [vmem:[%s3594_s16 + $0x50] sm:$0xff] %vm2509_vm7, %v2023_v57  ;;  %2304 = vperm.xlu0 %2867, %v2023_v57   ;;  %v1672_v7 = vshrl.u32 %v3077_v19, %v1671_v52  ;;  %vm1690_vm8 = vcmp.lt.s32.totalorder %v4141_v11, 3 }
 0x120   : > { %v920_v1 = vsel %vm4109_vm3, %v3875_v40, %v917_v42  ;;  %v4176_v16 = vshrl.u32 %v790_v5, 30  ;;  %v1685_v62 = vshll.u32 %v3081_v37, %v1670_v35  ;;  %v1681_v55 = vor.u32 %v1680_v38, %v1679_v46 }
 0x121   : > { %2934 = vcosq.f32 %v920_v1  ;;  %v1684_v25 = vor.u32 %v1683_v28, %v1682_v2  ;;  %v1686_v9 = vshrl.u32 %v3082_v43, %v1671_v52  ;;  %vm1691_vm9 = vcmp.lt.s32.totalorder %v4141_v11, 4 }
 0x122   : > { %2936 = vsinq.f32 %v920_v1  ;;  %v792_v10 = vshll.u32 %v4176_v16, 30  ;;  %vm1689_vm10 = vcmp.lt.s32.totalorder %v4141_v11, 2  ;;  %v1696_v31 = vsel %vm1688_vm6, %v1675_v47, %v1678_v50 }
 0x123   : > { %v1687_v41 = vor.u32 %v1686_v9, %v1685_v62  ;;  %v1704_v48 = vshll.u32 %v1664_v13, 8  ;;  %v1693_v36 = vsel %vm1691_vm9, %v1681_v55, 2102212464  ;;  %v1697_v61 = vsel %vm1691_vm9, %v1684_v25, 920167782 }
 0x124   : > { %v4187_v4 = vsub.s32 %v789_v14, %v792_v10  ;;  %v925_v60 = vand.u32 3, %v921_v30  ;;  %v1692_v15 = vsel %vm1688_vm6, %v1672_v7, %v1675_v47  ;;  %v1698_v27 = vsel %vm1690_vm8, %v1681_v55, %v1697_v61 }
 0x125   : > { %v4193_v63 = vmul.f32 0.2, %v296_v49  ;;  %v1699_v35 = vsel %vm1689_vm10, %v1696_v31, %v1698_v27  ;;  %v1700_v3 = vsel %vm1688_vm6, %v1678_v50, %v1681_v55  ;;  %v1701_v8 = vsel %vm1691_vm9, %v1687_v41, 1326507024 }
 0x126   : > { %v795_v6 = vsub.s32 0, %v4187_v4  ;;  %v1694_v13 = vsel %vm1690_vm8, %v1678_v50, %v1693_v36  ;;  %v1702_v34 = vsel %vm1690_vm8, %v1684_v25, %v1701_v8  ;;  %vm924_vm11 = vweird.f32 %v3875_v40  ;;  %v4246_v8 = vld [vmem:[%s3178_s13 + $0x38] sm:$0xff] }
 0x127   : > { %v4204_v30 = vmul.u32.u64.low %v1704_v48, %v1699_v35  ;;  %v4205_v52 = vmul.u32.u64.high %v1704_v48, %v1699_v35, %v4204_v30  ;;  %v1703_v45 = vsel %vm1689_vm10, %v1700_v3, %v1702_v34  ;;  %v1556_v26 = vand.u32 2139095040, %v4193_v63 }
 0x128   : > { %v2662_v49 = vmin.u32 %v795_v6, %v4187_v4  ;;  %v1695_v33 = vsel %vm1689_vm10, %v1692_v15, %v1694_v13  ;;  %v4215_v14 = vmul.u32.u64.low %v1704_v48, %v1703_v45  ;;  %v4216_v0 = vmul.u32.u64.high %v1704_v48, %v1703_v45, %v4215_v14 }
 0x129   : > { %vm926_vm12 = vcmp.lt.s32.totalorder %v925_v60, 2  ;;  %vm930_vm13 = vcmp.eq.s32.totalorder %v925_v60, 2  ;;  %v1714_v18 = vadd.s32 1, %v4205_v52  ;;  %v1557_v58 = vshrl.u32 %v1556_v26, 23 }
 0x12a   : > { %v797_v17 = vclz %v2662_v49  ;;  %vm927_vm15 = vcmp.eq.s32.totalorder %v925_v60, 0  ;;  %v785_v5 = vadd.s32 %v4127_v44, %v4133_v53  ;;  %v1711_v2 = vmul.u32 %v1704_v48, %v1695_v33 }
 0x12b   : > { %v2935_v54 = vpop.eup %2934  ;;  %v1553_v11 = vand.u32 2147483647, %v4193_v63  ;;  %v2693_v57 = vadd.s32 4294967169, %v1557_v58  ;;  %v815_v50 = vsub.s32 4, %v4176_v16  ;;  %vm1713_vm14 = vc.u32 %v4216_v0, %v4204_v30 }
 0x12c   : > { %v2937_v22 = vpop.eup %2936  ;;  %v931_v46 = vxor.u32 2147483648, %v2935_v54  ;;  %v2663_v47 = vadd.s32 4294967294, %v797_v17  ;;  %v1715_v7 = vsel %vm1713_vm14, %v1714_v18, %v4205_v52  ;;  %vm2002_vm3 = vcmp.lt.f32.partialorder %v3855_v56, 5.0 }
 0x12d   : > { %v928_v38 = vxor.u32 2147483648, %v2937_v22  ;;  %v1563_v62 = vadd.s32 1, %v2693_v57  ;;  %v1716_v10 = vadd.s32 %v1715_v7, %v1711_v2  ;;  %v1560_v41 = vand.u32 8388607, %v1553_v11 }
 0x12e   : > { %v932_v42 = vsel %vm930_vm13, %v931_v46, %v2937_v22  ;;  %vm2664_vm0 = vcmp.lt.s32.totalorder %v2663_v47, 0  ;;  %vm731_vm1 = vcmp.lt.s32.totalorder %v4026_v51, 0  ;;  %vm4236_vm4 = vcmp.le.f32.partialorder %v729_v12, 0.7853982 }
 0x12f   : > { %v929_v28 = vsel %vm927_vm15, %v2935_v54, %v928_v38  ;;  %v800_v1 = vsel %vm2664_vm0, 0, %v2663_v47  ;;  %vm1564_vm2 = vcmp.gt.s32.totalorder %v1563_v62, 0  ;;  %v816_v35 = vsel %vm731_vm1, %v815_v50, %v4176_v16 }
 0x130   : > { %v933_v44 = vsel %vm926_vm12, %v929_v28, %v932_v42  ;;  %v801_v53 = vsub.s32 32, %v800_v1  ;;  %v802_v55 = vshll.u32 %v4187_v4, %v800_v1  ;;  %v805_v25 = vsub.s32 4294967266, %v800_v1 }
 0x131   : > { %v934_v9 = vsel %vm924_vm11, nan, %v933_v44  ;;  %v1565_v61 = vsel %vm1564_vm2, %v1563_v62, 0  ;;  %v1717_v4 = vadd.s32 536870912, %v1716_v10  ;;  %v291_v13 = vmul.f32 3.1415927, %v4246_v8 }
 0x132   : > { %v1970_v31 = vadd.f32 1.0, %v934_v9  ;;  %v803_v48 = vshrl.u32 %v785_v5, %v801_v53  ;;  %v806_v36 = vadd.s32 127, %v805_v25  ;;  %v1567_v60 = vand.u32 31, %v1565_v61 }
 0x133   : > { %v4243_v3 = vshrl.u32 %v1717_v4, 30  ;;  %v1561_v12 = vor.u32 8388608, %v1560_v41  ;;  %v1566_v26 = vshrl.u32 %v1565_v61, 5  ;;  %v818_v38 = vsel %vm4236_vm4, 0, %v816_v35 }
 0x134   : > { %v1986_v15 = vmul.f32 0.5, %v1970_v31  ;;  %v804_v27 = vor.u32 %v803_v48, %v802_v55  ;;  %v807_v6 = vshll.u32 %v806_v36, 23  ;;  %v1568_v56 = vsub.s32 32, %v1567_v60 }
 0x135   : > { %v1719_v45 = vshll.u32 %v4243_v3, 30  ;;  %v1570_v17 = vshll.u32 %v3077_v19, %v1567_v60  ;;  %v1573_v14 = vshll.u32 %v3078_v21, %v1567_v60  ;;  %v1579_v18 = vshll.u32 %v3080_v32, %v1567_v60 }
 0x136   : > { %v2018_v34 = vsel %vm2002_vm3, %v1986_v15, 0.0  ;;  %v808_v52 = vor.u32 4788187, %v807_v6  ;;  %v811_v49 = vcvt.s32.f32 %v804_v27  ;;  %v1571_v16 = vshrl.u32 %v3078_v21, %v1568_v56 }
 0x137   : > { %2515 = vst.msk [vmem:[%s3594_s16 + $0x28] sm:$0xff] %vm2509_vm7, %v2018_v34  ;;  %2279 = vperm.xlu1 %2868, %v2018_v34   ;;  %v1574_v54 = vshrl.u32 %v3079_v29, %v1568_v56  ;;  %v4257_v58 = vsub.s32 %v1716_v10, %v1719_v45  ;;  %v1576_v22 = vshll.u32 %v3079_v29, %v1567_v60  ;;  %v4264_v2 = vshll.u32 %v1561_v12, 8 }
 0x138   : > { %v809_v33 = vand.u32 2147483647, %v808_v52  ;;  %v1577_v46 = vshrl.u32 %v3080_v32, %v1568_v56  ;;  %v1580_v5 = vshrl.u32 %v3081_v37, %v1568_v56  ;;  %v1569_v42 = vshrl.u32 %v3077_v19, %v1568_v56 }
 0x139   : > { %v1722_v57 = vsub.s32 0, %v4257_v58  ;;  %v1572_v50 = vor.u32 %v1571_v16, %v1570_v17  ;;  %v1582_v28 = vshll.u32 %v3081_v37, %v1567_v60  ;;  %v1575_v7 = vor.u32 %v1574_v54, %v1573_v14 }
 0x13a   : > { %v812_v47 = vmul.f32 %v811_v49, %v809_v33  ;;  %v1581_v62 = vor.u32 %v1580_v5, %v1579_v18  ;;  %v1583_v44 = vshrl.u32 %v3082_v43, %v1568_v56  ;;  %v1578_v55 = vor.u32 %v1577_v46, %v1576_v22 }
 0x13b   : > { %v2698_v53 = vmin.u32 %v1722_v57, %v4257_v58  ;;  %vm1585_vm5 = vcmp.lt.s32.totalorder %v1566_v26, 1  ;;  %v4271_v25 = vmul.f32 0.2, %v291_v13  ;;  %vm1587_vm6 = vcmp.lt.s32.totalorder %v1566_v26, 3 }
 0x13c   : > { %v813_v1 = vxor.u32 2147483648, %v812_v47  ;;  %v1584_v10 = vor.u32 %v1583_v44, %v1582_v28  ;;  %vm1588_vm8 = vcmp.lt.s32.totalorder %v1566_v26, 4  ;;  %vm1586_vm9 = vcmp.lt.s32.totalorder %v1566_v26, 2 }
 0x13d   : > { %v1724_v31 = vclz %v2698_v53  ;;  %v1590_v48 = vsel %vm1588_vm8, %v1578_v55, 2102212464  ;;  %v1589_v36 = vsel %vm1585_vm5, %v1569_v42, %v1572_v50  ;;  %v1593_v61 = vsel %vm1585_vm5, %v1572_v50, %v1575_v7 }
 0x13e   : > { %v814_v9 = vsel %vm731_vm1, %v813_v1, %v812_v47  ;;  %v1594_v4 = vsel %vm1588_vm8, %v1581_v62, 920167782  ;;  %v1591_v15 = vsel %vm1587_vm6, %v1575_v7, %v1590_v48  ;;  %v1712_v40 = vadd.s32 %v4204_v30, %v4216_v0 }
 0x13f   : > { %v817_v41 = vsel %vm4236_vm4, %v4026_v51, %v814_v9  ;;  %v2699_v60 = vadd.s32 4294967294, %v1724_v31  ;;  %v1595_v27 = vsel %vm1587_vm6, %v1578_v55, %v1594_v4  ;;  %v1597_v35 = vsel %vm1585_vm5, %v1575_v7, %v1578_v55 }
 0x140   : > { %2938 = vcosq.f32 %v817_v41  ;;  %v1596_v6 = vsel %vm1586_vm9, %v1593_v61, %v1595_v27  ;;  %v1598_v56 = vsel %vm1588_vm8, %v1584_v10, 1326507024  ;;  %v822_v49 = vand.u32 3, %v818_v38 }
 0x141   : > { %2940 = vsinq.f32 %v817_v41  ;;  %vm2700_vm10 = vcmp.lt.s32.totalorder %v2699_v60, 0  ;;  %v1599_v13 = vsel %vm1587_vm6, %v1581_v62, %v1598_v56  ;;  %v1592_v45 = vsel %vm1586_vm9, %v1589_v36, %v1591_v15 }
 0x142   : > { %v4291_v34 = vmul.u32.u64.low %v4264_v2, %v1596_v6  ;;  %v4292_v52 = vmul.u32.u64.high %v4264_v2, %v1596_v6, %v4291_v34  ;;  %v1727_v12 = vsel %vm2700_vm10, 0, %v2699_v60  ;;  %v1600_v30 = vsel %vm1586_vm9, %v1597_v35, %v1599_v13 }
 0x143   : > { %v1728_v0 = vsub.s32 32, %v1727_v12  ;;  %v1729_v17 = vshll.u32 %v4257_v58, %v1727_v12  ;;  %v1732_v16 = vsub.s32 4294967266, %v1727_v12  ;;  %v1041_v33 = vand.u32 2139095040, %v4271_v25 }
 0x144   : > { %vm4300_vm11 = vcmp.le.f32.partialorder %v1656_v20, 0.7853982  ;;  %v1742_v54 = vsub.s32 4, %v4243_v3  ;;  %v4306_v18 = vmul.u32.u64.low %v4264_v2, %v1600_v30  ;;  %v4307_v22 = vmul.u32.u64.high %v4264_v2, %v1600_v30, %v4306_v18  ;;  %v4313_v20 = vld [vmem:[%s3178_s13 + $0x30] sm:$0xff] }
 0x145   : > { %v1730_v26 = vshrl.u32 %v1712_v40, %v1728_v0  ;;  %v1733_v46 = vadd.s32 127, %v1732_v16  ;;  %v1611_v5 = vadd.s32 1, %v4292_v52  ;;  %v1042_v58 = vshrl.u32 %v1041_v33, 23 }
 0x146   : > { %vm823_vm12 = vcmp.lt.s32.totalorder %v822_v49, 2  ;;  %vm1658_vm13 = vcmp.lt.s32.totalorder %v4045_v24, 0  ;;  %v1608_v47 = vmul.u32 %v4264_v2, %v1592_v45  ;;  %v290_v38 = vmul.f32 3.1415927, %v4313_v20 }
 0x147   : > { %vm824_vm15 = vcmp.eq.s32.totalorder %v822_v49, 0  ;;  %v1731_v57 = vor.u32 %v1730_v26, %v1729_v17  ;;  %v1734_v42 = vshll.u32 %v1733_v46, 23  ;;  %v2673_v50 = vadd.s32 4294967169, %v1042_v58 }
 0x148   : > { %vm827_vm0 = vcmp.eq.s32.totalorder %v822_v49, 2  ;;  %v1743_v1 = vsel %vm1658_vm13, %v1742_v54, %v4243_v3  ;;  %vm1610_vm14 = vc.u32 %v4307_v22, %v4291_v34  ;;  %v1038_v7 = vand.u32 2147483647, %v4271_v25 }
 0x149   : > { %v1735_v44 = vor.u32 4788187, %v1734_v42  ;;  %v1738_v53 = vcvt.s32.f32 %v1731_v57  ;;  %v1612_v55 = vsel %vm1610_vm14, %v1611_v5, %v4292_v52  ;;  %v1048_v41 = vadd.s32 1, %v2673_v50 }
 0x14a   : > { %v2939_v28 = vpop.eup %2938  ;;  %v1613_v10 = vadd.s32 %v1612_v55, %v1608_v47  ;;  %v4322_v31 = vmul.f32 0.2, %v290_v38  ;;  %vm821_vm2 = vweird.f32 %v4026_v51  ;;  %v1745_v3 = vsel %vm4300_vm11, 0, %v1743_v1 }
 0x14b   : > { %v2941_v62 = vpop.eup %2940  ;;  %v828_v2 = vxor.u32 2147483648, %v2939_v28  ;;  %v1736_v36 = vand.u32 2147483647, %v1735_v44  ;;  %v1045_v60 = vand.u32 8388607, %v1038_v7  ;;  %vm1049_vm3 = vcmp.gt.s32.totalorder %v1048_v41, 0 }
 0x14c   : > { %v825_v9 = vxor.u32 2147483648, %v2941_v62  ;;  %v1614_v4 = vadd.s32 536870912, %v1613_v10  ;;  %v1050_v40 = vsel %vm1049_vm3, %v1048_v41, 0  ;;  %v938_v56 = vand.u32 2139095040, %v4322_v31 }
 0x14d   : > { %v829_v48 = vsel %vm827_vm0, %v828_v2, %v2941_v62  ;;  %v1739_v27 = vmul.f32 %v1738_v53, %v1736_v36  ;;  %v1052_v51 = vand.u32 31, %v1050_v40  ;;  %vm2001_vm1 = vcmp.lt.f32.partialorder %v4009_v23, 5.0 }
 0x14e   : > { %v826_v61 = vsel %vm824_vm15, %v2939_v28, %v825_v9  ;;  %v4331_v35 = vshrl.u32 %v1614_v4, 30  ;;  %v4335_v12 = vand.u32 3, %v1745_v3  ;;  %v4338_v45 = vadd.s32 %v4291_v34, %v4307_v22 }
 0x14f   : > { %v830_v15 = vsel %vm823_vm12, %v826_v61, %v829_v48  ;;  %v1740_v52 = vxor.u32 2147483648, %v1739_v27  ;;  %v1046_v30 = vor.u32 8388608, %v1045_v60  ;;  %v1053_v0 = vsub.s32 32, %v1052_v51 }
 0x150   : > { %v831_v6 = vsel %vm821_vm2, nan, %v830_v15  ;;  %v1616_v49 = vshll.u32 %v4331_v35, 30  ;;  %v1055_v33 = vshll.u32 %v3077_v19, %v1052_v51  ;;  %v935_v54 = vand.u32 2147483647, %v4322_v31 }
 0x151   : > { %v1969_v13 = vadd.f32 1.0, %v831_v6  ;;  %v1741_v16 = vsel %vm1658_vm13, %v1740_v52, %v1739_v27  ;;  %v1058_v34 = vshll.u32 %v3078_v21, %v1052_v51  ;;  %v939_v22 = vshrl.u32 %v938_v56, 23 }
 0x152   : > { %v1744_v23 = vsel %vm4300_vm11, %v4045_v24, %v1741_v16  ;;  %v4348_v18 = vsub.s32 %v1613_v10, %v1616_v49  ;;  %v1056_v46 = vshrl.u32 %v3078_v21, %v1053_v0  ;;  %v1061_v5 = vshll.u32 %v3079_v29, %v1052_v51 }
 0x153   : > { %v1985_v17 = vmul.f32 0.5, %v1969_v13  ;;  %2942 = vcosq.f32 %v1744_v23  ;;  %v1051_v47 = vshrl.u32 %v1050_v40, 5  ;;  %v1059_v14 = vshrl.u32 %v3079_v29, %v1053_v0 }
 0x154   : > { %2944 = vsinq.f32 %v1744_v23  ;;  %v1619_v58 = vsub.s32 0, %v4348_v18  ;;  %vm1754_vm4 = vcmp.eq.s32.totalorder %v4335_v12, 2  ;;  %v1057_v38 = vor.u32 %v1056_v46, %v1055_v33 }
 0x155   : > { %v2017_v26 = vsel %vm2001_vm1, %v1985_v17, 0.0  ;;  %v1062_v57 = vshrl.u32 %v3080_v32, %v1053_v0  ;;  %v1064_v42 = vshll.u32 %v3080_v32, %v1052_v51  ;;  %v1065_v50 = vshrl.u32 %v3081_v37, %v1053_v0 }
 0x156   : > { %2514 = vst.msk [vmem:[%s3594_s16 + $0x20] sm:$0xff] %vm2509_vm7, %v2017_v26  ;;  %2274 = vperm.xlu0 %2867, %v2017_v26   ;;  %vm1751_vm5 = vcmp.eq.s32.totalorder %v4335_v12, 0  ;;  %v2694_v28 = vmin.u32 %v1619_v58, %v4348_v18  ;;  %v1054_v1 = vshrl.u32 %v3077_v19, %v1053_v0  ;;  %v4364_v62 = vshll.u32 %v1046_v30, 8 }
 0x157   : > { %v2669_v2 = vadd.s32 4294967169, %v939_v22  ;;  %vm1750_vm6 = vcmp.lt.s32.totalorder %v4335_v12, 2  ;;  %v1060_v44 = vor.u32 %v1059_v14, %v1058_v34  ;;  %v1063_v53 = vor.u32 %v1062_v57, %v1061_v5 }
 0x158   : > { %v1066_v55 = vor.u32 %v1065_v50, %v1064_v42  ;;  %v1067_v9 = vshll.u32 %v3081_v37, %v1052_v51  ;;  %vm1748_vm8 = vweird.f32 %v4045_v24  ;;  %v1621_v10 = vclz %v2694_v28 }
 0x159   : > { %v1068_v41 = vshrl.u32 %v3082_v43, %v1053_v0  ;;  %vm1070_vm9 = vcmp.lt.s32.totalorder %v1051_v47, 1  ;;  %v4372_v48 = vand.u32 8388607, %v935_v54  ;;  %vm1071_vm10 = vcmp.lt.s32.totalorder %v1051_v47, 2 }
 0x15a   : > { %vm1072_vm11 = vcmp.lt.s32.totalorder %v1051_v47, 3  ;;  %vm1073_vm12 = vcmp.lt.s32.totalorder %v1051_v47, 4  ;;  %v1078_v36 = vsel %vm1070_vm9, %v1057_v38, %v1060_v44  ;;  %v2695_v3 = vadd.s32 4294967294, %v1621_v10 }
 0x15b   : > { %v1069_v61 = vor.u32 %v1068_v41, %v1067_v9  ;;  %v1075_v4 = vsel %vm1073_vm12, %v1063_v53, 2102212464  ;;  %v1079_v60 = vsel %vm1073_vm12, %v1066_v55, 920167782  ;;  %v1074_v15 = vsel %vm1070_vm9, %v1054_v1, %v1057_v38 }
 0x15c   : > { %v1076_v27 = vsel %vm1072_vm11, %v1060_v44, %v1075_v4  ;;  %v1080_v40 = vsel %vm1072_vm11, %v1063_v53, %v1079_v60  ;;  %v945_v6 = vadd.s32 1, %v2669_v2  ;;  %vm1555_vm13 = vcmp.lt.s32.totalorder %v4193_v63, 0 }
 0x15d   : > { %vm2696_vm15 = vcmp.lt.s32.totalorder %v2695_v3, 0  ;;  %v1081_v51 = vsel %vm1071_vm10, %v1078_v36, %v1080_v40  ;;  %v1082_v56 = vsel %vm1070_vm9, %v1060_v44, %v1063_v53  ;;  %v1083_v13 = vsel %vm1073_vm12, %v1069_v61, 1326507024  ;;  %v2943_v52 = vpop.eup %2942 }
 0x15e   : > { %vm2010_vm0 = vcmp.lt.f32.partialorder %v4032_v59, 5.0  ;;  %v1624_v49 = vsel %vm2696_vm15, 0, %v2695_v3  ;;  %v1084_v30 = vsel %vm1072_vm11, %v1066_v55, %v1083_v13  ;;  %v2945_v16 = vpop.eup %2944  ;;  %v1755_v33 = vxor.u32 2147483648, %v2943_v52 }
 0x15f   : > { %v4384_v0 = vmul.u32.u64.low %v4364_v62, %v1081_v51  ;;  %v4385_v17 = vmul.u32.u64.high %v4364_v62, %v1081_v51, %v4384_v0  ;;  %v1625_v23 = vsub.s32 32, %v1624_v49  ;;  %v1626_v34 = vshll.u32 %v4348_v18, %v1624_v49 }
 0x160   : > { %v1629_v22 = vsub.s32 4294967266, %v1624_v49  ;;  %v1752_v26 = vxor.u32 2147483648, %v2945_v16  ;;  %v1077_v46 = vsel %vm1071_vm10, %v1074_v15, %v1076_v27  ;;  %v1085_v5 = vsel %vm1071_vm10, %v1082_v56, %v1084_v30 }
 0x161   : > { %vm946_vm14 = vcmp.gt.s32.totalorder %v945_v6, 0  ;;  %v1756_v58 = vsel %vm1754_vm4, %v1755_v33, %v2945_v16  ;;  %v1627_v14 = vshrl.u32 %v4338_v45, %v1625_v23  ;;  %v1639_v50 = vsub.s32 4, %v4331_v35 }
 0x162   : > { %v1630_v38 = vadd.s32 127, %v1629_v22  ;;  %v947_v57 = vsel %vm946_vm14, %v945_v6, 0  ;;  %v1753_v42 = vsel %vm1751_vm5, %v2943_v52, %v1752_v26  ;;  %v1096_v44 = vadd.s32 1, %v4385_v17 }
 0x163   : > { %v4398_v18 = vmul.u32.u64.low %v4364_v62, %v1085_v5  ;;  %v4399_v28 = vmul.u32.u64.high %v4364_v62, %v1085_v5, %v4398_v18  ;;  %v1757_v47 = vsel %vm1750_vm6, %v1753_v42, %v1756_v58  ;;  %v1628_v1 = vor.u32 %v1627_v14, %v1626_v34 }
 0x164   : > { %v1631_v2 = vshll.u32 %v1630_v38, 23  ;;  %v1758_v45 = vsel %vm1748_vm8, nan, %v1757_v47  ;;  %vm4408_vm2 = vcmp.le.f32.partialorder %v1553_v11, 0.7853982  ;;  %v1093_v55 = vmul.u32 %v4364_v62, %v1077_v46  ;;  %v2869_v47 = vld [vmem:[%s4915_s3] sm:$0xff]  }
 0x165   : > { %v949_v9 = vand.u32 31, %v947_v57  ;;  %v1978_v10 = vadd.f32 1.0, %v1758_v45  ;;  %v1635_v12 = vcvt.s32.f32 %v1628_v1  ;;  %v943_v36 = vor.u32 8388608, %v4372_v48  ;;  %v4455_v45 = vld [vmem:[%s3178_s13 + $0x78] sm:$0xff]  ;;  %2735 = vmatprep.subr.bf16.mxu0 %v2869_v47  ;;  %2753 = vmatprep.subr.bf16.mxu1 %v2869_v47 }
 0x166   : > { %v1632_v41 = vor.u32 4788187, %v1631_v2  ;;  %v1640_v3 = vsel %vm1555_vm13, %v1639_v50, %v4331_v35  ;;  %vm1095_vm3 = vc.u32 %v4399_v28, %v4384_v0  ;;  %v948_v27 = vshrl.u32 %v947_v57, 5  ;;  %2736 = vmatpush3.bf16.msra.mxu0 %v2869_v47  ;;  %2754 = vmatpush3.bf16.msra.mxu1 %v2869_v47 }
 0x167   : > { %v950_v24 = vsub.s32 32, %v949_v9  ;;  %v952_v11 = vshll.u32 %v3077_v19, %v949_v9  ;;  %v1994_v61 = vmul.f32 0.5, %v1978_v10  ;;  %v1097_v62 = vsel %vm1095_vm3, %v1096_v44, %v4385_v17 }
 0x168   : > { %v1633_v4 = vand.u32 2147483647, %v1632_v41  ;;  %v955_v60 = vshll.u32 %v3078_v21, %v949_v9  ;;  %v1098_v15 = vadd.s32 %v1097_v62, %v1093_v55  ;;  %v958_v51 = vshll.u32 %v3079_v29, %v949_v9 }
 0x169   : > { %v953_v48 = vshrl.u32 %v3078_v21, %v950_v24  ;;  %v956_v40 = vshrl.u32 %v3079_v29, %v950_v24  ;;  %v2026_v35 = vsel %vm2010_vm0, %v1994_v61, 0.0  ;;  %v959_v56 = vshrl.u32 %v3080_v32, %v950_v24 }
 0x16a   : > { %v1636_v6 = vmul.f32 %v1635_v12, %v1633_v4  ;;  %2523 = vst.msk [vmem:[%s3594_s16 + $0x68] sm:$0xff] %vm2509_vm7, %v2026_v35  ;;  %2319 = vperm.xlu1 %2868, %v2026_v35   ;;  %v1099_v13 = vadd.s32 536870912, %v1098_v15  ;;  %v961_v49 = vshll.u32 %v3080_v32, %v949_v9  ;;  %v4431_v30 = vshll.u32 %v943_v36, 8 }
 0x16b   : > { %v954_v52 = vor.u32 %v953_v48, %v952_v11  ;;  %v957_v16 = vor.u32 %v956_v40, %v955_v60  ;;  %v962_v33 = vshrl.u32 %v3081_v37, %v950_v24  ;;  %v964_v59 = vshll.u32 %v3081_v37, %v949_v9 }
 0x16c   : > { %v1637_v17 = vxor.u32 2147483648, %v1636_v6  ;;  %v1100_v23 = vshrl.u32 %v1099_v13, 30  ;;  %v951_v34 = vshrl.u32 %v3077_v19, %v950_v24  ;;  %v965_v22 = vshrl.u32 %v3082_v43, %v950_v24 }
 0x16d   : > { %vm967_vm1 = vcmp.lt.s32.totalorder %v948_v27, 1  ;;  %v960_v46 = vor.u32 %v959_v56, %v958_v51  ;;  %v963_v5 = vor.u32 %v962_v33, %v961_v49  ;;  %vm970_vm4 = vcmp.lt.s32.totalorder %v948_v27, 4 }
 0x16e   : > { %v1638_v26 = vsel %vm1555_vm13, %v1637_v17, %v1636_v6  ;;  %v1101_v14 = vshll.u32 %v1100_v23, 30  ;;  %v966_v38 = vor.u32 %v965_v22, %v964_v59  ;;  %vm969_vm5 = vcmp.lt.s32.totalorder %v948_v27, 3 }
 0x16f   : > { %v1641_v58 = vsel %vm4408_vm2, %v4193_v63, %v1638_v26  ;;  %vm968_vm6 = vcmp.lt.s32.totalorder %v948_v27, 2  ;;  %v975_v57 = vsel %vm967_vm1, %v954_v52, %v957_v16  ;;  %v976_v42 = vsel %vm970_vm4, %v963_v5, 920167782 }
 0x170   : > { %2946 = vcosq.f32 %v1641_v58  ;;  %v4444_v50 = vsub.s32 %v1098_v15, %v1101_v14  ;;  %v972_v18 = vsel %vm970_vm4, %v960_v46, 2102212464  ;;  %v1642_v1 = vsel %vm4408_vm2, 0, %v1640_v3 }
 0x171   : > { %2948 = vsinq.f32 %v1641_v58  ;;  %v971_v2 = vsel %vm967_vm1, %v951_v34, %v954_v52  ;;  %v977_v44 = vsel %vm969_vm5, %v960_v46, %v976_v42  ;;  %v299_v55 = vmul.f32 3.1415927, %v4455_v45 }
 0x172   : > { %v1104_v9 = vsub.s32 0, %v4444_v50  ;;  %v978_v10 = vsel %vm968_vm6, %v975_v57, %v977_v44  ;;  %v979_v41 = vsel %vm967_vm1, %v957_v16, %v960_v46  ;;  %v980_v12 = vsel %vm970_vm4, %v966_v38, 1326507024 }
 0x173   : > { %v973_v53 = vsel %vm969_vm5, %v957_v16, %v972_v18  ;;  %v981_v36 = vsel %vm969_vm5, %v963_v5, %v980_v12  ;;  %v4465_v3 = vmul.u32.u64.low %v4431_v30, %v978_v10  ;;  %v4466_v24 = vmul.u32.u64.high %v4431_v30, %v978_v10, %v4465_v3 }
 0x174   : > { %v1646_v11 = vand.u32 3, %v1642_v1  ;;  %v2674_v61 = vmin.u32 %v1104_v9, %v4444_v50  ;;  %v1124_v4 = vsub.s32 4, %v1100_v23  ;;  %v982_v62 = vsel %vm968_vm6, %v979_v41, %v981_v36 }
 0x175   : > { %v4471_v60 = vmul.f32 0.2, %v299_v55  ;;  %v974_v48 = vsel %vm968_vm6, %v971_v2, %v973_v53  ;;  %v4475_v40 = vmul.u32.u64.low %v4431_v30, %v982_v62  ;;  %v4476_v35 = vmul.u32.u64.high %v4431_v30, %v982_v62, %v4475_v40 }
 0x176   : > { %v1106_v15 = vclz %v2674_v61  ;;  %vm1645_vm8 = vweird.f32 %v4193_v63  ;;  %vm1040_vm9 = vcmp.lt.s32.totalorder %v4271_v25, 0  ;;  %v993_v6 = vadd.s32 1, %v4466_v24  ;;  %v4511_v63 = vld [vmem:[%s3178_s13 + $0x70] sm:$0xff]  ;;  %s2725_s13 = sshll.u32 %s3142_s25, 11  ;;  %s4871_s25 = scalar_lea.sflag [#allocation3], %s244_s29 }
 0x177   : > { %v1865_v51 = vand.u32 2139095040, %v4471_v60  ;;  %vm1647_vm10 = vcmp.lt.s32.totalorder %v1646_v11, 2  ;;  %vm1648_vm11 = vcmp.eq.s32.totalorder %v1646_v11, 0  ;;  %vm1651_vm12 = vcmp.eq.s32.totalorder %v1646_v11, 2  ;;  %s4862_s17 = scalar_lea.hbm %s4917_s5, %s2725_s13 }
 0x178   : > { %v2675_v56 = vadd.s32 4294967294, %v1106_v15  ;;  %v1094_v27 = vadd.s32 %v4384_v0, %v4399_v28  ;;  %v1125_v52 = vsel %vm1040_vm9, %v1124_v4, %v1100_v23  ;;  %v990_v49 = vmul.u32 %v4431_v30, %v974_v48 }
 0x179   : > { %v1866_v17 = vshrl.u32 %v1865_v51, 23  ;;  %vm992_vm15 = vc.u32 %v4476_v35, %v4465_v3  ;;  %v1862_v59 = vand.u32 2147483647, %v4471_v60  ;;  %vm4496_vm0 = vcmp.le.f32.partialorder %v1038_v7, 0.7853982 }
 0x17a   : > { %v2947_v13 = vpop.eup %2946  ;;  %vm2676_vm13 = vcmp.lt.s32.totalorder %v2675_v56, 0  ;;  %v994_v26 = vsel %vm992_vm15, %v993_v6, %v4466_v24  ;;  %v1127_v47 = vsel %vm4496_vm0, 0, %v1125_v52  ;;  %vm2009_vm2 = vcmp.lt.f32.partialorder %v4147_v39, 5.0 }
 0x17b   : > { %v2949_v16 = vpop.eup %2948  ;;  %v1652_v33 = vxor.u32 2147483648, %v2947_v13  ;;  %v1109_v22 = vsel %vm2676_vm13, 0, %v2675_v56  ;;  %v2705_v46 = vadd.s32 4294967169, %v1866_v17  ;;  %v995_v14 = vadd.s32 %v994_v26, %v990_v49 }
 0x17c   : > { %v1649_v34 = vxor.u32 2147483648, %v2949_v16  ;;  %v1110_v28 = vsub.s32 32, %v1109_v22  ;;  %v1111_v23 = vshll.u32 %v4444_v50, %v1109_v22  ;;  %v1114_v30 = vsub.s32 4294967266, %v1109_v22 }
 0x17d   : > { %v1653_v0 = vsel %vm1651_vm12, %v1652_v33, %v2949_v16  ;;  %v1872_v38 = vadd.s32 1, %v2705_v46  ;;  %v996_v1 = vadd.s32 536870912, %v995_v14  ;;  %v1869_v7 = vand.u32 8388607, %v1862_v59 }
 0x17e   : > { %v1650_v5 = vsel %vm1648_vm11, %v2947_v13, %v1649_v34  ;;  %v1112_v42 = vshrl.u32 %v1094_v27, %v1110_v28  ;;  %v1115_v18 = vadd.s32 127, %v1114_v30  ;;  %v298_v24 = vmul.f32 3.1415927, %v4511_v63 }
 0x17f   : > { %v1654_v57 = vsel %vm1647_vm10, %v1650_v5, %v1653_v0  ;;  %vm1873_vm14 = vcmp.gt.s32.totalorder %v1872_v38, 0  ;;  %v4508_v10 = vshrl.u32 %v996_v1, 30  ;;  %v4514_v11 = vand.u32 3, %v1127_v47 }
 0x180   : > { %v1655_v50 = vsel %vm1645_vm8, nan, %v1654_v57  ;;  %v1113_v44 = vor.u32 %v1112_v42, %v1111_v23  ;;  %v1116_v55 = vshll.u32 %v1115_v18, 23  ;;  %v1874_v9 = vsel %vm1873_vm14, %v1872_v38, 0  ;;  %v4542_v57 = vpop.permute.xlu1 %2122 }
 0x181   : > { %v1977_v2 = vadd.f32 1.0, %v1655_v50  ;;  %v1876_v41 = vand.u32 31, %v1874_v9  ;;  %v998_v61 = vshll.u32 %v4508_v10, 30  ;;  %v1870_v48 = vor.u32 8388608, %v1869_v7 }
 0x182   : > { %v1117_v53 = vor.u32 4788187, %v1116_v55  ;;  %v1120_v36 = vcvt.s32.f32 %v1113_v44  ;;  %v4527_v49 = vmul.f32 0.2, %v298_v24  ;;  %v991_v17 = vadd.s32 %v4465_v3, %v4476_v35 }
 0x183   : > { %v1993_v12 = vmul.f32 0.5, %v1977_v2  ;;  %v1877_v4 = vsub.s32 32, %v1876_v41  ;;  %v1879_v39 = vshll.u32 %v3077_v19, %v1876_v41  ;;  %v4520_v40 = vsub.s32 %v995_v14, %v998_v61 }
 0x184   : > { %v1118_v15 = vand.u32 2147483647, %v1117_v53  ;;  %v1882_v51 = vshll.u32 %v3078_v21, %v1876_v41  ;;  %v1885_v56 = vshll.u32 %v3079_v29, %v1876_v41  ;;  %v1875_v33 = vshrl.u32 %v1874_v9, 5 }
 0x185   : > { %v2025_v62 = vsel %vm2009_vm2, %v1993_v12, 0.0  ;;  %v1880_v6 = vshrl.u32 %v3078_v21, %v1877_v4  ;;  %v1883_v27 = vshrl.u32 %v3079_v29, %v1877_v4  ;;  %v1886_v52 = vshrl.u32 %v3080_v32, %v1877_v4 }
 0x186   : > { %2522 = vst.msk [vmem:[%s3594_s16 + $0x60] sm:$0xff] %vm2509_vm7, %v2025_v62  ;;  %2314 = vperm.xlu0 %2867, %v2025_v62   ;;  %v1121_v13 = vmul.f32 %v1120_v36, %v1118_v15  ;;  %v1001_v16 = vsub.s32 0, %v4520_v40  ;;  %v1888_v34 = vshll.u32 %v3080_v32, %v1876_v41  ;;  %v1878_v26 = vshrl.u32 %v3077_v19, %v1877_v4  ;;  %v4555_v62 = vpop.permute.xlu1 %2127 }
 0x187   : > { %v1889_v46 = vshrl.u32 %v3081_v37, %v1877_v4  ;;  %v4535_v0 = vshll.u32 %v1870_v48, 8  ;;  %v1881_v23 = vor.u32 %v1880_v6, %v1879_v39  ;;  %v1884_v30 = vor.u32 %v1883_v27, %v1882_v51 }
 0x188   : > { %v1122_v22 = vxor.u32 2147483648, %v1121_v13  ;;  %v2670_v28 = vmin.u32 %v1001_v16, %v4520_v40  ;;  %v1887_v5 = vor.u32 %v1886_v52, %v1885_v56  ;;  %v1891_v14 = vshll.u32 %v3081_v37, %v1876_v41  ;;  %v4548_v41 = vpop.permute.xlu0 %2082 }
 0x189   : > { %v1890_v35 = vor.u32 %v1889_v46, %v1888_v34  ;;  %v1892_v38 = vshrl.u32 %v3082_v43, %v1877_v4  ;;  %vm1894_vm3 = vcmp.lt.s32.totalorder %v1875_v33, 1  ;;  %vm1895_vm1 = vcmp.lt.s32.totalorder %v1875_v33, 2 }
 0x18a   : > { %v1123_v3 = vsel %vm1040_vm9, %v1122_v22, %v1121_v13  ;;  %v1003_v18 = vclz %v2670_v28  ;;  %vm1896_vm4 = vcmp.lt.s32.totalorder %v1875_v33, 3  ;;  %vm1897_vm5 = vcmp.lt.s32.totalorder %v1875_v33, 4 }
 0x18b   : > { %v1126_v42 = vsel %vm4496_vm0, %v4271_v25, %v1123_v3  ;;  %v1893_v47 = vor.u32 %v1892_v38, %v1891_v14  ;;  %v1898_v1 = vsel %vm1894_vm3, %v1878_v26, %v1881_v23  ;;  %v1899_v7 = vsel %vm1897_vm5, %v1887_v5, 2102212464  ;;  %v4589_v3 = vpop.permute.xlu1 %2097 }
 0x18c   : > { %2950 = vcosq.f32 %v1126_v42  ;;  %v2671_v50 = vadd.s32 4294967294, %v1003_v18  ;;  %v1900_v2 = vsel %vm1896_vm4, %v1884_v30, %v1899_v7  ;;  %v1902_v44 = vsel %vm1894_vm3, %v1881_v23, %v1884_v30  ;;  %v4580_v22 = vpop.permute.xlu0 %2087 }
 0x18d   : > { %2952 = vsinq.f32 %v1126_v42  ;;  %v1903_v55 = vsel %vm1897_vm5, %v1890_v35, 920167782  ;;  %v1906_v9 = vsel %vm1894_vm3, %v1884_v30, %v1887_v5  ;;  %v1021_v58 = vsub.s32 4, %v4508_v10 }
 0x18e   : > { %vm2672_vm6 = vcmp.lt.s32.totalorder %v2671_v50, 0  ;;  %v1904_v12 = vsel %vm1896_vm4, %v1887_v5, %v1903_v55  ;;  %v1907_v53 = vsel %vm1897_vm5, %v1893_v47, 1326507024  ;;  %v1901_v24 = vsel %vm1895_vm1, %v1898_v1, %v1900_v2 }
 0x18f   : > { %v1006_v36 = vsel %vm2672_vm6, 0, %v2671_v50  ;;  %v1905_v61 = vsel %vm1895_vm1, %v1902_v44, %v1904_v12  ;;  %v1908_v4 = vsel %vm1896_vm4, %v1890_v35, %v1907_v53  ;;  %vm1130_vm8 = vweird.f32 %v4271_v25  ;;  %v2029_v44 = vld [vmem:[%s4914_s2] sm:$0x1] }
 0x190   : > { %v1007_v15 = vsub.s32 32, %v1006_v36  ;;  %v1008_v48 = vshll.u32 %v4520_v40, %v1006_v36  ;;  %v1011_v39 = vsub.s32 4294967266, %v1006_v36  ;;  %v1909_v6 = vsel %vm1895_vm1, %v1906_v9, %v1908_v4  ;;  %v4604_v12 = vpop.permute.xlu0 %2092 }
 0x191   : > { %v4561_v51 = vmul.u32.u64.low %v4535_v0, %v1909_v6  ;;  %v4562_v56 = vmul.u32.u64.high %v4535_v0, %v1909_v6, %v4561_v51  ;;  %v4565_v13 = vmul.u32.u64.low %v4535_v0, %v1905_v61  ;;  %v4566_v27 = vmul.u32.u64.high %v4535_v0, %v1905_v61, %v4565_v13  ;;  %v4609_v61 = vld [vmem:[%s4913_s1] ss:$0 sm:$0xff] }
 0x192   : > { %vm4571_vm9 = vcmp.le.f32.partialorder %v935_v54, 0.7853982  ;;  %v1009_v16 = vshrl.u32 %v991_v17, %v1007_v15  ;;  %v1012_v40 = vadd.s32 127, %v1011_v39  ;;  %v1762_v33 = vand.u32 2139095040, %v4527_v49 }
 0x193   : > { %vm1133_vm10 = vcmp.eq.s32.totalorder %v4514_v11, 0  ;;  %vm1136_vm11 = vcmp.eq.s32.totalorder %v4514_v11, 2  ;;  %vm937_vm12 = vcmp.lt.s32.totalorder %v4322_v31, 0  ;;  %v1759_v34 = vand.u32 2147483647, %v4527_v49 }
 0x194   : > { %v1010_v26 = vor.u32 %v1009_v16, %v1008_v48  ;;  %v1013_v46 = vshll.u32 %v1012_v40, 23  ;;  %v1917_v54 = vmul.u32 %v4535_v0, %v1901_v24  ;;  %v1763_v28 = vshrl.u32 %v1762_v33, 23  ;;  %v4614_v48 = vpop.permute.xlu1 %2137 }
 0x195   : > { %v1022_v17 = vsel %vm937_vm12, %v1021_v58, %v4508_v10  ;;  %vm1919_vm13 = vc.u32 %v4562_v56, %v4565_v13  ;;  %v1920_v30 = vadd.s32 1, %v4566_v27  ;;  %v2199_v5 = vlaneseq }
 0x196   : > { %v2951_v23 = vpop.eup %2950  ;;  %v1014_v38 = vor.u32 4788187, %v1013_v46  ;;  %v1017_v42 = vcvt.s32.f32 %v1010_v26  ;;  %v2701_v18 = vadd.s32 4294967169, %v1763_v28  ;;  %vm1132_vm15 = vcmp.lt.s32.totalorder %v4514_v11, 2 }
 0x197   : > { %v2953_v35 = vpop.eup %2952  ;;  %v1137_v14 = vxor.u32 2147483648, %v2951_v23  ;;  %v1921_v47 = vsel %vm1919_vm13, %v1920_v30, %v4566_v27  ;;  %v1766_v10 = vand.u32 8388607, %v1759_v34  ;;  %v1024_v9 = vsel %vm4571_vm9, 0, %v1022_v17 }
 0x198   : > { %v1134_v0 = vxor.u32 2147483648, %v2953_v35  ;;  %v1015_v1 = vand.u32 2147483647, %v1014_v38  ;;  %v1922_v7 = vadd.s32 %v1921_v47, %v1917_v54  ;;  %v1769_v2 = vadd.s32 1, %v2701_v18  ;;  %v4649_v38 = vpop.permute.xlu1 %2107 }
 0x199   : > { %v1138_v50 = vsel %vm1136_vm11, %v1137_v14, %v2953_v35  ;;  %v2200_v58 = vshrl.u32 %v2199_v5, 7  ;;  %vm2004_vm14 = vcmp.lt.f32.partialorder %v4246_v8, 5.0  ;;  %v2030_v15 = vsub.f32 0.0, %v2029_v44  ;;  %v4635_v5 = vpop.permute.xlu0 %2132 }
 0x19a   : > { %v1135_v55 = vsel %vm1133_vm10, %v2951_v23, %v1134_v0  ;;  %v1018_v36 = vmul.f32 %v1017_v42, %v1015_v1  ;;  %v1923_v24 = vadd.s32 536870912, %v1922_v7  ;;  %vm1770_vm0 = vcmp.gt.s32.totalorder %v1769_v2, 0 }
 0x19b   : > { %v1139_v53 = vsel %vm1132_vm15, %v1135_v55, %v1138_v50  ;;  %v1771_v11 = vsel %vm1770_vm0, %v1769_v2, 0  ;;  %v1767_v27 = vor.u32 8388608, %v1766_v10  ;;  %v4618_v16 = vand.u32 3, %v1024_v9 }
 0x19c   : > { %v1140_v4 = vsel %vm1130_vm8, nan, %v1139_v53  ;;  %v1019_v6 = vxor.u32 2147483648, %v1018_v36  ;;  %v4616_v51 = vshrl.u32 %v1923_v24, 30  ;;  %v1773_v40 = vand.u32 31, %v1771_v11 }
 0x19d   : > { %v1972_v39 = vadd.f32 1.0, %v1140_v4  ;;  %v2201_v33 = vsub.s32 0, %v2200_v58  ;;  %v2174_v25 = vsub.f32 %v4542_v57, %v4609_v61  ;;  %v2166_v28 = vsub.f32 %v4548_v41, %v4609_v61  ;;  %v4664_v53 = vpop.permute.xlu0 %2102  ;;  %v4670_v4 = vpop.permute.xlu1 %2147 }
 0x19e   : > { %v1020_v46 = vsel %vm937_vm12, %v1019_v6, %v1018_v36  ;;  %v1925_v54 = vshll.u32 %v4616_v51, 30  ;;  %v4632_v17 = vadd.s32 %v4565_v13, %v4562_v56  ;;  %v1774_v30 = vsub.s32 32, %v1773_v40 }
 0x19f   : > { %v1988_v26 = vmul.f32 0.5, %v1972_v39  ;;  %v1023_v23 = vsel %vm4571_vm9, %v4322_v31, %v1020_v46  ;;  %v1776_v57 = vshll.u32 %v3077_v19, %v1773_v40  ;;  %v4641_v41 = vshll.u32 %v1767_v27, 8 }
 0x1a0   : > { %2954 = vcosq.f32 %v1023_v23  ;;  %v4639_v14 = vsub.s32 %v1922_v7, %v1925_v54  ;;  %v1777_v56 = vshrl.u32 %v3078_v21, %v1774_v30  ;;  %v1779_v13 = vshll.u32 %v3078_v21, %v1773_v40 }
 0x1a1   : > { %v2020_v35 = vsel %vm2004_vm14, %v1988_v26, 0.0  ;;  %2956 = vsinq.f32 %v1023_v23  ;;  %v4647_v52 = vrot.slane %v2030_v15, %v2201_v33  ;;  %vm1033_vm2 = vcmp.eq.s32.totalorder %v4618_v16, 2 }
 0x1a2   : > { %2517 = vst.msk [vmem:[%s3594_s16 + $0x38] sm:$0xff] %vm2509_vm7, %v2020_v35  ;;  %2289 = vperm.xlu1 %2868, %v2020_v35   ;;  %v1928_v8 = vsub.s32 0, %v4639_v14  ;;  %v1772_v42 = vshrl.u32 %v1771_v11, 5  ;;  %v1780_v18 = vshrl.u32 %v3079_v29, %v1774_v30  ;;  %v1782_v0 = vshll.u32 %v3079_v29, %v1773_v40 }
 0x1a3   : > { %vm1030_vm3 = vcmp.eq.s32.totalorder %v4618_v16, 0  ;;  %v1778_v47 = vor.u32 %v1777_v56, %v1776_v57  ;;  %v1783_v10 = vshrl.u32 %v3080_v32, %v1774_v30  ;;  %v1785_v21 = vshll.u32 %v3080_v32, %v1773_v40  ;;  %v4684_v57 = vpop.permute.xlu0 %2142 }
 0x1a4   : > { %v1786_v50 = vshrl.u32 %v3081_v37, %v1774_v30  ;;  %vm1029_vm1 = vcmp.lt.s32.totalorder %v4618_v16, 2  ;;  %v2706_v1 = vmin.u32 %v1928_v8, %v4639_v14  ;;  %v1775_v7 = vshrl.u32 %v3077_v19, %v1774_v30 }
 0x1a5   : > { %v2190_v2 = vmul.f32 %v2174_v25, %v2174_v25  ;;  %v2182_v44 = vmul.f32 %v2166_v28, %v2166_v28  ;;  %vm1027_vm4 = vweird.f32 %v4322_v31  ;;  %v1781_v29 = vor.u32 %v1780_v18, %v1779_v13 }
 0x1a6   : > { %v1784_v55 = vor.u32 %v1783_v10, %v1782_v0  ;;  %v1787_v9 = vor.u32 %v1786_v50, %v1785_v21  ;;  %v1788_v58 = vshll.u32 %v3081_v37, %v1773_v40  ;;  %v1930_v32 = vclz %v2706_v1  ;;  %v4695_v21 = vpop.permute.xlu1 %2117 }
 0x1a7   : > { %v1789_v36 = vshrl.u32 %v3082_v43, %v1774_v30  ;;  %vm1791_vm5 = vcmp.lt.s32.totalorder %v1772_v42, 1  ;;  %v2175_v24 = vsub.f32 %v4555_v62, %v4609_v61  ;;  %vm1792_vm6 = vcmp.lt.s32.totalorder %v1772_v42, 2 }
 0x1a8   : > { %vm1793_vm8 = vcmp.lt.s32.totalorder %v1772_v42, 3  ;;  %vm1794_vm9 = vcmp.lt.s32.totalorder %v1772_v42, 4  ;;  %v1799_v19 = vsel %vm1791_vm5, %v1778_v47, %v1781_v29  ;;  %v2707_v11 = vadd.s32 4294967294, %v1930_v32 }
 0x1a9   : > { %v1790_v15 = vor.u32 %v1789_v36, %v1788_v58  ;;  %v1796_v37 = vsel %vm1794_vm9, %v1784_v55, 2102212464  ;;  %v1800_v39 = vsel %vm1794_vm9, %v1787_v9, 920167782  ;;  %v1795_v6 = vsel %vm1791_vm5, %v1775_v7, %v1778_v47 }
 0x1aa   : > { %v1801_v43 = vsel %vm1793_vm8, %v1784_v55, %v1800_v39  ;;  %v2212_v27 = vmul.f32 %v4647_v52, %v2190_v2  ;;  %v2204_v62 = vmul.f32 %v4647_v52, %v2182_v44  ;;  %v2955_v40 = vpop.eup %2954  ;;  %vm2003_vm10 = vcmp.lt.f32.partialorder %v4313_v20, 5.0 }
 0x1ab   : > { %vm2708_vm11 = vcmp.lt.s32.totalorder %v2707_v11, 0  ;;  %v1802_v33 = vsel %vm1792_vm6, %v1799_v19, %v1801_v43  ;;  %v1803_v25 = vsel %vm1791_vm5, %v1781_v29, %v1784_v55  ;;  %v1804_v26 = vsel %vm1794_vm9, %v1790_v15, 1326507024  ;;  %v2957_v46 = vpop.eup %2956 }
 0x1ac   : > { %v1034_v54 = vxor.u32 2147483648, %v2955_v40  ;;  %v1933_v28 = vsel %vm2708_vm11, 0, %v2707_v11  ;;  %v1797_v23 = vsel %vm1793_vm8, %v1781_v29, %v1796_v37  ;;  %v1805_v30 = vsel %vm1793_vm8, %v1787_v9, %v1804_v26  ;;  %v4716_v11 = vpop.permute.xlu0 %2112 }
 0x1ad   : > { %v1031_v35 = vxor.u32 2147483648, %v2957_v46  ;;  %v1934_v56 = vsub.s32 32, %v1933_v28  ;;  %v1935_v13 = vshll.u32 %v4639_v14, %v1933_v28  ;;  %v1938_v8 = vsub.s32 4294967266, %v1933_v28 }
 0x1ae   : > { %v1035_v18 = vsel %vm1033_vm2, %v1034_v54, %v2957_v46  ;;  %v1806_v0 = vsel %vm1792_vm6, %v1803_v25, %v1805_v30  ;;  %v4691_v47 = vmul.u32.u64.low %v4641_v41, %v1802_v33  ;;  %v4692_v10 = vmul.u32.u64.high %v4641_v41, %v1802_v33, %v4691_v47 }
 0x1af   : > { %v1032_v50 = vsel %vm1030_vm3, %v2955_v40, %v1031_v35  ;;  %v1936_v1 = vshrl.u32 %v4632_v17, %v1934_v56  ;;  %v1939_v7 = vadd.s32 127, %v1938_v8  ;;  %v1798_v14 = vsel %vm1792_vm6, %v1795_v6, %v1797_v23  ;;  %v4723_v6 = vpop.permute.xlu1 %2157 }
 0x1b0   : > { %v1036_v2 = vsel %vm1029_vm1, %v1032_v50, %v1035_v18  ;;  %vm1864_vm12 = vcmp.lt.s32.totalorder %v4471_v60, 0  ;;  %v4705_v44 = vmul.u32.u64.low %v4641_v41, %v1806_v0  ;;  %v4706_v29 = vmul.u32.u64.high %v4641_v41, %v1806_v0, %v4705_v44  ;;  %v2153_v56 = vpop.permute.xlu0 %2152 }
 0x1b1   : > { %v2191_v55 = vmul.f32 %v2175_v24, %v2175_v24  ;;  %v1037_v9 = vsel %vm1027_vm4, nan, %v1036_v2  ;;  %v1937_v58 = vor.u32 %v1936_v1, %v1935_v13  ;;  %v1940_v32 = vshll.u32 %v1939_v7, 23 }
 0x1b2   : > { %v2167_v17 = vsub.f32 %v4580_v22, %v4609_v61  ;;  %v1971_v42 = vadd.f32 1.0, %v1037_v9  ;;  %v1814_v36 = vmul.u32 %v4641_v41, %v1798_v14  ;;  %v1817_v16 = vadd.s32 1, %v4692_v10 }
 0x1b3   : > { %v2169_v19 = vsub.f32 %v4589_v3, %v4609_v61  ;;  %v1941_v15 = vor.u32 4788187, %v1940_v32  ;;  %v1944_v24 = vcvt.s32.f32 %v1937_v58  ;;  %v2236_v31 = vmul.f32 1.442695, %v2212_v27  ;;  %v4744_v13 = vpop.permute.xlu1 %2259 }
 0x1b4   : > { %v2168_v37 = vsub.f32 %v4604_v12, %v4609_v61  ;;  %v1987_v39 = vmul.f32 0.5, %v1971_v42  ;;  %v1948_v22 = vsub.s32 4, %v4616_v51  ;;  %vm1816_vm13 = vc.u32 %v4706_v29, %v4691_v47  ;;  %v4762_v44 = vpop.permute.xlu0 %2254 }
 0x1b5   : > { %v2183_v41 = vmul.f32 %v2167_v17, %v2167_v17  ;;  %v1942_v43 = vand.u32 2147483647, %v1941_v15  ;;  %v1818_v3 = vsel %vm1816_vm13, %v1817_v16, %v4692_v10  ;;  %v2213_v40 = vmul.f32 %v4647_v52, %v2191_v55 }
 0x1b6   : > { %v2185_v33 = vmul.f32 %v2169_v19, %v2169_v19  ;;  %v2019_v27 = vsel %vm2003_vm10, %v1987_v39, 0.0  ;;  %v1819_v25 = vadd.s32 %v1818_v3, %v1814_v36  ;;  %v2184_v12 = vmul.f32 %v2168_v37, %v2168_v37 }
 0x1b7   : > { %v2177_v26 = vsub.f32 %v4614_v48, %v4609_v61  ;;  %2516 = vst.msk [vmem:[%s3594_s16 + $0x30] sm:$0xff] %vm2509_vm7, %v2019_v27  ;;  %2284 = vperm.xlu0 %2867, %v2019_v27   ;;  %vm4735_vm15 = vcmp.le.f32.partialorder %v1862_v59, 0.7853982  ;;  %v1945_v54 = vmul.f32 %v1944_v24, %v1942_v43  ;;  %v2220_v28 = vmul.f32 1.442695, %v2204_v62  ;;  %v4769_v42 = vpop.permute.xlu1 %2299 }
 0x1b8   : > { %v2176_v20 = vsub.f32 %v4635_v5, %v4609_v61  ;;  %v1820_v23 = vadd.s32 536870912, %v1819_v25  ;;  %v2205_v30 = vmul.f32 %v4647_v52, %v2183_v41  ;;  %v2171_v48 = vsub.f32 %v4649_v38, %v4609_v61 }
 0x1b9   : > { %v2193_v35 = vmul.f32 %v2177_v26, %v2177_v26  ;;  %v1946_v8 = vxor.u32 2147483648, %v1945_v54  ;;  %v1949_v59 = vsel %vm1864_vm12, %v1948_v22, %v4616_v51  ;;  %v2207_v62 = vmul.f32 %v4647_v52, %v2185_v33  ;;  %v2295_v22 = vpop.permute.xlu0 %2294 }
 0x1ba   : > { %v2192_v18 = vmul.f32 %v2176_v20, %v2176_v20  ;;  %v4750_v0 = vshrl.u32 %v1820_v23, 30  ;;  %2958 = vpow2.f32 %v2236_v31  ;;  %v2238_v5 = vmul.f32 1.442695, %v2213_v40 }
 0x1bb   : > { %v2206_v10 = vmul.f32 %v4647_v52, %v2184_v12  ;;  %v1947_v38 = vsel %vm1864_vm12, %v1946_v8, %v1945_v54  ;;  %v2215_v50 = vmul.f32 %v4647_v52, %v2193_v35  ;;  %v2187_v1 = vmul.f32 %v2171_v48, %v2171_v48 }
 0x1bc   : > { %v2170_v7 = vsub.f32 %v4664_v53, %v4609_v61  ;;  %v1950_v51 = vsel %vm4735_vm15, %v4471_v60, %v1947_v38  ;;  %v1822_v14 = vshll.u32 %v4750_v0, 30  ;;  %2960 = vpow2.f32 %v2220_v28 }
 0x1bd   : > { %v2222_v2 = vmul.f32 1.442695, %v2205_v30  ;;  %v1951_v55 = vsel %vm4735_vm15, 0, %v1949_v59  ;;  %2962 = vcosq.f32 %v1950_v51  ;;  %v2226_v9 = vmul.f32 1.442695, %v2207_v62  ;;  %v2265_v8 = vpop.permute.xlu0 %2264 }
 0x1be   : > { %v2214_v58 = vmul.f32 %v4647_v52, %v2192_v18  ;;  %2964 = vsinq.f32 %v1950_v51  ;;  %v4767_v32 = vsub.s32 %v1819_v25, %v1822_v14  ;;  %v2224_v53 = vmul.f32 1.442695, %v2206_v10 }
 0x1bf   : > { %v2186_v17 = vmul.f32 %v2170_v7, %v2170_v7  ;;  %2966 = vpow2.f32 %v2238_v5  ;;  %v2242_v36 = vmul.f32 1.442695, %v2215_v50  ;;  %v2209_v16 = vmul.f32 %v4647_v52, %v2187_v1 }
 0x1c0   : > { %v1955_v19 = vand.u32 3, %v1951_v55  ;;  %v1825_v15 = vsub.s32 0, %v4767_v32  ;;  %2968 = vpow2.f32 %v2222_v2  ;;  %v2240_v24 = vmul.f32 1.442695, %v2214_v58 }
 0x1c1   : > { %2970 = vpow2.f32 %v2226_v9  ;;  %v2208_v31 = vmul.f32 %v4647_v52, %v2186_v17  ;;  %v2173_v37 = vsub.f32 %v4695_v21, %v4609_v61  ;;  %vm1954_vm0 = vweird.f32 %v4471_v60  ;;  %v2270_v21 = vpop.permute.xlu1 %2269 }
 0x1c2   : > { %v2702_v39 = vmin.u32 %v1825_v15, %v4767_v32  ;;  %2972 = vpow2.f32 %v2224_v53  ;;  %v2230_v41 = vmul.f32 1.442695, %v2209_v16  ;;  %v2172_v33 = vsub.f32 %v4716_v11, %v4609_v61 }
 0x1c3   : > { %2974 = vpow2.f32 %v2242_v36  ;;  %v2189_v43 = vmul.f32 %v2173_v37, %v2173_v37  ;;  %v2181_v27 = vsub.f32 %v4723_v6, %v4609_v61  ;;  %v2180_v25 = vsub.f32 %v2153_v56, %v4609_v61 }
 0x1c4   : > { %v2959_v3 = vpop.eup %2958  ;;  %v1827_v40 = vclz %v2702_v39  ;;  %vm1956_vm14 = vcmp.lt.s32.totalorder %v1955_v19, 2  ;;  %2976 = vpow2.f32 %v2240_v24  ;;  %v2228_v12 = vmul.f32 1.442695, %v2208_v31  ;;  %v2305_v31 = vpop.permute.xlu0 %2304 }
 0x1c5   : > { %v4784_v26 = vmul.f32 %v4647_v52, %v2189_v43  ;;  %v2188_v28 = vmul.f32 %v2172_v33, %v2172_v33  ;;  %v2197_v20 = vmul.f32 %v2181_v27, %v2181_v27  ;;  %v2196_v23 = vmul.f32 %v2180_v25, %v2180_v25  ;;  %v2310_v1 = vpop.permute.xlu1 %2309 }
 0x1c6   : > { %v2961_v46 = vpop.eup %2960  ;;  %v2703_v54 = vadd.s32 4294967294, %v1827_v40  ;;  %vm1957_vm2 = vcmp.eq.s32.totalorder %v1955_v19, 0  ;;  %vm1960_vm3 = vcmp.eq.s32.totalorder %v1955_v19, 2  ;;  %v1815_v11 = vadd.s32 %v4691_v47, %v4706_v29 }
 0x1c7   : > { %v2963_v30 = vpop.eup %2962  ;;  %2978 = vpow2.f32 %v2230_v41  ;;  %v4789_v48 = vmul.f32 %v4647_v52, %v2188_v28  ;;  %v4792_v56 = vmul.f32 %v4647_v52, %v2197_v20  ;;  %v4795_v5 = vmul.f32 %v4647_v52, %v2196_v23 }
 0x1c8   : > { %v2965_v6 = vpop.eup %2964  ;;  %v1961_v35 = vxor.u32 2147483648, %v2963_v30  ;;  %vm2704_vm1 = vcmp.lt.s32.totalorder %v2703_v54, 0  ;;  %2980 = vpow2.f32 %v2228_v12  ;;  %v2332_v36 = vmul.f32 %v2961_v46, %v4762_v44 }
 0x1c9   : > { %v2967_v59 = vpop.eup %2966  ;;  %v1958_v62 = vxor.u32 2147483648, %v2965_v6  ;;  %v1830_v18 = vsel %vm2704_vm1, 0, %v2703_v54  ;;  %vm2012_vm4 = vcmp.lt.f32.partialorder %v4455_v45, 5.0  ;;  %vm2371_vm5 = vcmask 130048   ;;  %v2280_v40 = vpop.permute.xlu1 %2279 }
 0x1ca   : > { %v2969_v10 = vpop.eup %2968  ;;  %v1962_v47 = vsel %vm1960_vm3, %v1961_v35, %v2965_v6  ;;  %v1831_v29 = vsub.s32 32, %v1830_v18  ;;  %v1832_v38 = vshll.u32 %v4767_v32, %v1830_v18  ;;  %v1835_v50 = vsub.s32 4294967266, %v1830_v18 }
 0x1cb   : > { %v2971_v7 = vpop.eup %2970  ;;  %v1959_v51 = vsel %vm1957_vm2, %v2963_v30, %v1958_v62  ;;  %v2333_v14 = vmul.f32 %v2969_v10, %v4744_v13  ;;  %v2341_v32 = vmul.f32 %v2967_v59, %v4769_v42  ;;  %v2340_v13 = vmul.f32 %v2959_v3, %v2295_v22 }
 0x1cc   : > { %v2973_v2 = vpop.eup %2972  ;;  %v1963_v55 = vsel %vm1956_vm14, %v1959_v51, %v1962_v47  ;;  %v1833_v9 = vshrl.u32 %v1815_v11, %v1831_v29  ;;  %v1836_v58 = vadd.s32 127, %v1835_v50  ;;  %v2335_v60 = vmul.f32 %v2971_v7, %v2270_v21 }
 0x1cd   : > { %v2975_v53 = vpop.eup %2974  ;;  %v1964_v17 = vsel %vm1954_vm0, nan, %v1963_v55  ;;  %v2350_v19 = vpack.c.bf16 %v2333_v14, %v2332_v36  ;;  %v2334_v44 = vmul.f32 %v2973_v2, %v2265_v8  ;;  %v2354_v42 = vpack.c.bf16 %v2341_v32, %v2340_v13 }
 0x1ce   : > { %v1980_v16 = vadd.f32 1.0, %v1964_v17  ;;  %v1834_v15 = vor.u32 %v1833_v9, %v1832_v38  ;;  %v1837_v24 = vshll.u32 %v1836_v58, 23  ;;  %v2977_v37 = vpop.eup %2976  ;;  %v2343_v27 = vmul.f32 %v2975_v53, %v2310_v1 }
 0x1cf   : > { %2737 = vmatprep.mubr.msk.bf16.mxu0 %vm2371_vm5, %v2350_v19  ;;  %v2342_v25 = vmul.f32 %v2977_v37, %v2305_v31  ;;  %v2351_v45 = vpack.c.bf16 %v2335_v60, %v2334_v44  ;;  %2745 = vmatprep.mubr.msk.bf16.mxu1 %vm2371_vm5, %v2354_v42  ;;  %vm1761_vm6 = vcmp.lt.s32.totalorder %v4527_v49, 0  ;;  %vm1760_vm8 = vcmp.le.f32.partialorder %v1759_v34, 0.7853982 }
 0x1d0   : > { %v1996_v39 = vmul.f32 0.5, %v1980_v16  ;;  %v1838_v41 = vor.u32 4788187, %v1837_v24  ;;  %v1841_v43 = vcvt.s32.f32 %v1834_v15  ;;  %v1845_v30 = vsub.s32 4, %v4750_v0 }
 0x1d1   : > { %v2979_v33 = vpop.eup %2978  ;;  %v2355_v22 = vpack.c.bf16 %v2343_v27, %v2342_v25  ;;  %2738 = vmatmul.mubr.msk.bf16.vlgmr.msra.gmra.mrb[0].mxu0 %vm2371_vm5, %v2351_v45  ;;  %vm1851_vm12 = vweird.f32 %v4527_v49  ;;  %v2179_v50 = vsub.f32 %v4670_v4, %v4609_v61  ;;  %v2178_v7 = vsub.f32 %v4684_v57, %v4609_v61 }
 0x1d2   : > { %v2028_v12 = vsel %vm2012_vm4, %v1996_v39, 0.0  ;;  %v1839_v46 = vand.u32 2147483647, %v1838_v41  ;;  %v2981_v54 = vpop.eup %2980  ;;  %v2337_v3 = vmul.f32 %v2979_v33, %v2280_v40  ;;  %v1846_v8 = vsel %vm1761_vm6, %v1845_v30, %v4750_v0 }
 0x1d3   : > { %2525 = vst.msk [vmem:[%s3594_s16 + $0x78] sm:$0xff] %vm2509_vm7, %v2028_v12  ;;  %2329 = vperm.xlu1 %2868, %v2028_v12   ;;  %2746 = vmatmul.mubr.msk.bf16.vlgmr.msra.gmra.mrb[0].mxu1 %vm2371_vm5, %v2355_v22  ;;  %v1848_v59 = vsel %vm1760_vm8, 0, %v1846_v8  ;;  %vm2011_vm13 = vcmp.lt.f32.partialorder %v4511_v63, 5.0  ;;  %v2195_v14 = vmul.f32 %v2179_v50, %v2179_v50  ;;  %v2194_v55 = vmul.f32 %v2178_v7, %v2178_v7 }
 0x1d4   : > { %v1842_v21 = vmul.f32 %v1841_v43, %v1839_v46  ;;  %v1852_v62 = vand.u32 3, %v1848_v59  ;;  %v2234_v15 = vmul.f32 1.442695, %v4784_v26  ;;  %v2232_v24 = vmul.f32 1.442695, %v4789_v48 }
 0x1d5   : > { %v2275_v28 = vpop.permute.xlu0 %2274  ;;  %v2216_v58 = vmul.f32 %v4647_v52, %v2194_v55  ;;  %v2250_v43 = vmul.f32 1.442695, %v4792_v56  ;;  %v2248_v60 = vmul.f32 1.442695, %v4795_v5  ;;  %v2710_v56 = vld [vmem:[%s4916_s4] ss:$0 sm:$0xff] }
 0x1d6   : > { %v2336_v20 = vmul.f32 %v2981_v54, %v2275_v28  ;;  %v1843_v23 = vxor.u32 2147483648, %v1842_v21  ;;  %vm1857_vm9 = vcmp.eq.s32.totalorder %v1852_v62, 2  ;;  %vm1854_vm10 = vcmp.eq.s32.totalorder %v1852_v62, 0 }
 0x1d7   : > { %vm1853_vm11 = vcmp.lt.s32.totalorder %v1852_v62, 2  ;;  %v2244_v53 = vmul.f32 1.442695, %v2216_v58 }
 0x1d8   : > { %v2352_v11 = vpack.c.bf16 %v2337_v3, %v2336_v20  ;;  %v1844_v6 = vsel %vm1761_vm6, %v1843_v23, %v1842_v21 }
 0x1d9   : > { %v1847_v35 = vsel %vm1760_vm8, %v4527_v49, %v1844_v6  ;;  %v2217_v49 = vmul.f32 %v4647_v52, %v2195_v14 }
 0x1da   : > { %2741 = vmatprep.mubr.msk.bf16.mxu0 %vm2371_vm5, %v2352_v11  ;;  %2982 = vcosq.f32 %v1847_v35 }
 0x1db   : > { %2984 = vsinq.f32 %v1847_v35  ;;  %v2246_v4 = vmul.f32 1.442695, %v2217_v49 }
 0x1dd   : > { %2986 = vpow2.f32 %v2246_v4 }
 0x1de   : > { %2988 = vpow2.f32 %v2244_v53 }
 0x1df   : > { %2990 = vpow2.f32 %v2234_v15 }
 0x1e0   : > { %2992 = vpow2.f32 %v2232_v24 }
 0x1e1   : > { %2994 = vpow2.f32 %v2250_v43 }
 0x1e2   : > { %2996 = vpow2.f32 %v2248_v60 }
 0x1e4   : > { %v2983_v18 = vpop.eup %2982 }
 0x1e5   : > { %v2985_v10 = vpop.eup %2984  ;;  %v1858_v34 = vxor.u32 2147483648, %v2983_v18 }
 0x1e6   : > { %v1855_v47 = vxor.u32 2147483648, %v2985_v10 }
 0x1e7   : > { %v1859_v29 = vsel %vm1857_vm9, %v1858_v34, %v2985_v10  ;;  %v2987_v61 = vpop.eup %2986 }
 0x1e8   : > { %v1856_v38 = vsel %vm1854_vm10, %v2983_v18, %v1855_v47  ;;  %v2989_v36 = vpop.eup %2988 }
 0x1e9   : > { %v1860_v0 = vsel %vm1853_vm11, %v1856_v38, %v1859_v29  ;;  %v2320_v17 = vpop.permute.xlu1 %2319  ;;  %v2991_v31 = vpop.eup %2990 }
 0x1ea   : > { %v1861_v1 = vsel %vm1851_vm12, nan, %v1860_v0  ;;  %v2345_v57 = vmul.f32 %v2987_v61, %v2320_v17  ;;  %v2993_v13 = vpop.eup %2992 }
 0x1eb   : > { %v1979_v51 = vadd.f32 1.0, %v1861_v1  ;;  %v2995_v48 = vpop.eup %2994 }
 0x1ec   : > { %v2997_v33 = vpop.eup %2996 }
 0x1ed   : > { %v1995_v2 = vmul.f32 0.5, %v1979_v51 }
 0x1ef   : > { %v2027_v9 = vsel %vm2011_vm13, %v1995_v2, 0.0 }
 0x1f0   : > { %2524 = vst.msk [vmem:[%s3594_s16 + $0x70] sm:$0xff] %vm2509_vm7, %v2027_v9  ;;  %2324 = vperm.xlu0 %2867, %v2027_v9  }
 0x205   : > { %v2315_v63 = vpop.permute.xlu0 %2314 }
 0x206   : > { %v2344_v32 = vmul.f32 %v2989_v36, %v2315_v63 }
 0x208   : > { %v2356_v16 = vpack.c.bf16 %v2345_v57, %v2344_v32 }
 0x20a   : > { %2749 = vmatprep.mubr.msk.bf16.mxu1 %vm2371_vm5, %v2356_v16 }
 0x221   : > { %v2290_v52 = vpop.permute.xlu1 %2289 }
 0x222   : > { %v2339_v37 = vmul.f32 %v2991_v31, %v2290_v52 }
 0x236   : > { %v2285_v19 = vpop.permute.xlu0 %2284 }
 0x237   : > { %v2338_v39 = vmul.f32 %v2993_v13, %v2285_v19 }
 0x239   : > { %v2353_v41 = vpack.c.bf16 %v2339_v37, %v2338_v39 }
 0x23b   : > { %2742 = vmatmul.mubr.msk.bf16.gmra.mrb[4].mxu0 %vm2371_vm5, %v2353_v41 }
 0x252   : > { %v2330_v26 = vpop.permute.xlu1 %2329 }
 0x253   : > { %v2347_v40 = vmul.f32 %v2995_v48, %v2330_v26 }
 0x26f   : > { %v2325_v44 = vpop.permute.xlu0 %2324 }
 0x270   : > { %v2346_v42 = vmul.f32 %v2997_v33, %v2325_v44 }
 0x272   : > { %v2357_v27 = vpack.c.bf16 %v2347_v40, %v2346_v42 }
 0x274   : > { %2750 = vmatmul.mubr.msk.bf16.gmra.mrb[4].mxu1 %vm2371_vm5, %v2357_v27 }
 0x2a4   : > { %v2739_v25 = vpop.f32.mrb[0].mxu0 }
 0x2a5   : > { %v2439_v12 = vadd.f32 %v2739_v25, %v2710_v56  ;;  %v2430_v46 = vpop.f32.mrb[1].mxu0 }
 0x2a6   : > { %v2747_v5 = vpop.f32.mrb[0].mxu1  ;;  %v2431_v22 = vadd.f32 %v2710_v56, %v2430_v46  ;;  %v2740_v3 = vpop.f32.mrb[2].mxu0 }
 0x2a7   : > { %v2471_v54 = vadd.f32 %v2747_v5, %v2710_v56  ;;  %v2462_v45 = vpop.f32.mrb[1].mxu1  ;;  %2495 = vst [vmem:[%s4842_s12 + $0x10] sm:$0xff] %v2439_v12  ;;  %v2442_v20 = vadd.f32 %v2740_v3, %v2710_v56  ;;  %v2433_v23 = vpop.f32.mrb[3].mxu0 }
 0x2a8   : > { %v2463_v21 = vadd.f32 %v2710_v56, %v2462_v45  ;;  %v2748_v28 = vpop.f32.mrb[2].mxu1  ;;  %2493 = vst [vmem:[%s4842_s12] sm:$0xff] %v2431_v22  ;;  %v2434_v6 = vadd.f32 %v2710_v56, %v2433_v23 }
 0x2a9   : > { %2503 = vst [vmem:[%s4842_s12 + $0x50] sm:$0xff] %v2471_v54  ;;  %v2474_v30 = vadd.f32 %v2748_v28, %v2710_v56  ;;  %v2465_v11 = vpop.f32.mrb[3].mxu1  ;;  %2496 = vst [vmem:[%s4842_s12 + $0x18] sm:$0xff] %v2442_v20 }
 0x2aa   : > { %2501 = vst [vmem:[%s4842_s12 + $0x40] sm:$0xff] %v2463_v21  ;;  %v2466_v35 = vadd.f32 %v2710_v56, %v2465_v11  ;;  %2494 = vst [vmem:[%s4842_s12 + $0x8] sm:$0xff] %v2434_v6 }
 0x2ab   : > { %2504 = vst [vmem:[%s4842_s12 + $0x58] sm:$0xff] %v2474_v30 }
 0x2ac   : > { %2502 = vst [vmem:[%s4842_s12 + $0x48] sm:$0xff] %v2466_v35 }
 0x30e   : > { %v2743_v8 = vpop.f32.mrb[4].mxu0 }
 0x30f   : > { %v2455_v59 = vadd.f32 %v2743_v8, %v2710_v56  ;;  %v2446_v62 = vpop.f32.mrb[5].mxu0 }
 0x310   : > { %v2447_v18 = vadd.f32 %v2710_v56, %v2446_v62  ;;  %v2744_v10 = vpop.f32.mrb[6].mxu0 }
 0x311   : > { %2499 = vst [vmem:[%s4842_s12 + $0x30] sm:$0xff] %v2455_v59  ;;  %v2458_v34 = vadd.f32 %v2744_v10, %v2710_v56  ;;  %v2449_v47 = vpop.f32.mrb[7].mxu0 }
 0x312   : > { %2497 = vst [vmem:[%s4842_s12 + $0x20] sm:$0xff] %v2447_v18  ;;  %v2450_v29 = vadd.f32 %v2710_v56, %v2449_v47 }
 0x313   : > { %2500 = vst [vmem:[%s4842_s12 + $0x38] sm:$0xff] %v2458_v34 }
 0x314   : > { %2498 = vst [vmem:[%s4842_s12 + $0x28] sm:$0xff] %v2450_v29 }
 0x347   : > { %v2751_v38 = vpop.f32.mrb[4].mxu1 }
 0x348   : > { %v2487_v50 = vadd.f32 %v2751_v38, %v2710_v56  ;;  %v2478_v0 = vpop.f32.mrb[5].mxu1 }
 0x349   : > { %v2479_v1 = vadd.f32 %v2710_v56, %v2478_v0  ;;  %v2752_v7 = vpop.f32.mrb[6].mxu1 }
 0x34a   : > { %2507 = vst [vmem:[%s4842_s12 + $0x70] sm:$0xff] %v2487_v50  ;;  %v2490_v51 = vadd.f32 %v2752_v7, %v2710_v56  ;;  %v2481_v14 = vpop.f32.mrb[7].mxu1 }
 0x34b   : > { %2505 = vst [vmem:[%s4842_s12 + $0x60] sm:$0xff] %v2479_v1  ;;  %v2482_v2 = vadd.f32 %v2710_v56, %v2481_v14 }
 0x34c   : > { %2508 = vst [vmem:[%s4842_s12 + $0x78] sm:$0xff] %v2490_v51 }
 0x34d   : > { %2506 = vst [vmem:[%s4842_s12 + $0x68] sm:$0xff] %v2482_v2 }
 0x34e   : > { %3025 = shalt.err (!%p3022_p3)
}
 0x34f   : > { %s3026_s28 = scalar_lea.hbm %s4862_s17, 2048  ;;  %s3030_s10 = scalar_lea.hbm %s4917_s5, 4096 }
 0x350   : > { %p3027_p4 = scmp.ne.s32.totalorder %s4862_s17, %s3026_s28  ;;  %p3031_p9 = scmp.lt.u32.totalorder %s4862_s17, %s4917_s5 }
 0x351   : > { %p3032_p10 = scmp.lt.u32.totalorder %s3030_s10, %s3026_s28  ;;  %p3034_p12 = scmp.lt.u32.totalorder %s3026_s28, %s4862_s17 }
 0x352   : > { %p3028_p7 = pnand %p3027_p4, %p3159_p5 }
 0x353   : > { %p3033_p11 = por %p3032_p10, %p3031_p9 }
 0x354   : > { %p3029_p8 = pneg %p3028_p7 }
 0x355   : > { %p3035_p13 = por %p3034_p12, %p3033_p11 }
 0x357   : > { %p3036_p0 = pnand %p3035_p13, %p3029_p8 }
 0x359   : > { %3039 = shalt.err (!%p3036_p0)
}
 0x35a   : > { %s3084_s13 = smov 128   ;;  %s3085_s15 = smov 8  }
 0x35b   : > { %2819 = dma.vmem_to_hbm [thread:$0]  (%p3159_p5), %s4864_s14, 2048, %s4862_s17, %s4871_s25, %s3084_s13, %s3084_s13, %s3085_s15  }
 0x35c PF: > { %p2825_p1 = scmp.ge.s32.totalorder %s3074_s24, 2  ;;  %s2564_s16 = sand.u32 1, %s3062_s21  }
 0x35d   : > { %s2565_s18 = scalar_lea.sflag [#allocation3], %s2564_s16 }
 0x35e   : > { %p2822_p2 = pnand %p2825_p1, %p3163_p6 }
 0x360   : > { %3057 = dma.done.wait (!%p2822_p2), %s2565_s18, 2048  }
 0x361   : > { %3059 = vsyncadd (!%p2822_p2), %s2565_s18, 4294965248  ;;  %p17_p3 = scmp.ge.s32.totalorder %s3146_s27, 4   ;;  %s4951_s21 = smov %s3066_s22 }
 0x362   : > { %s4952_s22 = smov %s3070_s23  ;;  %s4953_s23 = smov %s3157_s30 }
 0x363   : > { %s4954_s24 = smov %s3146_s27  ;;  %19 = sbr.rel (!%p17_p3) target bundleno = 3 (0x3), region = 87 }
 0x36a   :  { %2578 = vsyncpa [#allocation3], 1 }
 0x36b   :  { %2580 = vsyncpa [#allocation3 + $0x1], 1 }

</bundles_post_ra>
